<compile_context>
chip_gen: v7x
topology: tpu7x:2x2x1
jax: 0.10.0
libtpu: 0.0.40
codegen_flags: <defaults>
</compile_context>

<pallas_src>
import functools

import numpy as np
import jax
import jax.numpy as jnp
from jax.experimental import pallas as pl
from jax.experimental.pallas import tpu as pltpu

EPS = 1e-5


def _vmem_spec():
    return pl.BlockSpec(memory_space=pltpu.MemorySpace.VMEM)


def _vmem_limit_bytes(default=48 * 1024 * 1024):
    """Scoped-VMEM budget sized from the actual chip (~3/4 of physical capacity)."""
    try:
        cap = getattr(pltpu.get_tpu_info(), "vmem_capacity_bytes", None)
        if cap:
            return int(cap) * 3 // 4
    except Exception:
        pass
    return default


def _valid_mask(B, H, W):
    """1.0 at working-slab lanes holding a real output pixel, 0.0 at halo/junk lanes.

    Working lane f holds the conv output for padded flat position q = f + Wp + 1, where
    the padded flat index of (image b, padded row i, padded col j) is b*Hp*Wp + i*Wp + j.
    Real pixels are the interior 1 <= i <= H, 1 <= j <= W.
    """
    Hp, Wp = H + 2, W + 2
    S = Hp * Wp
    P = B * S
    q = np.arange(P) + Wp + 1
    rem = q % S
    i, j = rem // Wp, rem % Wp
    valid = (i >= 1) & (i <= H) & (j >= 1) & (j <= W)
    assert int(valid.sum()) == B * H * W
    return valid.astype(np.float32).reshape(1, P)


def _resnet_block_kernel(x_ref, w1_ref, w2_ref, bn_ref, mask_ref, o_ref, apad_ref,
                         *, B, C, H, W):
    """Fused conv3x3 -> BN -> ReLU -> conv3x3 -> BN -> +residual (training-mode BN).

    x_ref    : (B, C, H*W)  input, lane-dense (free reshape of NCHW); also the residual
    w1_ref   : (9, C, C)    conv1 weights, w1_ref[ky*3+kx] = W[:, :, ky, kx]  (Cout,Cin)
    w2_ref   : (9, C, C)    conv2 weights, same ordering
    bn_ref   : (C, 4)       [gamma1, beta1, gamma2, beta2] per channel
    mask_ref : (1, P)       validity mask over the working slab (see _valid_mask)
    o_ref    : (B, C, H*W)  output, lane-dense
    apad_ref : (C, PTOT)    channel-major zero-padded activation, flattened with row
                            stride Wp so a 3x3 tap (ky,kx) is a contiguous lane slice at
                            offset ky*Wp + kx (reused by conv1's and conv2's input).
    """
    Hp, Wp = H + 2, W + 2
    S = Hp * Wp                  # padded pixels per image
    P = B * S                    # working-slab length (lane axis of all big tensors)
    M = B * H * W                # number of real pixels (BN normalizer)

    mask = mask_ref[...]         # (1, P)

    # ---- Stage x into the padded channel-major buffer.  Zeroed ONCE: the halo stays 0
    #      for both convs, so there is no second zeroing / padding pass. ---------------
    apad_ref[...] = jnp.zeros_like(apad_ref)
    for b in range(B):
        for h in range(H):
            dst = b * S + (h + 1) * Wp + 1        # padded flat index of pixel (b, h, 0)
            apad_ref[:, dst:dst + W] = x_ref[b, :, h * W:(h + 1) * W]

    def conv3x3(w_ref):
        # 9 accumulating K=C matmuls on contiguous lane-shifted views of apad (no im2col
        # slab to build or hold in VMEM); output is lane-dense (C, P), f32 accumulation.
        acc = None
        for t in range(9):
            st = (t // 3) * Wp + (t % 3)
            part = jnp.dot(w_ref[t], apad_ref[:, st:st + P],
                           preferred_element_type=jnp.float32)
            acc = part if acc is None else acc + part
        return acc               # acc[:, f] = conv at padded flat position f + Wp + 1

    def bn_fold(y, gamma, beta):
        # Training-mode BN over the M real pixels, folded into one scale/shift.
        mean = jnp.sum(y * mask, axis=1, keepdims=True) / M
        var = jnp.sum(((y - mean) * mask) ** 2, axis=1, keepdims=True) / M
        scale = gamma * jax.lax.rsqrt(var + EPS)
        shift = beta - mean * scale
        return y * scale + shift

    # ---- conv1 -> BN1 -> ReLU, written back into the SAME padded buffer.  Masking the
    #      junk lanes both drops them from the activation and re-creates the zero halo
    #      (junk working lanes land exactly on halo positions). ------------------------
    h1 = jnp.maximum(bn_fold(conv3x3(w1_ref), bn_ref[:, 0:1], bn_ref[:, 1:2]), 0.0)
    apad_ref[:, Wp + 1:Wp + 1 + P] = h1 * mask

    # ---- conv2 -> BN2 -----------------------------------------------------------------
    y2 = bn_fold(conv3x3(w2_ref), bn_ref[:, 2:3], bn_ref[:, 3:4])

    # ---- residual add + lane-dense output ----------------------------------------------
    for b in range(B):
        for h in range(H):
            src = b * S + h * Wp                  # working index of pixel (b, h, 0)
            o_ref[b, :, h * W:(h + 1) * W] = (
                x_ref[b, :, h * W:(h + 1) * W] + y2[:, src:src + W])


@jax.jit
def resnet_block(x_nchw, params):
    """Forward pass of ResnetBlock. x_nchw: (B, C, H, W) float32."""
    x = x_nchw.astype(jnp.float32)
    B, C, H, W = x.shape
    Hp, Wp = H + 2, W + 2
    P = B * Hp * Wp
    PTOT = P + 2 * Wp + 2        # slack so every 3x3 tap slice stays in-bounds

    # Free reshape (trailing-dim merge, no data movement): lane-dense kernel I/O.
    x_flat = x.reshape(B, C, H * W)

    # Tiny (9*C*C) weight re-orderings: (Cout, Cin, 3, 3) -> (tap, Cout, Cin).
    w1 = jnp.transpose(params["w1"], (2, 3, 0, 1)).reshape(9, C, C)
    w2 = jnp.transpose(params["w2"], (2, 3, 0, 1)).reshape(9, C, C)
    # Conv biases (params["b1"]/["b2"]) are intentionally unused: a per-channel constant
    # added before training-mode BN is exactly cancelled by the batch-mean subtraction.
    bn = jnp.stack([params["g1"], params["be1"], params["g2"], params["be2"]], axis=1)

    mask = jnp.asarray(_valid_mask(B, H, W))      # (1, P), computed on host (constant)

    out_flat = pl.pallas_call(
        functools.partial(_resnet_block_kernel, B=B, C=C, H=H, W=W),
        out_shape=jax.ShapeDtypeStruct((B, C, H * W), jnp.float32),
        in_specs=[_vmem_spec()] * 5,
        out_specs=_vmem_spec(),
        scratch_shapes=[pltpu.VMEM((C, PTOT), jnp.float32)],
        compiler_params=pltpu.CompilerParams(vmem_limit_bytes=_vmem_limit_bytes()),
    )(x_flat, w1, w2, bn, mask)

    return out_flat.reshape(B, C, H, W)


def resnet_block_reference(x, params):
    """Pure-JAX NCHW reference mirroring the PyTorch module (train-mode BN, with bias)."""
    def conv(z, w, b):
        y = jax.lax.conv_general_dilated(
            z, w, window_strides=(1, 1), padding="SAME",
            dimension_numbers=("NCHW", "OIHW", "NCHW"),
            precision=jax.lax.Precision.HIGHEST)
        return y + b[None, :, None, None]

    def bn(z, g, be):
        mean = jnp.mean(z, axis=(0, 2, 3), keepdims=True)
        var = jnp.mean((z - mean) ** 2, axis=(0, 2, 3), keepdims=True)
        return ((z - mean) * jax.lax.rsqrt(var + EPS)
                * g[None, :, None, None] + be[None, :, None, None])

    h = jax.nn.relu(bn(conv(x, params["w1"], params["b1"]), params["g1"], params["be1"]))
    h2 = bn(conv(h, params["w2"], params["b2"]), params["g2"], params["be2"])
    return x + h2


if __name__ == "__main__":
    B, C, H, W = 2, 4, 16, 16
    keys = jax.random.split(jax.random.PRNGKey(0), 9)

    params = {
        "w1": jax.random.normal(keys[0], (C, C, 3, 3), jnp.float32) * 0.2,
        "b1": jax.random.normal(keys[1], (C,), jnp.float32) * 0.1,
        "g1": 1.0 + 0.1 * jax.random.normal(keys[2], (C,), jnp.float32),
        "be1": 0.1 * jax.random.normal(keys[3], (C,), jnp.float32),
        "w2": jax.random.normal(keys[4], (C, C, 3, 3), jnp.float32) * 0.2,
        "b2": jax.random.normal(keys[5], (C,), jnp.float32) * 0.1,
        "g2": 1.0 + 0.1 * jax.random.normal(keys[6], (C,), jnp.float32),
        "be2": 0.1 * jax.random.normal(keys[7], (C,), jnp.float32),
    }
    x = jax.random.normal(keys[8], (B, C, H, W), jnp.float32)

    out = jax.block_until_ready(resnet_block(x, params))
    ref = jax.block_until_ready(resnet_block_reference(x, params))

    assert out.shape == (B, C, H, W)
    # Tolerance reflects default-precision (single-pass bf16) MXU math in the kernel vs
    # an f32 HIGHEST-precision reference; still catches any structural/semantic bug.
    assert jnp.allclose(out, ref, rtol=2e-2, atol=2e-2), (
        f"max abs diff {jnp.max(jnp.abs(out - ref))}")

    print("KERNEL_OK")
</pallas_src>

<mosaic_0001>
module attributes {stable_mosaic.version = 11 : i64} {
  func.func @_resnet_block_kernel(%arg0: memref<2x4x256xf32, #tpu.memory_space<vmem>>, %arg1: memref<9x4x4xf32, #tpu.memory_space<vmem>>, %arg2: memref<9x4x4xf32, #tpu.memory_space<vmem>>, %arg3: memref<4x4xf32, #tpu.memory_space<vmem>>, %arg4: memref<1x648xf32, #tpu.memory_space<vmem>>, %arg5: memref<2x4x256xf32, #tpu.memory_space<vmem>>, %arg6: memref<4x686xf32, #tpu.memory_space<vmem>>) attributes {dimension_semantics = [], scalar_prefetch = 0 : i64, scratch_operands = 1 : i64, tpu.core_type = #tpu.core_type<tc>} {
    %c0 = arith.constant 0 : index
    %c0_0 = arith.constant 0 : index
    %0 = vector.load %arg4[%c0, %c0_0] : memref<1x648xf32, #tpu.memory_space<vmem>>, vector<1x648xf32>
    %cst = arith.constant 0.000000e+00 : f32
    %1 = vector.broadcast %cst : f32 to vector<4x686xf32>
    %c0_1 = arith.constant 0 : index
    %c0_2 = arith.constant 0 : index
    %2 = vector.load %arg6[%c0_1, %c0_2] : memref<4x686xf32, #tpu.memory_space<vmem>>, vector<4x686xf32>
    tpu.vector_store %arg6[%c0_1, %c0_2], %1 {strides = array<i32>} : memref<4x686xf32, #tpu.memory_space<vmem>>, vector<4x686xf32>,
    %c0_3 = arith.constant 0 : index
    %c0_4 = arith.constant 0 : index
    %c0_5 = arith.constant 0 : index
    %3 = vector.load %arg0[%c0_3, %c0_4, %c0_5] : memref<2x4x256xf32, #tpu.memory_space<vmem>>, vector<1x4x16xf32>
    %4 = vector.shape_cast %3 : vector<1x4x16xf32> to vector<4x16xf32>
    %c0_6 = arith.constant 0 : index
    %c19 = arith.constant 19 : index
    %5 = vector.load %arg6[%c0_6, %c19] : memref<4x686xf32, #tpu.memory_space<vmem>>, vector<4x16xf32>
    tpu.vector_store %arg6[%c0_6, %c19], %4 {strides = array<i32>} : memref<4x686xf32, #tpu.memory_space<vmem>>, vector<4x16xf32>,
    %c0_7 = arith.constant 0 : index
    %c0_8 = arith.constant 0 : index
    %c16 = arith.constant 16 : index
    %6 = vector.load %arg0[%c0_7, %c0_8, %c16] : memref<2x4x256xf32, #tpu.memory_space<vmem>>, vector<1x4x16xf32>
    %7 = vector.shape_cast %6 : vector<1x4x16xf32> to vector<4x16xf32>
    %c0_9 = arith.constant 0 : index
    %c37 = arith.constant 37 : index
    %8 = vector.load %arg6[%c0_9, %c37] : memref<4x686xf32, #tpu.memory_space<vmem>>, vector<4x16xf32>
    tpu.vector_store %arg6[%c0_9, %c37], %7 {strides = array<i32>} : memref<4x686xf32, #tpu.memory_space<vmem>>, vector<4x16xf32>,
    %c0_10 = arith.constant 0 : index
    %c0_11 = arith.constant 0 : index
    %c32 = arith.constant 32 : index
    %9 = vector.load %arg0[%c0_10, %c0_11, %c32] : memref<2x4x256xf32, #tpu.memory_space<vmem>>, vector<1x4x16xf32>
    %10 = vector.shape_cast %9 : vector<1x4x16xf32> to vector<4x16xf32>
    %c0_12 = arith.constant 0 : index
    %c55 = arith.constant 55 : index
    %11 = vector.load %arg6[%c0_12, %c55] : memref<4x686xf32, #tpu.memory_space<vmem>>, vector<4x16xf32>
    tpu.vector_store %arg6[%c0_12, %c55], %10 {strides = array<i32>} : memref<4x686xf32, #tpu.memory_space<vmem>>, vector<4x16xf32>,
    %c0_13 = arith.constant 0 : index
    %c0_14 = arith.constant 0 : index
    %c48 = arith.constant 48 : index
    %12 = vector.load %arg0[%c0_13, %c0_14, %c48] : memref<2x4x256xf32, #tpu.memory_space<vmem>>, vector<1x4x16xf32>
    %13 = vector.shape_cast %12 : vector<1x4x16xf32> to vector<4x16xf32>
    %c0_15 = arith.constant 0 : index
    %c73 = arith.constant 73 : index
    %14 = vector.load %arg6[%c0_15, %c73] : memref<4x686xf32, #tpu.memory_space<vmem>>, vector<4x16xf32>
    tpu.vector_store %arg6[%c0_15, %c73], %13 {strides = array<i32>} : memref<4x686xf32, #tpu.memory_space<vmem>>, vector<4x16xf32>,
    %c0_16 = arith.constant 0 : index
    %c0_17 = arith.constant 0 : index
    %c64 = arith.constant 64 : index
    %15 = vector.load %arg0[%c0_16, %c0_17, %c64] : memref<2x4x256xf32, #tpu.memory_space<vmem>>, vector<1x4x16xf32>
    %16 = vector.shape_cast %15 : vector<1x4x16xf32> to vector<4x16xf32>
    %c0_18 = arith.constant 0 : index
    %c91 = arith.constant 91 : index
    %17 = vector.load %arg6[%c0_18, %c91] : memref<4x686xf32, #tpu.memory_space<vmem>>, vector<4x16xf32>
    tpu.vector_store %arg6[%c0_18, %c91], %16 {strides = array<i32>} : memref<4x686xf32, #tpu.memory_space<vmem>>, vector<4x16xf32>,
    %c0_19 = arith.constant 0 : index
    %c0_20 = arith.constant 0 : index
    %c80 = arith.constant 80 : index
    %18 = vector.load %arg0[%c0_19, %c0_20, %c80] : memref<2x4x256xf32, #tpu.memory_space<vmem>>, vector<1x4x16xf32>
    %19 = vector.shape_cast %18 : vector<1x4x16xf32> to vector<4x16xf32>
    %c0_21 = arith.constant 0 : index
    %c109 = arith.constant 109 : index
    %20 = vector.load %arg6[%c0_21, %c109] : memref<4x686xf32, #tpu.memory_space<vmem>>, vector<4x16xf32>
    tpu.vector_store %arg6[%c0_21, %c109], %19 {strides = array<i32>} : memref<4x686xf32, #tpu.memory_space<vmem>>, vector<4x16xf32>,
    %c0_22 = arith.constant 0 : index
    %c0_23 = arith.constant 0 : index
    %c96 = arith.constant 96 : index
    %21 = vector.load %arg0[%c0_22, %c0_23, %c96] : memref<2x4x256xf32, #tpu.memory_space<vmem>>, vector<1x4x16xf32>
    %22 = vector.shape_cast %21 : vector<1x4x16xf32> to vector<4x16xf32>
    %c0_24 = arith.constant 0 : index
    %c127 = arith.constant 127 : index
    %23 = vector.load %arg6[%c0_24, %c127] : memref<4x686xf32, #tpu.memory_space<vmem>>, vector<4x16xf32>
    tpu.vector_store %arg6[%c0_24, %c127], %22 {strides = array<i32>} : memref<4x686xf32, #tpu.memory_space<vmem>>, vector<4x16xf32>,
    %c0_25 = arith.constant 0 : index
    %c0_26 = arith.constant 0 : index
    %c112 = arith.constant 112 : index
    %24 = vector.load %arg0[%c0_25, %c0_26, %c112] : memref<2x4x256xf32, #tpu.memory_space<vmem>>, vector<1x4x16xf32>
    %25 = vector.shape_cast %24 : vector<1x4x16xf32> to vector<4x16xf32>
    %c0_27 = arith.constant 0 : index
    %c145 = arith.constant 145 : index
    %26 = vector.load %arg6[%c0_27, %c145] : memref<4x686xf32, #tpu.memory_space<vmem>>, vector<4x16xf32>
    tpu.vector_store %arg6[%c0_27, %c145], %25 {strides = array<i32>} : memref<4x686xf32, #tpu.memory_space<vmem>>, vector<4x16xf32>,
    %c0_28 = arith.constant 0 : index
    %c0_29 = arith.constant 0 : index
    %c128 = arith.constant 128 : index
    %27 = vector.load %arg0[%c0_28, %c0_29, %c128] : memref<2x4x256xf32, #tpu.memory_space<vmem>>, vector<1x4x16xf32>
    %28 = vector.shape_cast %27 : vector<1x4x16xf32> to vector<4x16xf32>
    %c0_30 = arith.constant 0 : index
    %c163 = arith.constant 163 : index
    %29 = vector.load %arg6[%c0_30, %c163] : memref<4x686xf32, #tpu.memory_space<vmem>>, vector<4x16xf32>
    tpu.vector_store %arg6[%c0_30, %c163], %28 {strides = array<i32>} : memref<4x686xf32, #tpu.memory_space<vmem>>, vector<4x16xf32>,
    %c0_31 = arith.constant 0 : index
    %c0_32 = arith.constant 0 : index
    %c144 = arith.constant 144 : index
    %30 = vector.load %arg0[%c0_31, %c0_32, %c144] : memref<2x4x256xf32, #tpu.memory_space<vmem>>, vector<1x4x16xf32>
    %31 = vector.shape_cast %30 : vector<1x4x16xf32> to vector<4x16xf32>
    %c0_33 = arith.constant 0 : index
    %c181 = arith.constant 181 : index
    %32 = vector.load %arg6[%c0_33, %c181] : memref<4x686xf32, #tpu.memory_space<vmem>>, vector<4x16xf32>
    tpu.vector_store %arg6[%c0_33, %c181], %31 {strides = array<i32>} : memref<4x686xf32, #tpu.memory_space<vmem>>, vector<4x16xf32>,
    %c0_34 = arith.constant 0 : index
    %c0_35 = arith.constant 0 : index
    %c160 = arith.constant 160 : index
    %33 = vector.load %arg0[%c0_34, %c0_35, %c160] : memref<2x4x256xf32, #tpu.memory_space<vmem>>, vector<1x4x16xf32>
    %34 = vector.shape_cast %33 : vector<1x4x16xf32> to vector<4x16xf32>
    %c0_36 = arith.constant 0 : index
    %c199 = arith.constant 199 : index
    %35 = vector.load %arg6[%c0_36, %c199] : memref<4x686xf32, #tpu.memory_space<vmem>>, vector<4x16xf32>
    tpu.vector_store %arg6[%c0_36, %c199], %34 {strides = array<i32>} : memref<4x686xf32, #tpu.memory_space<vmem>>, vector<4x16xf32>,
    %c0_37 = arith.constant 0 : index
    %c0_38 = arith.constant 0 : index
    %c176 = arith.constant 176 : index
    %36 = vector.load %arg0[%c0_37, %c0_38, %c176] : memref<2x4x256xf32, #tpu.memory_space<vmem>>, vector<1x4x16xf32>
    %37 = vector.shape_cast %36 : vector<1x4x16xf32> to vector<4x16xf32>
    %c0_39 = arith.constant 0 : index
    %c217 = arith.constant 217 : index
    %38 = vector.load %arg6[%c0_39, %c217] : memref<4x686xf32, #tpu.memory_space<vmem>>, vector<4x16xf32>
    tpu.vector_store %arg6[%c0_39, %c217], %37 {strides = array<i32>} : memref<4x686xf32, #tpu.memory_space<vmem>>, vector<4x16xf32>,
    %c0_40 = arith.constant 0 : index
    %c0_41 = arith.constant 0 : index
    %c192 = arith.constant 192 : index
    %39 = vector.load %arg0[%c0_40, %c0_41, %c192] : memref<2x4x256xf32, #tpu.memory_space<vmem>>, vector<1x4x16xf32>
    %40 = vector.shape_cast %39 : vector<1x4x16xf32> to vector<4x16xf32>
    %c0_42 = arith.constant 0 : index
    %c235 = arith.constant 235 : index
    %41 = vector.load %arg6[%c0_42, %c235] : memref<4x686xf32, #tpu.memory_space<vmem>>, vector<4x16xf32>
    tpu.vector_store %arg6[%c0_42, %c235], %40 {strides = array<i32>} : memref<4x686xf32, #tpu.memory_space<vmem>>, vector<4x16xf32>,
    %c0_43 = arith.constant 0 : index
    %c0_44 = arith.constant 0 : index
    %c208 = arith.constant 208 : index
    %42 = vector.load %arg0[%c0_43, %c0_44, %c208] : memref<2x4x256xf32, #tpu.memory_space<vmem>>, vector<1x4x16xf32>
    %43 = vector.shape_cast %42 : vector<1x4x16xf32> to vector<4x16xf32>
    %c0_45 = arith.constant 0 : index
    %c253 = arith.constant 253 : index
    %44 = vector.load %arg6[%c0_45, %c253] : memref<4x686xf32, #tpu.memory_space<vmem>>, vector<4x16xf32>
    tpu.vector_store %arg6[%c0_45, %c253], %43 {strides = array<i32>} : memref<4x686xf32, #tpu.memory_space<vmem>>, vector<4x16xf32>,
    %c0_46 = arith.constant 0 : index
    %c0_47 = arith.constant 0 : index
    %c224 = arith.constant 224 : index
    %45 = vector.load %arg0[%c0_46, %c0_47, %c224] : memref<2x4x256xf32, #tpu.memory_space<vmem>>, vector<1x4x16xf32>
    %46 = vector.shape_cast %45 : vector<1x4x16xf32> to vector<4x16xf32>
    %c0_48 = arith.constant 0 : index
    %c271 = arith.constant 271 : index
    %47 = vector.load %arg6[%c0_48, %c271] : memref<4x686xf32, #tpu.memory_space<vmem>>, vector<4x16xf32>
    tpu.vector_store %arg6[%c0_48, %c271], %46 {strides = array<i32>} : memref<4x686xf32, #tpu.memory_space<vmem>>, vector<4x16xf32>,
    %c0_49 = arith.constant 0 : index
    %c0_50 = arith.constant 0 : index
    %c240 = arith.constant 240 : index
    %48 = vector.load %arg0[%c0_49, %c0_50, %c240] : memref<2x4x256xf32, #tpu.memory_space<vmem>>, vector<1x4x16xf32>
    %49 = vector.shape_cast %48 : vector<1x4x16xf32> to vector<4x16xf32>
    %c0_51 = arith.constant 0 : index
    %c289 = arith.constant 289 : index
    %50 = vector.load %arg6[%c0_51, %c289] : memref<4x686xf32, #tpu.memory_space<vmem>>, vector<4x16xf32>
    tpu.vector_store %arg6[%c0_51, %c289], %49 {strides = array<i32>} : memref<4x686xf32, #tpu.memory_space<vmem>>, vector<4x16xf32>,
    %c1 = arith.constant 1 : index
    %c0_52 = arith.constant 0 : index
    %c0_53 = arith.constant 0 : index
    %51 = vector.load %arg0[%c1, %c0_52, %c0_53] : memref<2x4x256xf32, #tpu.memory_space<vmem>>, vector<1x4x16xf32>
    %52 = vector.shape_cast %51 : vector<1x4x16xf32> to vector<4x16xf32>
    %c0_54 = arith.constant 0 : index
    %c343 = arith.constant 343 : index
    %53 = vector.load %arg6[%c0_54, %c343] : memref<4x686xf32, #tpu.memory_space<vmem>>, vector<4x16xf32>
    tpu.vector_store %arg6[%c0_54, %c343], %52 {strides = array<i32>} : memref<4x686xf32, #tpu.memory_space<vmem>>, vector<4x16xf32>,
    %c1_55 = arith.constant 1 : index
    %c0_56 = arith.constant 0 : index
    %c16_57 = arith.constant 16 : index
    %54 = vector.load %arg0[%c1_55, %c0_56, %c16_57] : memref<2x4x256xf32, #tpu.memory_space<vmem>>, vector<1x4x16xf32>
    %55 = vector.shape_cast %54 : vector<1x4x16xf32> to vector<4x16xf32>
    %c0_58 = arith.constant 0 : index
    %c361 = arith.constant 361 : index
    %56 = vector.load %arg6[%c0_58, %c361] : memref<4x686xf32, #tpu.memory_space<vmem>>, vector<4x16xf32>
    tpu.vector_store %arg6[%c0_58, %c361], %55 {strides = array<i32>} : memref<4x686xf32, #tpu.memory_space<vmem>>, vector<4x16xf32>,
    %c1_59 = arith.constant 1 : index
    %c0_60 = arith.constant 0 : index
    %c32_61 = arith.constant 32 : index
    %57 = vector.load %arg0[%c1_59, %c0_60, %c32_61] : memref<2x4x256xf32, #tpu.memory_space<vmem>>, vector<1x4x16xf32>
    %58 = vector.shape_cast %57 : vector<1x4x16xf32> to vector<4x16xf32>
    %c0_62 = arith.constant 0 : index
    %c379 = arith.constant 379 : index
    %59 = vector.load %arg6[%c0_62, %c379] : memref<4x686xf32, #tpu.memory_space<vmem>>, vector<4x16xf32>
    tpu.vector_store %arg6[%c0_62, %c379], %58 {strides = array<i32>} : memref<4x686xf32, #tpu.memory_space<vmem>>, vector<4x16xf32>,
    %c1_63 = arith.constant 1 : index
    %c0_64 = arith.constant 0 : index
    %c48_65 = arith.constant 48 : index
    %60 = vector.load %arg0[%c1_63, %c0_64, %c48_65] : memref<2x4x256xf32, #tpu.memory_space<vmem>>, vector<1x4x16xf32>
    %61 = vector.shape_cast %60 : vector<1x4x16xf32> to vector<4x16xf32>
    %c0_66 = arith.constant 0 : index
    %c397 = arith.constant 397 : index
    %62 = vector.load %arg6[%c0_66, %c397] : memref<4x686xf32, #tpu.memory_space<vmem>>, vector<4x16xf32>
    tpu.vector_store %arg6[%c0_66, %c397], %61 {strides = array<i32>} : memref<4x686xf32, #tpu.memory_space<vmem>>, vector<4x16xf32>,
    %c1_67 = arith.constant 1 : index
    %c0_68 = arith.constant 0 : index
    %c64_69 = arith.constant 64 : index
    %63 = vector.load %arg0[%c1_67, %c0_68, %c64_69] : memref<2x4x256xf32, #tpu.memory_space<vmem>>, vector<1x4x16xf32>
    %64 = vector.shape_cast %63 : vector<1x4x16xf32> to vector<4x16xf32>
    %c0_70 = arith.constant 0 : index
    %c415 = arith.constant 415 : index
    %65 = vector.load %arg6[%c0_70, %c415] : memref<4x686xf32, #tpu.memory_space<vmem>>, vector<4x16xf32>
    tpu.vector_store %arg6[%c0_70, %c415], %64 {strides = array<i32>} : memref<4x686xf32, #tpu.memory_space<vmem>>, vector<4x16xf32>,
    %c1_71 = arith.constant 1 : index
    %c0_72 = arith.constant 0 : index
    %c80_73 = arith.constant 80 : index
    %66 = vector.load %arg0[%c1_71, %c0_72, %c80_73] : memref<2x4x256xf32, #tpu.memory_space<vmem>>, vector<1x4x16xf32>
    %67 = vector.shape_cast %66 : vector<1x4x16xf32> to vector<4x16xf32>
    %c0_74 = arith.constant 0 : index
    %c433 = arith.constant 433 : index
    %68 = vector.load %arg6[%c0_74, %c433] : memref<4x686xf32, #tpu.memory_space<vmem>>, vector<4x16xf32>
    tpu.vector_store %arg6[%c0_74, %c433], %67 {strides = array<i32>} : memref<4x686xf32, #tpu.memory_space<vmem>>, vector<4x16xf32>,
    %c1_75 = arith.constant 1 : index
    %c0_76 = arith.constant 0 : index
    %c96_77 = arith.constant 96 : index
    %69 = vector.load %arg0[%c1_75, %c0_76, %c96_77] : memref<2x4x256xf32, #tpu.memory_space<vmem>>, vector<1x4x16xf32>
    %70 = vector.shape_cast %69 : vector<1x4x16xf32> to vector<4x16xf32>
    %c0_78 = arith.constant 0 : index
    %c451 = arith.constant 451 : index
    %71 = vector.load %arg6[%c0_78, %c451] : memref<4x686xf32, #tpu.memory_space<vmem>>, vector<4x16xf32>
    tpu.vector_store %arg6[%c0_78, %c451], %70 {strides = array<i32>} : memref<4x686xf32, #tpu.memory_space<vmem>>, vector<4x16xf32>,
    %c1_79 = arith.constant 1 : index
    %c0_80 = arith.constant 0 : index
    %c112_81 = arith.constant 112 : index
    %72 = vector.load %arg0[%c1_79, %c0_80, %c112_81] : memref<2x4x256xf32, #tpu.memory_space<vmem>>, vector<1x4x16xf32>
    %73 = vector.shape_cast %72 : vector<1x4x16xf32> to vector<4x16xf32>
    %c0_82 = arith.constant 0 : index
    %c469 = arith.constant 469 : index
    %74 = vector.load %arg6[%c0_82, %c469] : memref<4x686xf32, #tpu.memory_space<vmem>>, vector<4x16xf32>
    tpu.vector_store %arg6[%c0_82, %c469], %73 {strides = array<i32>} : memref<4x686xf32, #tpu.memory_space<vmem>>, vector<4x16xf32>,
    %c1_83 = arith.constant 1 : index
    %c0_84 = arith.constant 0 : index
    %c128_85 = arith.constant 128 : index
    %75 = vector.load %arg0[%c1_83, %c0_84, %c128_85] : memref<2x4x256xf32, #tpu.memory_space<vmem>>, vector<1x4x16xf32>
    %76 = vector.shape_cast %75 : vector<1x4x16xf32> to vector<4x16xf32>
    %c0_86 = arith.constant 0 : index
    %c487 = arith.constant 487 : index
    %77 = vector.load %arg6[%c0_86, %c487] : memref<4x686xf32, #tpu.memory_space<vmem>>, vector<4x16xf32>
    tpu.vector_store %arg6[%c0_86, %c487], %76 {strides = array<i32>} : memref<4x686xf32, #tpu.memory_space<vmem>>, vector<4x16xf32>,
    %c1_87 = arith.constant 1 : index
    %c0_88 = arith.constant 0 : index
    %c144_89 = arith.constant 144 : index
    %78 = vector.load %arg0[%c1_87, %c0_88, %c144_89] : memref<2x4x256xf32, #tpu.memory_space<vmem>>, vector<1x4x16xf32>
    %79 = vector.shape_cast %78 : vector<1x4x16xf32> to vector<4x16xf32>
    %c0_90 = arith.constant 0 : index
    %c505 = arith.constant 505 : index
    %80 = vector.load %arg6[%c0_90, %c505] : memref<4x686xf32, #tpu.memory_space<vmem>>, vector<4x16xf32>
    tpu.vector_store %arg6[%c0_90, %c505], %79 {strides = array<i32>} : memref<4x686xf32, #tpu.memory_space<vmem>>, vector<4x16xf32>,
    %c1_91 = arith.constant 1 : index
    %c0_92 = arith.constant 0 : index
    %c160_93 = arith.constant 160 : index
    %81 = vector.load %arg0[%c1_91, %c0_92, %c160_93] : memref<2x4x256xf32, #tpu.memory_space<vmem>>, vector<1x4x16xf32>
    %82 = vector.shape_cast %81 : vector<1x4x16xf32> to vector<4x16xf32>
    %c0_94 = arith.constant 0 : index
    %c523 = arith.constant 523 : index
    %83 = vector.load %arg6[%c0_94, %c523] : memref<4x686xf32, #tpu.memory_space<vmem>>, vector<4x16xf32>
    tpu.vector_store %arg6[%c0_94, %c523], %82 {strides = array<i32>} : memref<4x686xf32, #tpu.memory_space<vmem>>, vector<4x16xf32>,
    %c1_95 = arith.constant 1 : index
    %c0_96 = arith.constant 0 : index
    %c176_97 = arith.constant 176 : index
    %84 = vector.load %arg0[%c1_95, %c0_96, %c176_97] : memref<2x4x256xf32, #tpu.memory_space<vmem>>, vector<1x4x16xf32>
    %85 = vector.shape_cast %84 : vector<1x4x16xf32> to vector<4x16xf32>
    %c0_98 = arith.constant 0 : index
    %c541 = arith.constant 541 : index
    %86 = vector.load %arg6[%c0_98, %c541] : memref<4x686xf32, #tpu.memory_space<vmem>>, vector<4x16xf32>
    tpu.vector_store %arg6[%c0_98, %c541], %85 {strides = array<i32>} : memref<4x686xf32, #tpu.memory_space<vmem>>, vector<4x16xf32>,
    %c1_99 = arith.constant 1 : index
    %c0_100 = arith.constant 0 : index
    %c192_101 = arith.constant 192 : index
    %87 = vector.load %arg0[%c1_99, %c0_100, %c192_101] : memref<2x4x256xf32, #tpu.memory_space<vmem>>, vector<1x4x16xf32>
    %88 = vector.shape_cast %87 : vector<1x4x16xf32> to vector<4x16xf32>
    %c0_102 = arith.constant 0 : index
    %c559 = arith.constant 559 : index
    %89 = vector.load %arg6[%c0_102, %c559] : memref<4x686xf32, #tpu.memory_space<vmem>>, vector<4x16xf32>
    tpu.vector_store %arg6[%c0_102, %c559], %88 {strides = array<i32>} : memref<4x686xf32, #tpu.memory_space<vmem>>, vector<4x16xf32>,
    %c1_103 = arith.constant 1 : index
    %c0_104 = arith.constant 0 : index
    %c208_105 = arith.constant 208 : index
    %90 = vector.load %arg0[%c1_103, %c0_104, %c208_105] : memref<2x4x256xf32, #tpu.memory_space<vmem>>, vector<1x4x16xf32>
    %91 = vector.shape_cast %90 : vector<1x4x16xf32> to vector<4x16xf32>
    %c0_106 = arith.constant 0 : index
    %c577 = arith.constant 577 : index
    %92 = vector.load %arg6[%c0_106, %c577] : memref<4x686xf32, #tpu.memory_space<vmem>>, vector<4x16xf32>
    tpu.vector_store %arg6[%c0_106, %c577], %91 {strides = array<i32>} : memref<4x686xf32, #tpu.memory_space<vmem>>, vector<4x16xf32>,
    %c1_107 = arith.constant 1 : index
    %c0_108 = arith.constant 0 : index
    %c224_109 = arith.constant 224 : index
    %93 = vector.load %arg0[%c1_107, %c0_108, %c224_109] : memref<2x4x256xf32, #tpu.memory_space<vmem>>, vector<1x4x16xf32>
    %94 = vector.shape_cast %93 : vector<1x4x16xf32> to vector<4x16xf32>
    %c0_110 = arith.constant 0 : index
    %c595 = arith.constant 595 : index
    %95 = vector.load %arg6[%c0_110, %c595] : memref<4x686xf32, #tpu.memory_space<vmem>>, vector<4x16xf32>
    tpu.vector_store %arg6[%c0_110, %c595], %94 {strides = array<i32>} : memref<4x686xf32, #tpu.memory_space<vmem>>, vector<4x16xf32>,
    %c1_111 = arith.constant 1 : index
    %c0_112 = arith.constant 0 : index
    %c240_113 = arith.constant 240 : index
    %96 = vector.load %arg0[%c1_111, %c0_112, %c240_113] : memref<2x4x256xf32, #tpu.memory_space<vmem>>, vector<1x4x16xf32>
    %97 = vector.shape_cast %96 : vector<1x4x16xf32> to vector<4x16xf32>
    %c0_114 = arith.constant 0 : index
    %c613 = arith.constant 613 : index
    %98 = vector.load %arg6[%c0_114, %c613] : memref<4x686xf32, #tpu.memory_space<vmem>>, vector<4x16xf32>
    tpu.vector_store %arg6[%c0_114, %c613], %97 {strides = array<i32>} : memref<4x686xf32, #tpu.memory_space<vmem>>, vector<4x16xf32>,
    %c0_115 = arith.constant 0 : index
    %c0_116 = arith.constant 0 : index
    %c0_117 = arith.constant 0 : index
    %99 = vector.load %arg1[%c0_115, %c0_116, %c0_117] : memref<9x4x4xf32, #tpu.memory_space<vmem>>, vector<1x4x4xf32>
    %100 = vector.shape_cast %99 : vector<1x4x4xf32> to vector<4x4xf32>
    %c0_118 = arith.constant 0 : index
    %c0_119 = arith.constant 0 : index
    %101 = vector.load %arg6[%c0_118, %c0_119] : memref<4x686xf32, #tpu.memory_space<vmem>>, vector<4x648xf32>
    %cst_120 = arith.constant dense<0.000000e+00> : vector<4x648xf32>
    %102 = tpu.matmul %100, %101, %cst_120 {dimension_numbers = #tpu.dot_dimension_numbers<[1], [0], [0], [1], [0, 0, 1, 1], [], []>} : vector<4x4xf32>, vector<4x648xf32>, vector<4x648xf32> -> vector<4x648xf32>
    %c1_121 = arith.constant 1 : index
    %c0_122 = arith.constant 0 : index
    %c0_123 = arith.constant 0 : index
    %103 = vector.load %arg1[%c1_121, %c0_122, %c0_123] : memref<9x4x4xf32, #tpu.memory_space<vmem>>, vector<1x4x4xf32>
    %104 = vector.shape_cast %103 : vector<1x4x4xf32> to vector<4x4xf32>
    %c0_124 = arith.constant 0 : index
    %c1_125 = arith.constant 1 : index
    %105 = vector.load %arg6[%c0_124, %c1_125] : memref<4x686xf32, #tpu.memory_space<vmem>>, vector<4x648xf32>
    %cst_126 = arith.constant dense<0.000000e+00> : vector<4x648xf32>
    %106 = tpu.matmul %104, %105, %cst_126 {dimension_numbers = #tpu.dot_dimension_numbers<[1], [0], [0], [1], [0, 0, 1, 1], [], []>} : vector<4x4xf32>, vector<4x648xf32>, vector<4x648xf32> -> vector<4x648xf32>
    %107 = arith.addf %102, %106 : vector<4x648xf32>
    %c2 = arith.constant 2 : index
    %c0_127 = arith.constant 0 : index
    %c0_128 = arith.constant 0 : index
    %108 = vector.load %arg1[%c2, %c0_127, %c0_128] : memref<9x4x4xf32, #tpu.memory_space<vmem>>, vector<1x4x4xf32>
    %109 = vector.shape_cast %108 : vector<1x4x4xf32> to vector<4x4xf32>
    %c0_129 = arith.constant 0 : index
    %c2_130 = arith.constant 2 : index
    %110 = vector.load %arg6[%c0_129, %c2_130] : memref<4x686xf32, #tpu.memory_space<vmem>>, vector<4x648xf32>
    %cst_131 = arith.constant dense<0.000000e+00> : vector<4x648xf32>
    %111 = tpu.matmul %109, %110, %cst_131 {dimension_numbers = #tpu.dot_dimension_numbers<[1], [0], [0], [1], [0, 0, 1, 1], [], []>} : vector<4x4xf32>, vector<4x648xf32>, vector<4x648xf32> -> vector<4x648xf32>
    %112 = arith.addf %107, %111 : vector<4x648xf32>
    %c3 = arith.constant 3 : index
    %c0_132 = arith.constant 0 : index
    %c0_133 = arith.constant 0 : index
    %113 = vector.load %arg1[%c3, %c0_132, %c0_133] : memref<9x4x4xf32, #tpu.memory_space<vmem>>, vector<1x4x4xf32>
    %114 = vector.shape_cast %113 : vector<1x4x4xf32> to vector<4x4xf32>
    %c0_134 = arith.constant 0 : index
    %c18 = arith.constant 18 : index
    %115 = vector.load %arg6[%c0_134, %c18] : memref<4x686xf32, #tpu.memory_space<vmem>>, vector<4x648xf32>
    %cst_135 = arith.constant dense<0.000000e+00> : vector<4x648xf32>
    %116 = tpu.matmul %114, %115, %cst_135 {dimension_numbers = #tpu.dot_dimension_numbers<[1], [0], [0], [1], [0, 0, 1, 1], [], []>} : vector<4x4xf32>, vector<4x648xf32>, vector<4x648xf32> -> vector<4x648xf32>
    %117 = arith.addf %112, %116 : vector<4x648xf32>
    %c4 = arith.constant 4 : index
    %c0_136 = arith.constant 0 : index
    %c0_137 = arith.constant 0 : index
    %118 = vector.load %arg1[%c4, %c0_136, %c0_137] : memref<9x4x4xf32, #tpu.memory_space<vmem>>, vector<1x4x4xf32>
    %119 = vector.shape_cast %118 : vector<1x4x4xf32> to vector<4x4xf32>
    %c0_138 = arith.constant 0 : index
    %c19_139 = arith.constant 19 : index
    %120 = vector.load %arg6[%c0_138, %c19_139] : memref<4x686xf32, #tpu.memory_space<vmem>>, vector<4x648xf32>
    %cst_140 = arith.constant dense<0.000000e+00> : vector<4x648xf32>
    %121 = tpu.matmul %119, %120, %cst_140 {dimension_numbers = #tpu.dot_dimension_numbers<[1], [0], [0], [1], [0, 0, 1, 1], [], []>} : vector<4x4xf32>, vector<4x648xf32>, vector<4x648xf32> -> vector<4x648xf32>
    %122 = arith.addf %117, %121 : vector<4x648xf32>
    %c5 = arith.constant 5 : index
    %c0_141 = arith.constant 0 : index
    %c0_142 = arith.constant 0 : index
    %123 = vector.load %arg1[%c5, %c0_141, %c0_142] : memref<9x4x4xf32, #tpu.memory_space<vmem>>, vector<1x4x4xf32>
    %124 = vector.shape_cast %123 : vector<1x4x4xf32> to vector<4x4xf32>
    %c0_143 = arith.constant 0 : index
    %c20 = arith.constant 20 : index
    %125 = vector.load %arg6[%c0_143, %c20] : memref<4x686xf32, #tpu.memory_space<vmem>>, vector<4x648xf32>
    %cst_144 = arith.constant dense<0.000000e+00> : vector<4x648xf32>
    %126 = tpu.matmul %124, %125, %cst_144 {dimension_numbers = #tpu.dot_dimension_numbers<[1], [0], [0], [1], [0, 0, 1, 1], [], []>} : vector<4x4xf32>, vector<4x648xf32>, vector<4x648xf32> -> vector<4x648xf32>
    %127 = arith.addf %122, %126 : vector<4x648xf32>
    %c6 = arith.constant 6 : index
    %c0_145 = arith.constant 0 : index
    %c0_146 = arith.constant 0 : index
    %128 = vector.load %arg1[%c6, %c0_145, %c0_146] : memref<9x4x4xf32, #tpu.memory_space<vmem>>, vector<1x4x4xf32>
    %129 = vector.shape_cast %128 : vector<1x4x4xf32> to vector<4x4xf32>
    %c0_147 = arith.constant 0 : index
    %c36 = arith.constant 36 : index
    %130 = vector.load %arg6[%c0_147, %c36] : memref<4x686xf32, #tpu.memory_space<vmem>>, vector<4x648xf32>
    %cst_148 = arith.constant dense<0.000000e+00> : vector<4x648xf32>
    %131 = tpu.matmul %129, %130, %cst_148 {dimension_numbers = #tpu.dot_dimension_numbers<[1], [0], [0], [1], [0, 0, 1, 1], [], []>} : vector<4x4xf32>, vector<4x648xf32>, vector<4x648xf32> -> vector<4x648xf32>
    %132 = arith.addf %127, %131 : vector<4x648xf32>
    %c7 = arith.constant 7 : index
    %c0_149 = arith.constant 0 : index
    %c0_150 = arith.constant 0 : index
    %133 = vector.load %arg1[%c7, %c0_149, %c0_150] : memref<9x4x4xf32, #tpu.memory_space<vmem>>, vector<1x4x4xf32>
    %134 = vector.shape_cast %133 : vector<1x4x4xf32> to vector<4x4xf32>
    %c0_151 = arith.constant 0 : index
    %c37_152 = arith.constant 37 : index
    %135 = vector.load %arg6[%c0_151, %c37_152] : memref<4x686xf32, #tpu.memory_space<vmem>>, vector<4x648xf32>
    %cst_153 = arith.constant dense<0.000000e+00> : vector<4x648xf32>
    %136 = tpu.matmul %134, %135, %cst_153 {dimension_numbers = #tpu.dot_dimension_numbers<[1], [0], [0], [1], [0, 0, 1, 1], [], []>} : vector<4x4xf32>, vector<4x648xf32>, vector<4x648xf32> -> vector<4x648xf32>
    %137 = arith.addf %132, %136 : vector<4x648xf32>
    %c8 = arith.constant 8 : index
    %c0_154 = arith.constant 0 : index
    %c0_155 = arith.constant 0 : index
    %138 = vector.load %arg1[%c8, %c0_154, %c0_155] : memref<9x4x4xf32, #tpu.memory_space<vmem>>, vector<1x4x4xf32>
    %139 = vector.shape_cast %138 : vector<1x4x4xf32> to vector<4x4xf32>
    %c0_156 = arith.constant 0 : index
    %c38 = arith.constant 38 : index
    %140 = vector.load %arg6[%c0_156, %c38] : memref<4x686xf32, #tpu.memory_space<vmem>>, vector<4x648xf32>
    %cst_157 = arith.constant dense<0.000000e+00> : vector<4x648xf32>
    %141 = tpu.matmul %139, %140, %cst_157 {dimension_numbers = #tpu.dot_dimension_numbers<[1], [0], [0], [1], [0, 0, 1, 1], [], []>} : vector<4x4xf32>, vector<4x648xf32>, vector<4x648xf32> -> vector<4x648xf32>
    %142 = arith.addf %137, %141 : vector<4x648xf32>
    %c0_158 = arith.constant 0 : index
    %c0_159 = arith.constant 0 : index
    %143 = vector.load %arg3[%c0_158, %c0_159] : memref<4x4xf32, #tpu.memory_space<vmem>>, vector<4x1xf32>
    %c0_160 = arith.constant 0 : index
    %c1_161 = arith.constant 1 : index
    %144 = vector.load %arg3[%c0_160, %c1_161] : memref<4x4xf32, #tpu.memory_space<vmem>>, vector<4x1xf32>
    %145 = vector.broadcast %0 : vector<1x648xf32> to vector<4x648xf32>
    %146 = arith.mulf %142, %145 : vector<4x648xf32>
    %cst_162 = arith.constant dense<0.000000e+00> : vector<4xf32>
    %147 = vector.multi_reduction <add>, %146, %cst_162 [1] : vector<4x648xf32> to vector<4xf32>
    %148 = vector.shape_cast %147 : vector<4xf32> to vector<4x1xf32>
    %cst_163 = arith.constant 5.120000e+02 : f32
    %149 = vector.broadcast %cst_163 : f32 to vector<4x1xf32>
    %150 = arith.divf %148, %149 : vector<4x1xf32>
    %151 = vector.broadcast %150 : vector<4x1xf32> to vector<4x648xf32>
    %152 = arith.subf %142, %151 : vector<4x648xf32>
    %153 = vector.broadcast %0 : vector<1x648xf32> to vector<4x648xf32>
    %154 = arith.mulf %152, %153 : vector<4x648xf32>
    %155 = arith.mulf %154, %154 : vector<4x648xf32>
    %cst_164 = arith.constant dense<0.000000e+00> : vector<4xf32>
    %156 = vector.multi_reduction <add>, %155, %cst_164 [1] : vector<4x648xf32> to vector<4xf32>
    %157 = vector.shape_cast %156 : vector<4xf32> to vector<4x1xf32>
    %cst_165 = arith.constant 5.120000e+02 : f32
    %158 = vector.broadcast %cst_165 : f32 to vector<4x1xf32>
    %159 = arith.divf %157, %158 : vector<4x1xf32>
    %cst_166 = arith.constant 9.99999974E-6 : f32
    %160 = vector.broadcast %cst_166 : f32 to vector<4x1xf32>
    %161 = arith.addf %159, %160 : vector<4x1xf32>
    %162 = math.rsqrt %161 : vector<4x1xf32>
    %163 = arith.mulf %143, %162 : vector<4x1xf32>
    %164 = arith.mulf %150, %163 : vector<4x1xf32>
    %165 = arith.subf %144, %164 : vector<4x1xf32>
    %166 = vector.broadcast %163 : vector<4x1xf32> to vector<4x648xf32>
    %167 = arith.mulf %142, %166 : vector<4x648xf32>
    %168 = vector.broadcast %165 : vector<4x1xf32> to vector<4x648xf32>
    %169 = arith.addf %167, %168 : vector<4x648xf32>
    %cst_167 = arith.constant 0.000000e+00 : f32
    %170 = vector.broadcast %cst_167 : f32 to vector<4x648xf32>
    %171 = arith.maximumf %169, %170 : vector<4x648xf32>
    %172 = vector.broadcast %0 : vector<1x648xf32> to vector<4x648xf32>
    %173 = arith.mulf %171, %172 : vector<4x648xf32>
    %c0_168 = arith.constant 0 : index
    %c19_169 = arith.constant 19 : index
    %174 = vector.load %arg6[%c0_168, %c19_169] : memref<4x686xf32, #tpu.memory_space<vmem>>, vector<4x648xf32>
    tpu.vector_store %arg6[%c0_168, %c19_169], %173 {strides = array<i32>} : memref<4x686xf32, #tpu.memory_space<vmem>>, vector<4x648xf32>,
    %c0_170 = arith.constant 0 : index
    %c0_171 = arith.constant 0 : index
    %c0_172 = arith.constant 0 : index
    %175 = vector.load %arg2[%c0_170, %c0_171, %c0_172] : memref<9x4x4xf32, #tpu.memory_space<vmem>>, vector<1x4x4xf32>
    %176 = vector.shape_cast %175 : vector<1x4x4xf32> to vector<4x4xf32>
    %c0_173 = arith.constant 0 : index
    %c0_174 = arith.constant 0 : index
    %177 = vector.load %arg6[%c0_173, %c0_174] : memref<4x686xf32, #tpu.memory_space<vmem>>, vector<4x648xf32>
    %cst_175 = arith.constant dense<0.000000e+00> : vector<4x648xf32>
    %178 = tpu.matmul %176, %177, %cst_175 {dimension_numbers = #tpu.dot_dimension_numbers<[1], [0], [0], [1], [0, 0, 1, 1], [], []>} : vector<4x4xf32>, vector<4x648xf32>, vector<4x648xf32> -> vector<4x648xf32>
    %c1_176 = arith.constant 1 : index
    %c0_177 = arith.constant 0 : index
    %c0_178 = arith.constant 0 : index
    %179 = vector.load %arg2[%c1_176, %c0_177, %c0_178] : memref<9x4x4xf32, #tpu.memory_space<vmem>>, vector<1x4x4xf32>
    %180 = vector.shape_cast %179 : vector<1x4x4xf32> to vector<4x4xf32>
    %c0_179 = arith.constant 0 : index
    %c1_180 = arith.constant 1 : index
    %181 = vector.load %arg6[%c0_179, %c1_180] : memref<4x686xf32, #tpu.memory_space<vmem>>, vector<4x648xf32>
    %cst_181 = arith.constant dense<0.000000e+00> : vector<4x648xf32>
    %182 = tpu.matmul %180, %181, %cst_181 {dimension_numbers = #tpu.dot_dimension_numbers<[1], [0], [0], [1], [0, 0, 1, 1], [], []>} : vector<4x4xf32>, vector<4x648xf32>, vector<4x648xf32> -> vector<4x648xf32>
    %183 = arith.addf %178, %182 : vector<4x648xf32>
    %c2_182 = arith.constant 2 : index
    %c0_183 = arith.constant 0 : index
    %c0_184 = arith.constant 0 : index
    %184 = vector.load %arg2[%c2_182, %c0_183, %c0_184] : memref<9x4x4xf32, #tpu.memory_space<vmem>>, vector<1x4x4xf32>
    %185 = vector.shape_cast %184 : vector<1x4x4xf32> to vector<4x4xf32>
    %c0_185 = arith.constant 0 : index
    %c2_186 = arith.constant 2 : index
    %186 = vector.load %arg6[%c0_185, %c2_186] : memref<4x686xf32, #tpu.memory_space<vmem>>, vector<4x648xf32>
    %cst_187 = arith.constant dense<0.000000e+00> : vector<4x648xf32>
    %187 = tpu.matmul %185, %186, %cst_187 {dimension_numbers = #tpu.dot_dimension_numbers<[1], [0], [0], [1], [0, 0, 1, 1], [], []>} : vector<4x4xf32>, vector<4x648xf32>, vector<4x648xf32> -> vector<4x648xf32>
    %188 = arith.addf %183, %187 : vector<4x648xf32>
    %c3_188 = arith.constant 3 : index
    %c0_189 = arith.constant 0 : index
    %c0_190 = arith.constant 0 : index
    %189 = vector.load %arg2[%c3_188, %c0_189, %c0_190] : memref<9x4x4xf32, #tpu.memory_space<vmem>>, vector<1x4x4xf32>
    %190 = vector.shape_cast %189 : vector<1x4x4xf32> to vector<4x4xf32>
    %c0_191 = arith.constant 0 : index
    %c18_192 = arith.constant 18 : index
    %191 = vector.load %arg6[%c0_191, %c18_192] : memref<4x686xf32, #tpu.memory_space<vmem>>, vector<4x648xf32>
    %cst_193 = arith.constant dense<0.000000e+00> : vector<4x648xf32>
    %192 = tpu.matmul %190, %191, %cst_193 {dimension_numbers = #tpu.dot_dimension_numbers<[1], [0], [0], [1], [0, 0, 1, 1], [], []>} : vector<4x4xf32>, vector<4x648xf32>, vector<4x648xf32> -> vector<4x648xf32>
    %193 = arith.addf %188, %192 : vector<4x648xf32>
    %c4_194 = arith.constant 4 : index
    %c0_195 = arith.constant 0 : index
    %c0_196 = arith.constant 0 : index
    %194 = vector.load %arg2[%c4_194, %c0_195, %c0_196] : memref<9x4x4xf32, #tpu.memory_space<vmem>>, vector<1x4x4xf32>
    %195 = vector.shape_cast %194 : vector<1x4x4xf32> to vector<4x4xf32>
    %c0_197 = arith.constant 0 : index
    %c19_198 = arith.constant 19 : index
    %196 = vector.load %arg6[%c0_197, %c19_198] : memref<4x686xf32, #tpu.memory_space<vmem>>, vector<4x648xf32>
    %cst_199 = arith.constant dense<0.000000e+00> : vector<4x648xf32>
    %197 = tpu.matmul %195, %196, %cst_199 {dimension_numbers = #tpu.dot_dimension_numbers<[1], [0], [0], [1], [0, 0, 1, 1], [], []>} : vector<4x4xf32>, vector<4x648xf32>, vector<4x648xf32> -> vector<4x648xf32>
    %198 = arith.addf %193, %197 : vector<4x648xf32>
    %c5_200 = arith.constant 5 : index
    %c0_201 = arith.constant 0 : index
    %c0_202 = arith.constant 0 : index
    %199 = vector.load %arg2[%c5_200, %c0_201, %c0_202] : memref<9x4x4xf32, #tpu.memory_space<vmem>>, vector<1x4x4xf32>
    %200 = vector.shape_cast %199 : vector<1x4x4xf32> to vector<4x4xf32>
    %c0_203 = arith.constant 0 : index
    %c20_204 = arith.constant 20 : index
    %201 = vector.load %arg6[%c0_203, %c20_204] : memref<4x686xf32, #tpu.memory_space<vmem>>, vector<4x648xf32>
    %cst_205 = arith.constant dense<0.000000e+00> : vector<4x648xf32>
    %202 = tpu.matmul %200, %201, %cst_205 {dimension_numbers = #tpu.dot_dimension_numbers<[1], [0], [0], [1], [0, 0, 1, 1], [], []>} : vector<4x4xf32>, vector<4x648xf32>, vector<4x648xf32> -> vector<4x648xf32>
    %203 = arith.addf %198, %202 : vector<4x648xf32>
    %c6_206 = arith.constant 6 : index
    %c0_207 = arith.constant 0 : index
    %c0_208 = arith.constant 0 : index
    %204 = vector.load %arg2[%c6_206, %c0_207, %c0_208] : memref<9x4x4xf32, #tpu.memory_space<vmem>>, vector<1x4x4xf32>
    %205 = vector.shape_cast %204 : vector<1x4x4xf32> to vector<4x4xf32>
    %c0_209 = arith.constant 0 : index
    %c36_210 = arith.constant 36 : index
    %206 = vector.load %arg6[%c0_209, %c36_210] : memref<4x686xf32, #tpu.memory_space<vmem>>, vector<4x648xf32>
    %cst_211 = arith.constant dense<0.000000e+00> : vector<4x648xf32>
    %207 = tpu.matmul %205, %206, %cst_211 {dimension_numbers = #tpu.dot_dimension_numbers<[1], [0], [0], [1], [0, 0, 1, 1], [], []>} : vector<4x4xf32>, vector<4x648xf32>, vector<4x648xf32> -> vector<4x648xf32>
    %208 = arith.addf %203, %207 : vector<4x648xf32>
    %c7_212 = arith.constant 7 : index
    %c0_213 = arith.constant 0 : index
    %c0_214 = arith.constant 0 : index
    %209 = vector.load %arg2[%c7_212, %c0_213, %c0_214] : memref<9x4x4xf32, #tpu.memory_space<vmem>>, vector<1x4x4xf32>
    %210 = vector.shape_cast %209 : vector<1x4x4xf32> to vector<4x4xf32>
    %c0_215 = arith.constant 0 : index
    %c37_216 = arith.constant 37 : index
    %211 = vector.load %arg6[%c0_215, %c37_216] : memref<4x686xf32, #tpu.memory_space<vmem>>, vector<4x648xf32>
    %cst_217 = arith.constant dense<0.000000e+00> : vector<4x648xf32>
    %212 = tpu.matmul %210, %211, %cst_217 {dimension_numbers = #tpu.dot_dimension_numbers<[1], [0], [0], [1], [0, 0, 1, 1], [], []>} : vector<4x4xf32>, vector<4x648xf32>, vector<4x648xf32> -> vector<4x648xf32>
    %213 = arith.addf %208, %212 : vector<4x648xf32>
    %c8_218 = arith.constant 8 : index
    %c0_219 = arith.constant 0 : index
    %c0_220 = arith.constant 0 : index
    %214 = vector.load %arg2[%c8_218, %c0_219, %c0_220] : memref<9x4x4xf32, #tpu.memory_space<vmem>>, vector<1x4x4xf32>
    %215 = vector.shape_cast %214 : vector<1x4x4xf32> to vector<4x4xf32>
    %c0_221 = arith.constant 0 : index
    %c38_222 = arith.constant 38 : index
    %216 = vector.load %arg6[%c0_221, %c38_222] : memref<4x686xf32, #tpu.memory_space<vmem>>, vector<4x648xf32>
    %cst_223 = arith.constant dense<0.000000e+00> : vector<4x648xf32>
    %217 = tpu.matmul %215, %216, %cst_223 {dimension_numbers = #tpu.dot_dimension_numbers<[1], [0], [0], [1], [0, 0, 1, 1], [], []>} : vector<4x4xf32>, vector<4x648xf32>, vector<4x648xf32> -> vector<4x648xf32>
    %218 = arith.addf %213, %217 : vector<4x648xf32>
    %c0_224 = arith.constant 0 : index
    %c2_225 = arith.constant 2 : index
    %219 = vector.load %arg3[%c0_224, %c2_225] : memref<4x4xf32, #tpu.memory_space<vmem>>, vector<4x1xf32>
    %c0_226 = arith.constant 0 : index
    %c3_227 = arith.constant 3 : index
    %220 = vector.load %arg3[%c0_226, %c3_227] : memref<4x4xf32, #tpu.memory_space<vmem>>, vector<4x1xf32>
    %221 = vector.broadcast %0 : vector<1x648xf32> to vector<4x648xf32>
    %222 = arith.mulf %218, %221 : vector<4x648xf32>
    %cst_228 = arith.constant dense<0.000000e+00> : vector<4xf32>
    %223 = vector.multi_reduction <add>, %222, %cst_228 [1] : vector<4x648xf32> to vector<4xf32>
    %224 = vector.shape_cast %223 : vector<4xf32> to vector<4x1xf32>
    %cst_229 = arith.constant 5.120000e+02 : f32
    %225 = vector.broadcast %cst_229 : f32 to vector<4x1xf32>
    %226 = arith.divf %224, %225 : vector<4x1xf32>
    %227 = vector.broadcast %226 : vector<4x1xf32> to vector<4x648xf32>
    %228 = arith.subf %218, %227 : vector<4x648xf32>
    %229 = vector.broadcast %0 : vector<1x648xf32> to vector<4x648xf32>
    %230 = arith.mulf %228, %229 : vector<4x648xf32>
    %231 = arith.mulf %230, %230 : vector<4x648xf32>
    %cst_230 = arith.constant dense<0.000000e+00> : vector<4xf32>
    %232 = vector.multi_reduction <add>, %231, %cst_230 [1] : vector<4x648xf32> to vector<4xf32>
    %233 = vector.shape_cast %232 : vector<4xf32> to vector<4x1xf32>
    %cst_231 = arith.constant 5.120000e+02 : f32
    %234 = vector.broadcast %cst_231 : f32 to vector<4x1xf32>
    %235 = arith.divf %233, %234 : vector<4x1xf32>
    %cst_232 = arith.constant 9.99999974E-6 : f32
    %236 = vector.broadcast %cst_232 : f32 to vector<4x1xf32>
    %237 = arith.addf %235, %236 : vector<4x1xf32>
    %238 = math.rsqrt %237 : vector<4x1xf32>
    %239 = arith.mulf %219, %238 : vector<4x1xf32>
    %240 = arith.mulf %226, %239 : vector<4x1xf32>
    %241 = arith.subf %220, %240 : vector<4x1xf32>
    %242 = vector.broadcast %239 : vector<4x1xf32> to vector<4x648xf32>
    %243 = arith.mulf %218, %242 : vector<4x648xf32>
    %244 = vector.broadcast %241 : vector<4x1xf32> to vector<4x648xf32>
    %245 = arith.addf %243, %244 : vector<4x648xf32>
    %c0_233 = arith.constant 0 : index
    %c0_234 = arith.constant 0 : index
    %c0_235 = arith.constant 0 : index
    %246 = vector.load %arg0[%c0_233, %c0_234, %c0_235] : memref<2x4x256xf32, #tpu.memory_space<vmem>>, vector<1x4x16xf32>
    %247 = vector.shape_cast %246 : vector<1x4x16xf32> to vector<4x16xf32>
    %248 = vector.extract_strided_slice %245 {offsets = [0, 0], sizes = [4, 16], strides = [1, 1]} : vector<4x648xf32> to vector<4x16xf32>
    %249 = arith.addf %247, %248 : vector<4x16xf32>
    %c0_236 = arith.constant 0 : index
    %c0_237 = arith.constant 0 : index
    %c0_238 = arith.constant 0 : index
    %250 = vector.load %arg5[%c0_236, %c0_237, %c0_238] : memref<2x4x256xf32, #tpu.memory_space<vmem>>, vector<1x4x16xf32>
    %251 = vector.shape_cast %250 : vector<1x4x16xf32> to vector<4x16xf32>
    %252 = vector.shape_cast %249 : vector<4x16xf32> to vector<1x4x16xf32>
    tpu.vector_store %arg5[%c0_236, %c0_237, %c0_238], %252 {strides = array<i32>} : memref<2x4x256xf32, #tpu.memory_space<vmem>>, vector<1x4x16xf32>,
    %c0_239 = arith.constant 0 : index
    %c0_240 = arith.constant 0 : index
    %c16_241 = arith.constant 16 : index
    %253 = vector.load %arg0[%c0_239, %c0_240, %c16_241] : memref<2x4x256xf32, #tpu.memory_space<vmem>>, vector<1x4x16xf32>
    %254 = vector.shape_cast %253 : vector<1x4x16xf32> to vector<4x16xf32>
    %255 = vector.extract_strided_slice %245 {offsets = [0, 18], sizes = [4, 16], strides = [1, 1]} : vector<4x648xf32> to vector<4x16xf32>
    %256 = arith.addf %254, %255 : vector<4x16xf32>
    %c0_242 = arith.constant 0 : index
    %c0_243 = arith.constant 0 : index
    %c16_244 = arith.constant 16 : index
    %257 = vector.load %arg5[%c0_242, %c0_243, %c16_244] : memref<2x4x256xf32, #tpu.memory_space<vmem>>, vector<1x4x16xf32>
    %258 = vector.shape_cast %257 : vector<1x4x16xf32> to vector<4x16xf32>
    %259 = vector.shape_cast %256 : vector<4x16xf32> to vector<1x4x16xf32>
    tpu.vector_store %arg5[%c0_242, %c0_243, %c16_244], %259 {strides = array<i32>} : memref<2x4x256xf32, #tpu.memory_space<vmem>>, vector<1x4x16xf32>,
    %c0_245 = arith.constant 0 : index
    %c0_246 = arith.constant 0 : index
    %c32_247 = arith.constant 32 : index
    %260 = vector.load %arg0[%c0_245, %c0_246, %c32_247] : memref<2x4x256xf32, #tpu.memory_space<vmem>>, vector<1x4x16xf32>
    %261 = vector.shape_cast %260 : vector<1x4x16xf32> to vector<4x16xf32>
    %262 = vector.extract_strided_slice %245 {offsets = [0, 36], sizes = [4, 16], strides = [1, 1]} : vector<4x648xf32> to vector<4x16xf32>
    %263 = arith.addf %261, %262 : vector<4x16xf32>
    %c0_248 = arith.constant 0 : index
    %c0_249 = arith.constant 0 : index
    %c32_250 = arith.constant 32 : index
    %264 = vector.load %arg5[%c0_248, %c0_249, %c32_250] : memref<2x4x256xf32, #tpu.memory_space<vmem>>, vector<1x4x16xf32>
    %265 = vector.shape_cast %264 : vector<1x4x16xf32> to vector<4x16xf32>
    %266 = vector.shape_cast %263 : vector<4x16xf32> to vector<1x4x16xf32>
    tpu.vector_store %arg5[%c0_248, %c0_249, %c32_250], %266 {strides = array<i32>} : memref<2x4x256xf32, #tpu.memory_space<vmem>>, vector<1x4x16xf32>,
    %c0_251 = arith.constant 0 : index
    %c0_252 = arith.constant 0 : index
    %c48_253 = arith.constant 48 : index
    %267 = vector.load %arg0[%c0_251, %c0_252, %c48_253] : memref<2x4x256xf32, #tpu.memory_space<vmem>>, vector<1x4x16xf32>
    %268 = vector.shape_cast %267 : vector<1x4x16xf32> to vector<4x16xf32>
    %269 = vector.extract_strided_slice %245 {offsets = [0, 54], sizes = [4, 16], strides = [1, 1]} : vector<4x648xf32> to vector<4x16xf32>
    %270 = arith.addf %268, %269 : vector<4x16xf32>
    %c0_254 = arith.constant 0 : index
    %c0_255 = arith.constant 0 : index
    %c48_256 = arith.constant 48 : index
    %271 = vector.load %arg5[%c0_254, %c0_255, %c48_256] : memref<2x4x256xf32, #tpu.memory_space<vmem>>, vector<1x4x16xf32>
    %272 = vector.shape_cast %271 : vector<1x4x16xf32> to vector<4x16xf32>
    %273 = vector.shape_cast %270 : vector<4x16xf32> to vector<1x4x16xf32>
    tpu.vector_store %arg5[%c0_254, %c0_255, %c48_256], %273 {strides = array<i32>} : memref<2x4x256xf32, #tpu.memory_space<vmem>>, vector<1x4x16xf32>,
    %c0_257 = arith.constant 0 : index
    %c0_258 = arith.constant 0 : index
    %c64_259 = arith.constant 64 : index
    %274 = vector.load %arg0[%c0_257, %c0_258, %c64_259] : memref<2x4x256xf32, #tpu.memory_space<vmem>>, vector<1x4x16xf32>
    %275 = vector.shape_cast %274 : vector<1x4x16xf32> to vector<4x16xf32>
    %276 = vector.extract_strided_slice %245 {offsets = [0, 72], sizes = [4, 16], strides = [1, 1]} : vector<4x648xf32> to vector<4x16xf32>
    %277 = arith.addf %275, %276 : vector<4x16xf32>
    %c0_260 = arith.constant 0 : index
    %c0_261 = arith.constant 0 : index
    %c64_262 = arith.constant 64 : index
    %278 = vector.load %arg5[%c0_260, %c0_261, %c64_262] : memref<2x4x256xf32, #tpu.memory_space<vmem>>, vector<1x4x16xf32>
    %279 = vector.shape_cast %278 : vector<1x4x16xf32> to vector<4x16xf32>
    %280 = vector.shape_cast %277 : vector<4x16xf32> to vector<1x4x16xf32>
    tpu.vector_store %arg5[%c0_260, %c0_261, %c64_262], %280 {strides = array<i32>} : memref<2x4x256xf32, #tpu.memory_space<vmem>>, vector<1x4x16xf32>,
    %c0_263 = arith.constant 0 : index
    %c0_264 = arith.constant 0 : index
    %c80_265 = arith.constant 80 : index
    %281 = vector.load %arg0[%c0_263, %c0_264, %c80_265] : memref<2x4x256xf32, #tpu.memory_space<vmem>>, vector<1x4x16xf32>
    %282 = vector.shape_cast %281 : vector<1x4x16xf32> to vector<4x16xf32>
    %283 = vector.extract_strided_slice %245 {offsets = [0, 90], sizes = [4, 16], strides = [1, 1]} : vector<4x648xf32> to vector<4x16xf32>
    %284 = arith.addf %282, %283 : vector<4x16xf32>
    %c0_266 = arith.constant 0 : index
    %c0_267 = arith.constant 0 : index
    %c80_268 = arith.constant 80 : index
    %285 = vector.load %arg5[%c0_266, %c0_267, %c80_268] : memref<2x4x256xf32, #tpu.memory_space<vmem>>, vector<1x4x16xf32>
    %286 = vector.shape_cast %285 : vector<1x4x16xf32> to vector<4x16xf32>
    %287 = vector.shape_cast %284 : vector<4x16xf32> to vector<1x4x16xf32>
    tpu.vector_store %arg5[%c0_266, %c0_267, %c80_268], %287 {strides = array<i32>} : memref<2x4x256xf32, #tpu.memory_space<vmem>>, vector<1x4x16xf32>,
    %c0_269 = arith.constant 0 : index
    %c0_270 = arith.constant 0 : index
    %c96_271 = arith.constant 96 : index
    %288 = vector.load %arg0[%c0_269, %c0_270, %c96_271] : memref<2x4x256xf32, #tpu.memory_space<vmem>>, vector<1x4x16xf32>
    %289 = vector.shape_cast %288 : vector<1x4x16xf32> to vector<4x16xf32>
    %290 = vector.extract_strided_slice %245 {offsets = [0, 108], sizes = [4, 16], strides = [1, 1]} : vector<4x648xf32> to vector<4x16xf32>
    %291 = arith.addf %289, %290 : vector<4x16xf32>
    %c0_272 = arith.constant 0 : index
    %c0_273 = arith.constant 0 : index
    %c96_274 = arith.constant 96 : index
    %292 = vector.load %arg5[%c0_272, %c0_273, %c96_274] : memref<2x4x256xf32, #tpu.memory_space<vmem>>, vector<1x4x16xf32>
    %293 = vector.shape_cast %292 : vector<1x4x16xf32> to vector<4x16xf32>
    %294 = vector.shape_cast %291 : vector<4x16xf32> to vector<1x4x16xf32>
    tpu.vector_store %arg5[%c0_272, %c0_273, %c96_274], %294 {strides = array<i32>} : memref<2x4x256xf32, #tpu.memory_space<vmem>>, vector<1x4x16xf32>,
    %c0_275 = arith.constant 0 : index
    %c0_276 = arith.constant 0 : index
    %c112_277 = arith.constant 112 : index
    %295 = vector.load %arg0[%c0_275, %c0_276, %c112_277] : memref<2x4x256xf32, #tpu.memory_space<vmem>>, vector<1x4x16xf32>
    %296 = vector.shape_cast %295 : vector<1x4x16xf32> to vector<4x16xf32>
    %297 = vector.extract_strided_slice %245 {offsets = [0, 126], sizes = [4, 16], strides = [1, 1]} : vector<4x648xf32> to vector<4x16xf32>
    %298 = arith.addf %296, %297 : vector<4x16xf32>
    %c0_278 = arith.constant 0 : index
    %c0_279 = arith.constant 0 : index
    %c112_280 = arith.constant 112 : index
    %299 = vector.load %arg5[%c0_278, %c0_279, %c112_280] : memref<2x4x256xf32, #tpu.memory_space<vmem>>, vector<1x4x16xf32>
    %300 = vector.shape_cast %299 : vector<1x4x16xf32> to vector<4x16xf32>
    %301 = vector.shape_cast %298 : vector<4x16xf32> to vector<1x4x16xf32>
    tpu.vector_store %arg5[%c0_278, %c0_279, %c112_280], %301 {strides = array<i32>} : memref<2x4x256xf32, #tpu.memory_space<vmem>>, vector<1x4x16xf32>,
    %c0_281 = arith.constant 0 : index
    %c0_282 = arith.constant 0 : index
    %c128_283 = arith.constant 128 : index
    %302 = vector.load %arg0[%c0_281, %c0_282, %c128_283] : memref<2x4x256xf32, #tpu.memory_space<vmem>>, vector<1x4x16xf32>
    %303 = vector.shape_cast %302 : vector<1x4x16xf32> to vector<4x16xf32>
    %304 = vector.extract_strided_slice %245 {offsets = [0, 144], sizes = [4, 16], strides = [1, 1]} : vector<4x648xf32> to vector<4x16xf32>
    %305 = arith.addf %303, %304 : vector<4x16xf32>
    %c0_284 = arith.constant 0 : index
    %c0_285 = arith.constant 0 : index
    %c128_286 = arith.constant 128 : index
    %306 = vector.load %arg5[%c0_284, %c0_285, %c128_286] : memref<2x4x256xf32, #tpu.memory_space<vmem>>, vector<1x4x16xf32>
    %307 = vector.shape_cast %306 : vector<1x4x16xf32> to vector<4x16xf32>
    %308 = vector.shape_cast %305 : vector<4x16xf32> to vector<1x4x16xf32>
    tpu.vector_store %arg5[%c0_284, %c0_285, %c128_286], %308 {strides = array<i32>} : memref<2x4x256xf32, #tpu.memory_space<vmem>>, vector<1x4x16xf32>,
    %c0_287 = arith.constant 0 : index
    %c0_288 = arith.constant 0 : index
    %c144_289 = arith.constant 144 : index
    %309 = vector.load %arg0[%c0_287, %c0_288, %c144_289] : memref<2x4x256xf32, #tpu.memory_space<vmem>>, vector<1x4x16xf32>
    %310 = vector.shape_cast %309 : vector<1x4x16xf32> to vector<4x16xf32>
    %311 = vector.extract_strided_slice %245 {offsets = [0, 162], sizes = [4, 16], strides = [1, 1]} : vector<4x648xf32> to vector<4x16xf32>
    %312 = arith.addf %310, %311 : vector<4x16xf32>
    %c0_290 = arith.constant 0 : index
    %c0_291 = arith.constant 0 : index
    %c144_292 = arith.constant 144 : index
    %313 = vector.load %arg5[%c0_290, %c0_291, %c144_292] : memref<2x4x256xf32, #tpu.memory_space<vmem>>, vector<1x4x16xf32>
    %314 = vector.shape_cast %313 : vector<1x4x16xf32> to vector<4x16xf32>
    %315 = vector.shape_cast %312 : vector<4x16xf32> to vector<1x4x16xf32>
    tpu.vector_store %arg5[%c0_290, %c0_291, %c144_292], %315 {strides = array<i32>} : memref<2x4x256xf32, #tpu.memory_space<vmem>>, vector<1x4x16xf32>,
    %c0_293 = arith.constant 0 : index
    %c0_294 = arith.constant 0 : index
    %c160_295 = arith.constant 160 : index
    %316 = vector.load %arg0[%c0_293, %c0_294, %c160_295] : memref<2x4x256xf32, #tpu.memory_space<vmem>>, vector<1x4x16xf32>
    %317 = vector.shape_cast %316 : vector<1x4x16xf32> to vector<4x16xf32>
    %318 = vector.extract_strided_slice %245 {offsets = [0, 180], sizes = [4, 16], strides = [1, 1]} : vector<4x648xf32> to vector<4x16xf32>
    %319 = arith.addf %317, %318 : vector<4x16xf32>
    %c0_296 = arith.constant 0 : index
    %c0_297 = arith.constant 0 : index
    %c160_298 = arith.constant 160 : index
    %320 = vector.load %arg5[%c0_296, %c0_297, %c160_298] : memref<2x4x256xf32, #tpu.memory_space<vmem>>, vector<1x4x16xf32>
    %321 = vector.shape_cast %320 : vector<1x4x16xf32> to vector<4x16xf32>
    %322 = vector.shape_cast %319 : vector<4x16xf32> to vector<1x4x16xf32>
    tpu.vector_store %arg5[%c0_296, %c0_297, %c160_298], %322 {strides = array<i32>} : memref<2x4x256xf32, #tpu.memory_space<vmem>>, vector<1x4x16xf32>,
    %c0_299 = arith.constant 0 : index
    %c0_300 = arith.constant 0 : index
    %c176_301 = arith.constant 176 : index
    %323 = vector.load %arg0[%c0_299, %c0_300, %c176_301] : memref<2x4x256xf32, #tpu.memory_space<vmem>>, vector<1x4x16xf32>
    %324 = vector.shape_cast %323 : vector<1x4x16xf32> to vector<4x16xf32>
    %325 = vector.extract_strided_slice %245 {offsets = [0, 198], sizes = [4, 16], strides = [1, 1]} : vector<4x648xf32> to vector<4x16xf32>
    %326 = arith.addf %324, %325 : vector<4x16xf32>
    %c0_302 = arith.constant 0 : index
    %c0_303 = arith.constant 0 : index
    %c176_304 = arith.constant 176 : index
    %327 = vector.load %arg5[%c0_302, %c0_303, %c176_304] : memref<2x4x256xf32, #tpu.memory_space<vmem>>, vector<1x4x16xf32>
    %328 = vector.shape_cast %327 : vector<1x4x16xf32> to vector<4x16xf32>
    %329 = vector.shape_cast %326 : vector<4x16xf32> to vector<1x4x16xf32>
    tpu.vector_store %arg5[%c0_302, %c0_303, %c176_304], %329 {strides = array<i32>} : memref<2x4x256xf32, #tpu.memory_space<vmem>>, vector<1x4x16xf32>,
    %c0_305 = arith.constant 0 : index
    %c0_306 = arith.constant 0 : index
    %c192_307 = arith.constant 192 : index
    %330 = vector.load %arg0[%c0_305, %c0_306, %c192_307] : memref<2x4x256xf32, #tpu.memory_space<vmem>>, vector<1x4x16xf32>
    %331 = vector.shape_cast %330 : vector<1x4x16xf32> to vector<4x16xf32>
    %332 = vector.extract_strided_slice %245 {offsets = [0, 216], sizes = [4, 16], strides = [1, 1]} : vector<4x648xf32> to vector<4x16xf32>
    %333 = arith.addf %331, %332 : vector<4x16xf32>
    %c0_308 = arith.constant 0 : index
    %c0_309 = arith.constant 0 : index
    %c192_310 = arith.constant 192 : index
    %334 = vector.load %arg5[%c0_308, %c0_309, %c192_310] : memref<2x4x256xf32, #tpu.memory_space<vmem>>, vector<1x4x16xf32>
    %335 = vector.shape_cast %334 : vector<1x4x16xf32> to vector<4x16xf32>
    %336 = vector.shape_cast %333 : vector<4x16xf32> to vector<1x4x16xf32>
    tpu.vector_store %arg5[%c0_308, %c0_309, %c192_310], %336 {strides = array<i32>} : memref<2x4x256xf32, #tpu.memory_space<vmem>>, vector<1x4x16xf32>,
    %c0_311 = arith.constant 0 : index
    %c0_312 = arith.constant 0 : index
    %c208_313 = arith.constant 208 : index
    %337 = vector.load %arg0[%c0_311, %c0_312, %c208_313] : memref<2x4x256xf32, #tpu.memory_space<vmem>>, vector<1x4x16xf32>
    %338 = vector.shape_cast %337 : vector<1x4x16xf32> to vector<4x16xf32>
    %339 = vector.extract_strided_slice %245 {offsets = [0, 234], sizes = [4, 16], strides = [1, 1]} : vector<4x648xf32> to vector<4x16xf32>
    %340 = arith.addf %338, %339 : vector<4x16xf32>
    %c0_314 = arith.constant 0 : index
    %c0_315 = arith.constant 0 : index
    %c208_316 = arith.constant 208 : index
    %341 = vector.load %arg5[%c0_314, %c0_315, %c208_316] : memref<2x4x256xf32, #tpu.memory_space<vmem>>, vector<1x4x16xf32>
    %342 = vector.shape_cast %341 : vector<1x4x16xf32> to vector<4x16xf32>
    %343 = vector.shape_cast %340 : vector<4x16xf32> to vector<1x4x16xf32>
    tpu.vector_store %arg5[%c0_314, %c0_315, %c208_316], %343 {strides = array<i32>} : memref<2x4x256xf32, #tpu.memory_space<vmem>>, vector<1x4x16xf32>,
    %c0_317 = arith.constant 0 : index
    %c0_318 = arith.constant 0 : index
    %c224_319 = arith.constant 224 : index
    %344 = vector.load %arg0[%c0_317, %c0_318, %c224_319] : memref<2x4x256xf32, #tpu.memory_space<vmem>>, vector<1x4x16xf32>
    %345 = vector.shape_cast %344 : vector<1x4x16xf32> to vector<4x16xf32>
    %346 = vector.extract_strided_slice %245 {offsets = [0, 252], sizes = [4, 16], strides = [1, 1]} : vector<4x648xf32> to vector<4x16xf32>
    %347 = arith.addf %345, %346 : vector<4x16xf32>
    %c0_320 = arith.constant 0 : index
    %c0_321 = arith.constant 0 : index
    %c224_322 = arith.constant 224 : index
    %348 = vector.load %arg5[%c0_320, %c0_321, %c224_322] : memref<2x4x256xf32, #tpu.memory_space<vmem>>, vector<1x4x16xf32>
    %349 = vector.shape_cast %348 : vector<1x4x16xf32> to vector<4x16xf32>
    %350 = vector.shape_cast %347 : vector<4x16xf32> to vector<1x4x16xf32>
    tpu.vector_store %arg5[%c0_320, %c0_321, %c224_322], %350 {strides = array<i32>} : memref<2x4x256xf32, #tpu.memory_space<vmem>>, vector<1x4x16xf32>,
    %c0_323 = arith.constant 0 : index
    %c0_324 = arith.constant 0 : index
    %c240_325 = arith.constant 240 : index
    %351 = vector.load %arg0[%c0_323, %c0_324, %c240_325] : memref<2x4x256xf32, #tpu.memory_space<vmem>>, vector<1x4x16xf32>
    %352 = vector.shape_cast %351 : vector<1x4x16xf32> to vector<4x16xf32>
    %353 = vector.extract_strided_slice %245 {offsets = [0, 270], sizes = [4, 16], strides = [1, 1]} : vector<4x648xf32> to vector<4x16xf32>
    %354 = arith.addf %352, %353 : vector<4x16xf32>
    %c0_326 = arith.constant 0 : index
    %c0_327 = arith.constant 0 : index
    %c240_328 = arith.constant 240 : index
    %355 = vector.load %arg5[%c0_326, %c0_327, %c240_328] : memref<2x4x256xf32, #tpu.memory_space<vmem>>, vector<1x4x16xf32>
    %356 = vector.shape_cast %355 : vector<1x4x16xf32> to vector<4x16xf32>
    %357 = vector.shape_cast %354 : vector<4x16xf32> to vector<1x4x16xf32>
    tpu.vector_store %arg5[%c0_326, %c0_327, %c240_328], %357 {strides = array<i32>} : memref<2x4x256xf32, #tpu.memory_space<vmem>>, vector<1x4x16xf32>,
    %c1_329 = arith.constant 1 : index
    %c0_330 = arith.constant 0 : index
    %c0_331 = arith.constant 0 : index
    %358 = vector.load %arg0[%c1_329, %c0_330, %c0_331] : memref<2x4x256xf32, #tpu.memory_space<vmem>>, vector<1x4x16xf32>
    %359 = vector.shape_cast %358 : vector<1x4x16xf32> to vector<4x16xf32>
    %360 = vector.extract_strided_slice %245 {offsets = [0, 324], sizes = [4, 16], strides = [1, 1]} : vector<4x648xf32> to vector<4x16xf32>
    %361 = arith.addf %359, %360 : vector<4x16xf32>
    %c1_332 = arith.constant 1 : index
    %c0_333 = arith.constant 0 : index
    %c0_334 = arith.constant 0 : index
    %362 = vector.load %arg5[%c1_332, %c0_333, %c0_334] : memref<2x4x256xf32, #tpu.memory_space<vmem>>, vector<1x4x16xf32>
    %363 = vector.shape_cast %362 : vector<1x4x16xf32> to vector<4x16xf32>
    %364 = vector.shape_cast %361 : vector<4x16xf32> to vector<1x4x16xf32>
    tpu.vector_store %arg5[%c1_332, %c0_333, %c0_334], %364 {strides = array<i32>} : memref<2x4x256xf32, #tpu.memory_space<vmem>>, vector<1x4x16xf32>,
    %c1_335 = arith.constant 1 : index
    %c0_336 = arith.constant 0 : index
    %c16_337 = arith.constant 16 : index
    %365 = vector.load %arg0[%c1_335, %c0_336, %c16_337] : memref<2x4x256xf32, #tpu.memory_space<vmem>>, vector<1x4x16xf32>
    %366 = vector.shape_cast %365 : vector<1x4x16xf32> to vector<4x16xf32>
    %367 = vector.extract_strided_slice %245 {offsets = [0, 342], sizes = [4, 16], strides = [1, 1]} : vector<4x648xf32> to vector<4x16xf32>
    %368 = arith.addf %366, %367 : vector<4x16xf32>
    %c1_338 = arith.constant 1 : index
    %c0_339 = arith.constant 0 : index
    %c16_340 = arith.constant 16 : index
    %369 = vector.load %arg5[%c1_338, %c0_339, %c16_340] : memref<2x4x256xf32, #tpu.memory_space<vmem>>, vector<1x4x16xf32>
    %370 = vector.shape_cast %369 : vector<1x4x16xf32> to vector<4x16xf32>
    %371 = vector.shape_cast %368 : vector<4x16xf32> to vector<1x4x16xf32>
    tpu.vector_store %arg5[%c1_338, %c0_339, %c16_340], %371 {strides = array<i32>} : memref<2x4x256xf32, #tpu.memory_space<vmem>>, vector<1x4x16xf32>,
    %c1_341 = arith.constant 1 : index
    %c0_342 = arith.constant 0 : index
    %c32_343 = arith.constant 32 : index
    %372 = vector.load %arg0[%c1_341, %c0_342, %c32_343] : memref<2x4x256xf32, #tpu.memory_space<vmem>>, vector<1x4x16xf32>
    %373 = vector.shape_cast %372 : vector<1x4x16xf32> to vector<4x16xf32>
    %374 = vector.extract_strided_slice %245 {offsets = [0, 360], sizes = [4, 16], strides = [1, 1]} : vector<4x648xf32> to vector<4x16xf32>
    %375 = arith.addf %373, %374 : vector<4x16xf32>
    %c1_344 = arith.constant 1 : index
    %c0_345 = arith.constant 0 : index
    %c32_346 = arith.constant 32 : index
    %376 = vector.load %arg5[%c1_344, %c0_345, %c32_346] : memref<2x4x256xf32, #tpu.memory_space<vmem>>, vector<1x4x16xf32>
    %377 = vector.shape_cast %376 : vector<1x4x16xf32> to vector<4x16xf32>
    %378 = vector.shape_cast %375 : vector<4x16xf32> to vector<1x4x16xf32>
    tpu.vector_store %arg5[%c1_344, %c0_345, %c32_346], %378 {strides = array<i32>} : memref<2x4x256xf32, #tpu.memory_space<vmem>>, vector<1x4x16xf32>,
    %c1_347 = arith.constant 1 : index
    %c0_348 = arith.constant 0 : index
    %c48_349 = arith.constant 48 : index
    %379 = vector.load %arg0[%c1_347, %c0_348, %c48_349] : memref<2x4x256xf32, #tpu.memory_space<vmem>>, vector<1x4x16xf32>
    %380 = vector.shape_cast %379 : vector<1x4x16xf32> to vector<4x16xf32>
    %381 = vector.extract_strided_slice %245 {offsets = [0, 378], sizes = [4, 16], strides = [1, 1]} : vector<4x648xf32> to vector<4x16xf32>
    %382 = arith.addf %380, %381 : vector<4x16xf32>
    %c1_350 = arith.constant 1 : index
    %c0_351 = arith.constant 0 : index
    %c48_352 = arith.constant 48 : index
    %383 = vector.load %arg5[%c1_350, %c0_351, %c48_352] : memref<2x4x256xf32, #tpu.memory_space<vmem>>, vector<1x4x16xf32>
    %384 = vector.shape_cast %383 : vector<1x4x16xf32> to vector<4x16xf32>
    %385 = vector.shape_cast %382 : vector<4x16xf32> to vector<1x4x16xf32>
    tpu.vector_store %arg5[%c1_350, %c0_351, %c48_352], %385 {strides = array<i32>} : memref<2x4x256xf32, #tpu.memory_space<vmem>>, vector<1x4x16xf32>,
    %c1_353 = arith.constant 1 : index
    %c0_354 = arith.constant 0 : index
    %c64_355 = arith.constant 64 : index
    %386 = vector.load %arg0[%c1_353, %c0_354, %c64_355] : memref<2x4x256xf32, #tpu.memory_space<vmem>>, vector<1x4x16xf32>
    %387 = vector.shape_cast %386 : vector<1x4x16xf32> to vector<4x16xf32>
    %388 = vector.extract_strided_slice %245 {offsets = [0, 396], sizes = [4, 16], strides = [1, 1]} : vector<4x648xf32> to vector<4x16xf32>
    %389 = arith.addf %387, %388 : vector<4x16xf32>
    %c1_356 = arith.constant 1 : index
    %c0_357 = arith.constant 0 : index
    %c64_358 = arith.constant 64 : index
    %390 = vector.load %arg5[%c1_356, %c0_357, %c64_358] : memref<2x4x256xf32, #tpu.memory_space<vmem>>, vector<1x4x16xf32>
    %391 = vector.shape_cast %390 : vector<1x4x16xf32> to vector<4x16xf32>
    %392 = vector.shape_cast %389 : vector<4x16xf32> to vector<1x4x16xf32>
    tpu.vector_store %arg5[%c1_356, %c0_357, %c64_358], %392 {strides = array<i32>} : memref<2x4x256xf32, #tpu.memory_space<vmem>>, vector<1x4x16xf32>,
    %c1_359 = arith.constant 1 : index
    %c0_360 = arith.constant 0 : index
    %c80_361 = arith.constant 80 : index
    %393 = vector.load %arg0[%c1_359, %c0_360, %c80_361] : memref<2x4x256xf32, #tpu.memory_space<vmem>>, vector<1x4x16xf32>
    %394 = vector.shape_cast %393 : vector<1x4x16xf32> to vector<4x16xf32>
    %395 = vector.extract_strided_slice %245 {offsets = [0, 414], sizes = [4, 16], strides = [1, 1]} : vector<4x648xf32> to vector<4x16xf32>
    %396 = arith.addf %394, %395 : vector<4x16xf32>
    %c1_362 = arith.constant 1 : index
    %c0_363 = arith.constant 0 : index
    %c80_364 = arith.constant 80 : index
    %397 = vector.load %arg5[%c1_362, %c0_363, %c80_364] : memref<2x4x256xf32, #tpu.memory_space<vmem>>, vector<1x4x16xf32>
    %398 = vector.shape_cast %397 : vector<1x4x16xf32> to vector<4x16xf32>
    %399 = vector.shape_cast %396 : vector<4x16xf32> to vector<1x4x16xf32>
    tpu.vector_store %arg5[%c1_362, %c0_363, %c80_364], %399 {strides = array<i32>} : memref<2x4x256xf32, #tpu.memory_space<vmem>>, vector<1x4x16xf32>,
    %c1_365 = arith.constant 1 : index
    %c0_366 = arith.constant 0 : index
    %c96_367 = arith.constant 96 : index
    %400 = vector.load %arg0[%c1_365, %c0_366, %c96_367] : memref<2x4x256xf32, #tpu.memory_space<vmem>>, vector<1x4x16xf32>
    %401 = vector.shape_cast %400 : vector<1x4x16xf32> to vector<4x16xf32>
    %402 = vector.extract_strided_slice %245 {offsets = [0, 432], sizes = [4, 16], strides = [1, 1]} : vector<4x648xf32> to vector<4x16xf32>
    %403 = arith.addf %401, %402 : vector<4x16xf32>
    %c1_368 = arith.constant 1 : index
    %c0_369 = arith.constant 0 : index
    %c96_370 = arith.constant 96 : index
    %404 = vector.load %arg5[%c1_368, %c0_369, %c96_370] : memref<2x4x256xf32, #tpu.memory_space<vmem>>, vector<1x4x16xf32>
    %405 = vector.shape_cast %404 : vector<1x4x16xf32> to vector<4x16xf32>
    %406 = vector.shape_cast %403 : vector<4x16xf32> to vector<1x4x16xf32>
    tpu.vector_store %arg5[%c1_368, %c0_369, %c96_370], %406 {strides = array<i32>} : memref<2x4x256xf32, #tpu.memory_space<vmem>>, vector<1x4x16xf32>,
    %c1_371 = arith.constant 1 : index
    %c0_372 = arith.constant 0 : index
    %c112_373 = arith.constant 112 : index
    %407 = vector.load %arg0[%c1_371, %c0_372, %c112_373] : memref<2x4x256xf32, #tpu.memory_space<vmem>>, vector<1x4x16xf32>
    %408 = vector.shape_cast %407 : vector<1x4x16xf32> to vector<4x16xf32>
    %409 = vector.extract_strided_slice %245 {offsets = [0, 450], sizes = [4, 16], strides = [1, 1]} : vector<4x648xf32> to vector<4x16xf32>
    %410 = arith.addf %408, %409 : vector<4x16xf32>
    %c1_374 = arith.constant 1 : index
    %c0_375 = arith.constant 0 : index
    %c112_376 = arith.constant 112 : index
    %411 = vector.load %arg5[%c1_374, %c0_375, %c112_376] : memref<2x4x256xf32, #tpu.memory_space<vmem>>, vector<1x4x16xf32>
    %412 = vector.shape_cast %411 : vector<1x4x16xf32> to vector<4x16xf32>
    %413 = vector.shape_cast %410 : vector<4x16xf32> to vector<1x4x16xf32>
    tpu.vector_store %arg5[%c1_374, %c0_375, %c112_376], %413 {strides = array<i32>} : memref<2x4x256xf32, #tpu.memory_space<vmem>>, vector<1x4x16xf32>,
    %c1_377 = arith.constant 1 : index
    %c0_378 = arith.constant 0 : index
    %c128_379 = arith.constant 128 : index
    %414 = vector.load %arg0[%c1_377, %c0_378, %c128_379] : memref<2x4x256xf32, #tpu.memory_space<vmem>>, vector<1x4x16xf32>
    %415 = vector.shape_cast %414 : vector<1x4x16xf32> to vector<4x16xf32>
    %416 = vector.extract_strided_slice %245 {offsets = [0, 468], sizes = [4, 16], strides = [1, 1]} : vector<4x648xf32> to vector<4x16xf32>
    %417 = arith.addf %415, %416 : vector<4x16xf32>
    %c1_380 = arith.constant 1 : index
    %c0_381 = arith.constant 0 : index
    %c128_382 = arith.constant 128 : index
    %418 = vector.load %arg5[%c1_380, %c0_381, %c128_382] : memref<2x4x256xf32, #tpu.memory_space<vmem>>, vector<1x4x16xf32>
    %419 = vector.shape_cast %418 : vector<1x4x16xf32> to vector<4x16xf32>
    %420 = vector.shape_cast %417 : vector<4x16xf32> to vector<1x4x16xf32>
    tpu.vector_store %arg5[%c1_380, %c0_381, %c128_382], %420 {strides = array<i32>} : memref<2x4x256xf32, #tpu.memory_space<vmem>>, vector<1x4x16xf32>,
    %c1_383 = arith.constant 1 : index
    %c0_384 = arith.constant 0 : index
    %c144_385 = arith.constant 144 : index
    %421 = vector.load %arg0[%c1_383, %c0_384, %c144_385] : memref<2x4x256xf32, #tpu.memory_space<vmem>>, vector<1x4x16xf32>
    %422 = vector.shape_cast %421 : vector<1x4x16xf32> to vector<4x16xf32>
    %423 = vector.extract_strided_slice %245 {offsets = [0, 486], sizes = [4, 16], strides = [1, 1]} : vector<4x648xf32> to vector<4x16xf32>
    %424 = arith.addf %422, %423 : vector<4x16xf32>
    %c1_386 = arith.constant 1 : index
    %c0_387 = arith.constant 0 : index
    %c144_388 = arith.constant 144 : index
    %425 = vector.load %arg5[%c1_386, %c0_387, %c144_388] : memref<2x4x256xf32, #tpu.memory_space<vmem>>, vector<1x4x16xf32>
    %426 = vector.shape_cast %425 : vector<1x4x16xf32> to vector<4x16xf32>
    %427 = vector.shape_cast %424 : vector<4x16xf32> to vector<1x4x16xf32>
    tpu.vector_store %arg5[%c1_386, %c0_387, %c144_388], %427 {strides = array<i32>} : memref<2x4x256xf32, #tpu.memory_space<vmem>>, vector<1x4x16xf32>,
    %c1_389 = arith.constant 1 : index
    %c0_390 = arith.constant 0 : index
    %c160_391 = arith.constant 160 : index
    %428 = vector.load %arg0[%c1_389, %c0_390, %c160_391] : memref<2x4x256xf32, #tpu.memory_space<vmem>>, vector<1x4x16xf32>
    %429 = vector.shape_cast %428 : vector<1x4x16xf32> to vector<4x16xf32>
    %430 = vector.extract_strided_slice %245 {offsets = [0, 504], sizes = [4, 16], strides = [1, 1]} : vector<4x648xf32> to vector<4x16xf32>
    %431 = arith.addf %429, %430 : vector<4x16xf32>
    %c1_392 = arith.constant 1 : index
    %c0_393 = arith.constant 0 : index
    %c160_394 = arith.constant 160 : index
    %432 = vector.load %arg5[%c1_392, %c0_393, %c160_394] : memref<2x4x256xf32, #tpu.memory_space<vmem>>, vector<1x4x16xf32>
    %433 = vector.shape_cast %432 : vector<1x4x16xf32> to vector<4x16xf32>
    %434 = vector.shape_cast %431 : vector<4x16xf32> to vector<1x4x16xf32>
    tpu.vector_store %arg5[%c1_392, %c0_393, %c160_394], %434 {strides = array<i32>} : memref<2x4x256xf32, #tpu.memory_space<vmem>>, vector<1x4x16xf32>,
    %c1_395 = arith.constant 1 : index
    %c0_396 = arith.constant 0 : index
    %c176_397 = arith.constant 176 : index
    %435 = vector.load %arg0[%c1_395, %c0_396, %c176_397] : memref<2x4x256xf32, #tpu.memory_space<vmem>>, vector<1x4x16xf32>
    %436 = vector.shape_cast %435 : vector<1x4x16xf32> to vector<4x16xf32>
    %437 = vector.extract_strided_slice %245 {offsets = [0, 522], sizes = [4, 16], strides = [1, 1]} : vector<4x648xf32> to vector<4x16xf32>
    %438 = arith.addf %436, %437 : vector<4x16xf32>
    %c1_398 = arith.constant 1 : index
    %c0_399 = arith.constant 0 : index
    %c176_400 = arith.constant 176 : index
    %439 = vector.load %arg5[%c1_398, %c0_399, %c176_400] : memref<2x4x256xf32, #tpu.memory_space<vmem>>, vector<1x4x16xf32>
    %440 = vector.shape_cast %439 : vector<1x4x16xf32> to vector<4x16xf32>
    %441 = vector.shape_cast %438 : vector<4x16xf32> to vector<1x4x16xf32>
    tpu.vector_store %arg5[%c1_398, %c0_399, %c176_400], %441 {strides = array<i32>} : memref<2x4x256xf32, #tpu.memory_space<vmem>>, vector<1x4x16xf32>,
    %c1_401 = arith.constant 1 : index
    %c0_402 = arith.constant 0 : index
    %c192_403 = arith.constant 192 : index
    %442 = vector.load %arg0[%c1_401, %c0_402, %c192_403] : memref<2x4x256xf32, #tpu.memory_space<vmem>>, vector<1x4x16xf32>
    %443 = vector.shape_cast %442 : vector<1x4x16xf32> to vector<4x16xf32>
    %444 = vector.extract_strided_slice %245 {offsets = [0, 540], sizes = [4, 16], strides = [1, 1]} : vector<4x648xf32> to vector<4x16xf32>
    %445 = arith.addf %443, %444 : vector<4x16xf32>
    %c1_404 = arith.constant 1 : index
    %c0_405 = arith.constant 0 : index
    %c192_406 = arith.constant 192 : index
    %446 = vector.load %arg5[%c1_404, %c0_405, %c192_406] : memref<2x4x256xf32, #tpu.memory_space<vmem>>, vector<1x4x16xf32>
    %447 = vector.shape_cast %446 : vector<1x4x16xf32> to vector<4x16xf32>
    %448 = vector.shape_cast %445 : vector<4x16xf32> to vector<1x4x16xf32>
    tpu.vector_store %arg5[%c1_404, %c0_405, %c192_406], %448 {strides = array<i32>} : memref<2x4x256xf32, #tpu.memory_space<vmem>>, vector<1x4x16xf32>,
    %c1_407 = arith.constant 1 : index
    %c0_408 = arith.constant 0 : index
    %c208_409 = arith.constant 208 : index
    %449 = vector.load %arg0[%c1_407, %c0_408, %c208_409] : memref<2x4x256xf32, #tpu.memory_space<vmem>>, vector<1x4x16xf32>
    %450 = vector.shape_cast %449 : vector<1x4x16xf32> to vector<4x16xf32>
    %451 = vector.extract_strided_slice %245 {offsets = [0, 558], sizes = [4, 16], strides = [1, 1]} : vector<4x648xf32> to vector<4x16xf32>
    %452 = arith.addf %450, %451 : vector<4x16xf32>
    %c1_410 = arith.constant 1 : index
    %c0_411 = arith.constant 0 : index
    %c208_412 = arith.constant 208 : index
    %453 = vector.load %arg5[%c1_410, %c0_411, %c208_412] : memref<2x4x256xf32, #tpu.memory_space<vmem>>, vector<1x4x16xf32>
    %454 = vector.shape_cast %453 : vector<1x4x16xf32> to vector<4x16xf32>
    %455 = vector.shape_cast %452 : vector<4x16xf32> to vector<1x4x16xf32>
    tpu.vector_store %arg5[%c1_410, %c0_411, %c208_412], %455 {strides = array<i32>} : memref<2x4x256xf32, #tpu.memory_space<vmem>>, vector<1x4x16xf32>,
    %c1_413 = arith.constant 1 : index
    %c0_414 = arith.constant 0 : index
    %c224_415 = arith.constant 224 : index
    %456 = vector.load %arg0[%c1_413, %c0_414, %c224_415] : memref<2x4x256xf32, #tpu.memory_space<vmem>>, vector<1x4x16xf32>
    %457 = vector.shape_cast %456 : vector<1x4x16xf32> to vector<4x16xf32>
    %458 = vector.extract_strided_slice %245 {offsets = [0, 576], sizes = [4, 16], strides = [1, 1]} : vector<4x648xf32> to vector<4x16xf32>
    %459 = arith.addf %457, %458 : vector<4x16xf32>
    %c1_416 = arith.constant 1 : index
    %c0_417 = arith.constant 0 : index
    %c224_418 = arith.constant 224 : index
    %460 = vector.load %arg5[%c1_416, %c0_417, %c224_418] : memref<2x4x256xf32, #tpu.memory_space<vmem>>, vector<1x4x16xf32>
    %461 = vector.shape_cast %460 : vector<1x4x16xf32> to vector<4x16xf32>
    %462 = vector.shape_cast %459 : vector<4x16xf32> to vector<1x4x16xf32>
    tpu.vector_store %arg5[%c1_416, %c0_417, %c224_418], %462 {strides = array<i32>} : memref<2x4x256xf32, #tpu.memory_space<vmem>>, vector<1x4x16xf32>,
    %c1_419 = arith.constant 1 : index
    %c0_420 = arith.constant 0 : index
    %c240_421 = arith.constant 240 : index
    %463 = vector.load %arg0[%c1_419, %c0_420, %c240_421] : memref<2x4x256xf32, #tpu.memory_space<vmem>>, vector<1x4x16xf32>
    %464 = vector.shape_cast %463 : vector<1x4x16xf32> to vector<4x16xf32>
    %465 = vector.extract_strided_slice %245 {offsets = [0, 594], sizes = [4, 16], strides = [1, 1]} : vector<4x648xf32> to vector<4x16xf32>
    %466 = arith.addf %464, %465 : vector<4x16xf32>
    %c1_422 = arith.constant 1 : index
    %c0_423 = arith.constant 0 : index
    %c240_424 = arith.constant 240 : index
    %467 = vector.load %arg5[%c1_422, %c0_423, %c240_424] : memref<2x4x256xf32, #tpu.memory_space<vmem>>, vector<1x4x16xf32>
    %468 = vector.shape_cast %467 : vector<1x4x16xf32> to vector<4x16xf32>
    %469 = vector.shape_cast %466 : vector<4x16xf32> to vector<1x4x16xf32>
    tpu.vector_store %arg5[%c1_422, %c0_423, %c240_424], %469 {strides = array<i32>} : memref<2x4x256xf32, #tpu.memory_space<vmem>>, vector<1x4x16xf32>,
    return
  }
}

</mosaic_0001>

<bundles_post_ra>
// kernel: resnet_block.1
= control target key start
LH: loop header
LB: loop body
LE: loop exit
PB: predicated region body
PF: predicated region fallthrough
CT: control target
= control target key end

     0   :  { %v5793_v2 = vmov 0.0   ;;  %s5794_s22 = smov 23   ;;  %s5795_s23 = smov 19   ;;  %vm23_vm0 = vcmask 1043456   ;;  %vm24_vm1 = vcmask 375812   ;;  %vm32_vm3 = vcmask 281752   ;;  %s7002_s0 = inlined_call_operand.vmem [shape: f32[2,4,256], index: 0, kind: input, shape index: {}]   ;;  %s7003_s1 = inlined_call_operand.vmem [shape: f32[9,4,4], index: 1, kind: input, shape index: {}]   ;;  %s7004_s4 = inlined_call_operand.vmem [shape: f32[1,648], index: 4, kind: input, shape index: {}]   ;;  %s7005_s3 = inlined_call_operand.vmem [shape: f32[4,4], index: 3, kind: input, shape index: {}]   ;;  %s7006_s2 = inlined_call_operand.vmem [shape: f32[9,4,4], index: 2, kind: input, shape index: {}]   ;;  %s7007_s5 = inlined_call_operand.vmem [shape: f32[2,4,256], index: 5, kind: output, shape index: {}]  }
   0x1   :  { %v41_v0 = vld [vmem:[%s7002_s0] sm:$0xf]  ;;  %21 = vst [vmem:[#allocation2] sm:$0xff] %v5793_v2  ;;  %22 = vst [vmem:[#allocation2 + $0x8] sm:$0xff] %v5793_v2  ;;  %382 = vmatprep.mubr.f32.mxu0 %v5793_v2  ;;  %2871 = vmatprep.mubr.f32.mxu1 %v5793_v2  ;;  %s5796_s28 = smov 25   ;;  %s5797_s29 = smov 21  }
   0x2   :  { %v27_v1 = vld [vmem:[%s7002_s0] sm:$0xf]  ;;  %43 = vrot.lane.b32.xlu1 %v41_v0, %s5794_s22  ;;  %s5798_s9 = smov 27   ;;  %s5799_s10 = smov 31   ;;  %v95_v9 = vld [vmem:[%s7002_s0 + $0x4] sm:$0xf]  ;;  %vm25_vm2 = vmor %vm24_vm1, %vm23_vm0 }
   0x3   :  { %29 = vrot.lane.b32.xlu0 %v27_v1, %s5795_s23  ;;  %v48_v3 = vld [vmem:[%s7002_s0] sm:$0xf]  ;;  %s5800_s15 = smov 33   ;;  %s5801_s16 = smov 29   ;;  %v88_v10 = vld [vmem:[%s7002_s0 + $0x4] sm:$0xf] }
   0x4   :  { %v34_v4 = vld [vmem:[%s7002_s0] sm:$0xf]  ;;  %s5802_s21 = smov 37   ;;  %s5803_s22 = smov 35   ;;  %v123_v11 = vld [vmem:[%s7002_s0 + $0x4] sm:$0xf] }
   0x5   :  { %v55_v5 = vld [vmem:[%s7002_s0] sm:$0xf]  ;;  %v102_v12 = vld [vmem:[%s7002_s0 + $0x4] sm:$0xf]  ;;  %v5387_v17 = vld [vmem:[%s7002_s0 + $0x8] sm:$0xf] }
   0x6   :  { %50 = vrot.lane.b32.xlu1 %v48_v3, %s5796_s28  ;;  %v69_v6 = vld [vmem:[%s7002_s0] sm:$0xf]  ;;  %s5804_s28 = smov 45   ;;  %v116_v13 = vld [vmem:[%s7002_s0 + $0x4] sm:$0xf]  ;;  %26 = vst.msk [vmem:[#allocation2 + $0x10] sm:$0xff] %vm25_vm2, %v5793_v2 }
   0x7   :  { %36 = vrot.lane.b32.xlu0 %v34_v4, %s5797_s29  ;;  %v81_v7 = vld [vmem:[%s7002_s0] sm:$0xf]  ;;  %s5805_s29 = smov 39   ;;  %v109_v14 = vld [vmem:[%s7002_s0 + $0x4] sm:$0xf]  ;;  %s5819_s24 = smov 103  }
   0x8   :  { %v62_v8 = vld [vmem:[%s7002_s0] sm:$0xf]  ;;  %v142_v15 = vld [vmem:[%s7002_s0 + $0x4] sm:$0xf]  ;;  %v5389_v18 = vld [vmem:[%s7002_s0 + $0x8] sm:$0xf] }
   0x9   :  { %v135_v16 = vld [vmem:[%s7002_s0 + $0x4] sm:$0xf]  ;;  %v5390_v19 = vld [vmem:[%s7002_s0 + $0x8] sm:$0xf]  ;;  %v5396_v23 = vld [vmem:[%s7002_s0 + $0xc] sm:$0xf] }
   0xa   :  { %57 = vrot.lane.b32.xlu1 %v55_v5, %s5798_s9  ;;  %s5806_s9 = smov 43   ;;  %v5388_v20 = vld [vmem:[%s7002_s0 + $0x8] sm:$0xf]  ;;  %v5395_v26 = vld [vmem:[%s7002_s0 + $0xc] sm:$0xf]  ;;  %s5821_s30 = smov 109  }
   0xb   :  { %71 = vrot.lane.b32.xlu0 %v69_v6, %s5799_s10  ;;  %s5807_s10 = smov 41   ;;  %v5392_v21 = vld [vmem:[%s7002_s0 + $0x8] sm:$0xf]  ;;  %v5397_v27 = vld [vmem:[%s7002_s0 + $0xc] sm:$0xf]  ;;  %s5823_s11 = smov 113  }
   0xc   :  { %v5391_v22 = vld [vmem:[%s7002_s0 + $0x8] sm:$0xf]  ;;  %v5398_v28 = vld [vmem:[%s7002_s0 + $0xc] sm:$0xf]  ;;  %s5825_s17 = smov 117   ;;  %vm39_vm4 = vcmask 429352  }
   0xd   :  { %v5393_v24 = vld [vmem:[%s7002_s0 + $0x8] sm:$0xf]  ;;  %v5399_v29 = vld [vmem:[%s7002_s0 + $0xc] sm:$0xf]  ;;  %vm46_vm5 = vcmask 576952   ;;  %vm53_vm6 = vcmask 724552  }
   0xe   :  { %83 = vrot.lane.b32.xlu1 %v81_v7, %s5800_s15  ;;  %s5808_s15 = smov 49   ;;  %v5394_v25 = vld [vmem:[%s7002_s0 + $0x8] sm:$0xf]  ;;  %v5400_v30 = vld [vmem:[%s7002_s0 + $0xc] sm:$0xf]  ;;  %vm60_vm7 = vcmask 872152  }
   0xf   :  { %64 = vrot.lane.b32.xlu0 %v62_v8, %s5801_s16  ;;  %s5809_s16 = smov 47   ;;  %v5401_v31 = vld [vmem:[%s7002_s0 + $0xc] sm:$0xf]  ;;  %vm77_vm8 = vcmask 1044472   ;;  %vm78_vm9 = vcmask 121860   ;;  %vm74_vm10 = vcmask 252928  }
  0x10   :  { %v5402_v32 = vld [vmem:[%s7002_s0 + $0xc] sm:$0xf]  ;;  %vm67_vm11 = vcmask 1019752   ;;  %vm79_vm12 = vmor %vm78_vm9, %vm77_vm8  ;;  %vm86_vm13 = vcmask 265352   ;;  %vm93_vm14 = vcmask 412952   ;;  %vm100_vm15 = vcmask 560552  }
  0x11   :  { %vm107_vm1 = vcmask 708152   ;;  %vm131_vm2 = vcmask 1044456   ;;  %vm140_vm8 = vcmask 248952   ;;  %vm147_vm9 = vcmask 396552   ;;  %s5826_s18 = smov 127   ;;  %s5827_s19 = smov 126  }
  0x12   :  { %97 = vrot.lane.b32.xlu1 %v95_v9, %s5802_s21  ;;  %s5810_s21 = smov 87   ;;  %s5828_s20 = smov 110  }
  0x13   :  { %90 = vrot.lane.b32.xlu0 %v88_v10, %s5803_s22  ;;  %s5811_s22 = smov 91   ;;  %s5831_s25 = smov 90  }
  0x14   :  { %s5834_s6 = smov 1   ;;  %s5847_s7 = smov 38  }
  0x15   :  { %s5848_s8 = smov 104   ;;  %s5853_s12 = smov 50  }
  0x16   :  { %125 = vrot.lane.b32.xlu1 %v123_v11, %s5804_s28  ;;  %s5812_s28 = smov 93   ;;  %s5854_s13 = smov 34  }
  0x17   :  { %104 = vrot.lane.b32.xlu0 %v102_v12, %s5805_s29  ;;  %s5813_s29 = smov 89   ;;  %s5855_s14 = smov 116  }
  0x18   :  { %s5859_s26 = smov 54   ;;  %s5861_s27 = smov 114  }
  0x1a   :  { %118 = vrot.lane.b32.xlu1 %v116_v13, %s5806_s9  ;;  %s5814_s9 = smov 97  }
  0x1b   :  { %111 = vrot.lane.b32.xlu0 %v109_v14, %s5807_s10  ;;  %s5815_s10 = smov 95  }
  0x1e   :  { %144 = vrot.lane.b32.xlu1 %v142_v15, %s5808_s15  ;;  %s5816_s15 = smov 105  }
  0x1f   :  { %137 = vrot.lane.b32.xlu0 %v135_v16, %s5809_s16  ;;  %s5817_s16 = smov 99  }
  0x22   :  { %152 = vrot.lane.b32.xlu1 %v5387_v17, %s5810_s21  ;;  %s5818_s21 = smov 101  }
  0x23   :  { %166 = vrot.lane.b32.xlu0 %v5389_v18, %s5811_s22 }
  0x26   :  { %178 = vrot.lane.b32.xlu1 %v5390_v19, %s5812_s28  ;;  %s5837_s28 = smov 60  }
  0x27   :  { %159 = vrot.lane.b32.xlu0 %v5388_v20, %s5813_s29  ;;  %s5820_s29 = smov 107   ;;  %v5403_v20 = vld [vmem:[%s7003_s1 + $0x4] sm:$0xf] }
  0x2a   :  { %192 = vrot.lane.b32.xlu1 %v5392_v21, %s5814_s9  ;;  %s5849_s9 = smov 52  }
  0x2b   :  { %185 = vrot.lane.b32.xlu0 %v5391_v22, %s5815_s10  ;;  %s5822_s10 = smov 111  }
  0x2e   :  { %220 = vrot.lane.b32.xlu1 %v5396_v23, %s5816_s15  ;;  %s5856_s15 = smov 48  }
  0x2f   :  { %199 = vrot.lane.b32.xlu0 %v5393_v24, %s5817_s16  ;;  %s5824_s16 = smov 115  }
  0x32   :  { %213 = vrot.lane.b32.xlu1 %v5395_v26, %s5819_s24  ;;  %s5830_s24 = smov 92  }
  0x33   :  { %206 = vrot.lane.b32.xlu0 %v5394_v25, %s5818_s21  ;;  %s5829_s21 = smov 108  }
  0x36   :  { %239 = vrot.lane.b32.xlu1 %v5398_v28, %s5821_s30 }
  0x37   :  { %232 = vrot.lane.b32.xlu0 %v5397_v27, %s5820_s29 }
  0x3a   :  { %253 = vrot.lane.b32.xlu1 %v5400_v30, %s5823_s11  ;;  %s5852_s11 = smov 102  }
  0x3b   :  { %246 = vrot.lane.b32.xlu0 %v5399_v29, %s5822_s10  ;;  %s5851_s10 = smov 118  }
  0x3e   :  { %267 = vrot.lane.b32.xlu1 %v5402_v32, %s5825_s17  ;;  %s5858_s17 = smov 98  }
  0x3f   :  { %260 = vrot.lane.b32.xlu0 %v5401_v31, %s5824_s16  ;;  %v272_v31 = vld [vmem:[%s7003_s1] sm:$0xf]  ;;  %s5857_s16 = smov 32  }
  0x74   :  { %v44_v33 = vpop.permute.xlu1 %43 }
  0x75   :  { %v30_v34 = vpop.permute.xlu0 %29 }
  0x76   :  { %33 = vst.msk [vmem:[#allocation2] sm:$0xf] %vm32_vm3, %v30_v34  ;;  %vm132_vm3 = vcmask 105476  }
  0x78   :  { %v51_v35 = vpop.permute.xlu1 %50 }
  0x79   :  { %v37_v36 = vpop.permute.xlu0 %36 }
  0x7a   :  { %40 = vst.msk [vmem:[#allocation2] sm:$0xf] %vm39_vm4, %v37_v36  ;;  %vm114_vm4 = vcmask 855752  }
  0x7b   :  { %47 = vst.msk [vmem:[#allocation2] sm:$0xf] %vm46_vm5, %v44_v33  ;;  %vm128_vm5 = vcmask 367616  }
  0x7c   :  { %54 = vst.msk [vmem:[#allocation2] sm:$0xf] %vm53_vm6, %v51_v35  ;;  %v58_v37 = vpop.permute.xlu1 %57  ;;  %vm121_vm6 = vcmask 1003352  }
  0x7d   :  { %v72_v38 = vpop.permute.xlu0 %71  ;;  %61 = vst.msk [vmem:[#allocation2] sm:$0xf] %vm60_vm7, %v58_v37  ;;  %vm133_vm7 = vmor %vm132_vm3, %vm131_vm2  ;;  %vm188_vm2 = vcmask 380152   ;;  %vm195_vm3 = vcmask 527752  }
  0x7e   :  { %v73_v39 = vrot.slane %v72_v38, 4 }
  0x80   :  { %v84_v40 = vpop.permute.xlu1 %83  ;;  %v75_v42 = vsel %vm74_vm10, %v73_v39, %v72_v38  ;;  %vm155_vm10 = vcmask 839352  }
  0x81   :  { %v65_v41 = vpop.permute.xlu0 %64 }
  0x82   :  { %68 = vst.msk [vmem:[#allocation2] sm:$0xf] %vm67_vm11, %v65_v41  ;;  %vm172_vm11 = vcmask 1044440   ;;  %v5422_v41 = vld [vmem:[%s7003_s1 + $0x8] sm:$0xf] }
  0x83   :  { %80 = vst.msk [vmem:[#allocation2] sm:$0xff] %vm79_vm12, %v75_v42  ;;  %vm173_vm12 = vcmask 89092  }
  0x84   :  { %87 = vst.msk [vmem:[#allocation2 + $0x4] sm:$0xf] %vm86_vm13, %v84_v40  ;;  %v98_v43 = vpop.permute.xlu1 %97  ;;  %vm169_vm13 = vcmask 744448  }
  0x85   :  { %v91_v44 = vpop.permute.xlu0 %90 }
  0x86   :  { %94 = vst.msk [vmem:[#allocation2 + $0x4] sm:$0xf] %vm93_vm14, %v91_v44  ;;  %vm162_vm14 = vcmask 986952  }
  0x87   :  { %101 = vst.msk [vmem:[#allocation2 + $0x4] sm:$0xf] %vm100_vm15, %v98_v43  ;;  %vm174_vm15 = vmor %vm173_vm12, %vm172_vm11  ;;  %vm235_vm11 = vcmask 216152   ;;  %vm242_vm12 = vcmask 363752  }
  0x88   :  { %v126_v45 = vpop.permute.xlu1 %125 }
  0x89   :  { %v105_v46 = vpop.permute.xlu0 %104  ;;  %v127_v47 = vrot.slane %v126_v45, 4 }
  0x8a   :  { %108 = vst.msk [vmem:[#allocation2 + $0x4] sm:$0xf] %vm107_vm1, %v105_v46  ;;  %vm181_vm1 = vcmask 232552  }
  0x8b   :  { %v129_v50 = vsel %vm128_vm5, %v127_v47, %v126_v45  ;;  %vm226_vm5 = vcmask 1044424  }
  0x8c   :  { %v119_v48 = vpop.permute.xlu1 %118 }
  0x8d   :  { %v112_v49 = vpop.permute.xlu0 %111 }
  0x8e   :  { %115 = vst.msk [vmem:[#allocation2 + $0x4] sm:$0xf] %vm114_vm4, %v112_v49  ;;  %vm202_vm4 = vcmask 675352  }
  0x8f   :  { %122 = vst.msk [vmem:[#allocation2 + $0x4] sm:$0xf] %vm121_vm6, %v119_v48  ;;  %vm227_vm6 = vcmask 72708  }
  0x90   :  { %134 = vst.msk [vmem:[#allocation2 + $0x4] sm:$0xff] %vm133_vm7, %v129_v50  ;;  %v145_v51 = vpop.permute.xlu1 %144  ;;  %vm209_vm7 = vcmask 822952  }
  0x91   :  { %v138_v52 = vpop.permute.xlu0 %137 }
  0x92   :  { %141 = vst.msk [vmem:[#allocation2 + $0x8] sm:$0xf] %vm140_vm8, %v138_v52  ;;  %vm223_vm8 = vcmask 859136  }
  0x93   :  { %148 = vst.msk [vmem:[#allocation2 + $0x8] sm:$0xf] %vm147_vm9, %v145_v51  ;;  %vm216_vm9 = vcmask 970552  }
  0x94   :  { %v153_v53 = vpop.permute.xlu1 %152 }
  0x95   :  { %v167_v54 = vpop.permute.xlu0 %166  ;;  %156 = vst.msk [vmem:[#allocation2 + $0x8] sm:$0xf] %vm155_vm10, %v153_v53  ;;  %vm228_vm10 = vmor %vm227_vm6, %vm226_vm5  ;;  %vm782_vm5 = vcmask 1031168   ;;  %vm1045_vm6 = vcmask 900096   ;;  %v5432_v53 = vld [vmem:[%s7003_s1 + $0xc] sm:$0xf] }
  0x96   :  { %v168_v55 = vrot.slane %v167_v54, 4 }
  0x97   :  { %v6000_v56 = vld [vmem:[#allocation2] sm:$0xff] }
  0x98   :  { %284 = vrot.lane.b32.xlu0 %v6000_v56, %s5826_s18  ;;  %v179_v57 = vpop.permute.xlu1 %178  ;;  %v170_v59 = vsel %vm169_vm13, %v168_v55, %v167_v54  ;;  %v6007_v60 = vcombine.high %v6000_v56, %v6000_v56 }
  0x99   :  { %v160_v58 = vpop.permute.xlu0 %159 }
  0x9a   :  { %163 = vst.msk [vmem:[#allocation2 + $0x8] sm:$0xf] %vm162_vm14, %v160_v58  ;;  %vm249_vm14 = vcmask 511352  }
  0x9b   :  { %175 = vst.msk [vmem:[#allocation2 + $0x8] sm:$0xff] %vm174_vm15, %v170_v59  ;;  %vm256_vm15 = vcmask 658952  }
  0x9c   :  { %286 = vrot.lane.b32.xlu0 %v6007_v60, %s5826_s18  ;;  %182 = vst.msk [vmem:[#allocation2 + $0xc] sm:$0xf] %vm181_vm1, %v179_v57  ;;  %v193_v61 = vpop.permute.xlu1 %192  ;;  %vm263_vm1 = vcmask 806552  }
  0x9d   :  { %v186_v62 = vpop.permute.xlu0 %185 }
  0x9e   :  { %189 = vst.msk [vmem:[#allocation2 + $0xc] sm:$0xf] %vm188_vm2, %v186_v62  ;;  %vm270_vm2 = vcmask 954152  }
  0x9f   :  { %196 = vst.msk [vmem:[#allocation2 + $0xc] sm:$0xf] %vm195_vm3, %v193_v61  ;;  %vm296_vm3 = vcmask 1039360  }
  0xa0   :  { %v221_v63 = vpop.permute.xlu1 %220 }
  0xa1   :  { %v200_v0 = vpop.permute.xlu0 %199  ;;  %v222_v1 = vrot.slane %v221_v63, 4 }
  0xa2   :  { %203 = vst.msk [vmem:[#allocation2 + $0xc] sm:$0xf] %vm202_vm4, %v200_v0  ;;  %vm302_vm4 = vcmask 31744  }
  0xa3   :  { %v224_v5 = vsel %vm223_vm8, %v222_v1, %v221_v63  ;;  %v5442_v1 = vld [vmem:[%s7003_s1 + $0x10] sm:$0xf]  ;;  %vm1571_vm8 = vcmask 883712  }
  0xa4   :  { %v214_v4 = vpop.permute.xlu1 %213 }
  0xa5   :  { %v207_v3 = vpop.permute.xlu0 %206 }
  0xa6   :  { %210 = vst.msk [vmem:[#allocation2 + $0xc] sm:$0xf] %vm209_vm7, %v207_v3  ;;  %vm1308_vm7 = vcmask 891904  }
  0xa7   :  { %217 = vst.msk [vmem:[#allocation2 + $0xc] sm:$0xf] %vm216_vm9, %v214_v4  ;;  %vm1834_vm9 = vcmask 752640  }
  0xa8   :  { %229 = vst.msk [vmem:[#allocation2 + $0xc] sm:$0xff] %vm228_vm10, %v224_v5  ;;  %v240_v7 = vpop.permute.xlu1 %239  ;;  %vm2359_vm10 = vcmask 736256  }
  0xa9   :  { %v233_v6 = vpop.permute.xlu0 %232 }
  0xaa   :  { %236 = vst.msk [vmem:[#allocation2 + $0x10] sm:$0xf] %vm235_vm11, %v233_v6  ;;  %vm7008_vm11 = vcmask 60416  }
  0xab   :  { %243 = vst.msk [vmem:[#allocation2 + $0x10] sm:$0xf] %vm242_vm12, %v240_v7  ;;  %vm2755_vm12 = vcmask 1043608  }
  0xac   :  { %v254_v9 = vpop.permute.xlu1 %253 }
  0xad   :  { %v247_v8 = vpop.permute.xlu0 %246 }
  0xae   :  { %250 = vst.msk [vmem:[#allocation2 + $0x10] sm:$0xf] %vm249_vm14, %v247_v8  ;;  %vm2756_vm14 = vcmask 1047556  }
  0xaf   :  { %257 = vst.msk [vmem:[#allocation2 + $0x10] sm:$0xf] %vm256_vm15, %v254_v9  ;;  %v6011_v10 = vld [vmem:[#allocation2 + $0x8] sm:$0xff]  ;;  %vm2746_vm15 = vcmask 154624  }
  0xb0   :  { %288 = vrot.lane.b32.xlu1 %v6011_v10, %s5826_s18  ;;  %v268_v12 = vpop.permute.xlu1 %267  ;;  %v6017_v13 = vcombine.high %v6011_v10, %v6011_v10 }
  0xb1   :  { %v261_v11 = vpop.permute.xlu0 %260 }
  0xb2   :  { %264 = vst.msk [vmem:[#allocation2 + $0x10] sm:$0xf] %vm263_vm1, %v261_v11  ;;  %vm2757_vm1 = vmor %vm2756_vm14, %vm2755_vm12  ;;  %vm5217_vm12 = vcmask 932864   ;;  %vm5221_vm14 = vcmask 1044352  }
  0xb3   :  { %271 = vst.msk [vmem:[#allocation2 + $0x10] sm:$0xf] %vm270_vm2, %v268_v12  ;;  %vm2760_vm2 = vcmask 220164  }
  0xb4   :  { %290 = vrot.lane.b32.xlu1 %v6017_v13, %s5826_s18 }
  0xba   :  { %v6021_v14 = vld [vmem:[#allocation2 + $0x10] sm:$0xff] }
  0xbb   :  { %292 = vrot.lane.b32.xlu0 %v6021_v14, %s5826_s18  ;;  %v6027_v15 = vcombine.high %v6021_v14, %v6021_v14 }
  0xbd   :  { %294 = vrot.lane.b32.xlu1 %v6027_v15, %s5826_s18 }
  0xbf   :  { %772 = vrot.lane.b32.xlu0 %v6007_v60, %s5827_s19 }
  0xc1   :  { %774 = vrot.lane.b32.xlu1 %v6011_v10, %s5827_s19 }
  0xc3   :  { %770 = vrot.lane.b32.xlu0 %v6000_v56, %s5827_s19 }
  0xc5   :  { %776 = vrot.lane.b32.xlu1 %v6017_v13, %s5827_s19 }
  0xc7   :  { %778 = vrot.lane.b32.xlu0 %v6021_v14, %s5827_s19 }
  0xc9   :  { %780 = vrot.lane.b32.xlu1 %v6027_v15, %s5827_s19 }
  0xcb   :  { %1035 = vrot.lane.b32.xlu0 %v6007_v60, %s5828_s20 }
  0xcd   :  { %1037 = vrot.lane.b32.xlu1 %v6011_v10, %s5828_s20 }
  0xcf   :  { %1033 = vrot.lane.b32.xlu0 %v6000_v56, %s5828_s20 }
  0xd1   :  { %1039 = vrot.lane.b32.xlu1 %v6017_v13, %s5828_s20 }
  0xd3   :  { %1041 = vrot.lane.b32.xlu0 %v6021_v14, %s5828_s20 }
  0xd5   :  { %1043 = vrot.lane.b32.xlu1 %v6027_v15, %s5828_s20 }
  0xd7   :  { %1298 = vrot.lane.b32.xlu0 %v6007_v60, %s5821_s30 }
  0xd9   :  { %1300 = vrot.lane.b32.xlu1 %v6011_v10, %s5821_s30 }
  0xdb   :  { %1296 = vrot.lane.b32.xlu0 %v6000_v56, %s5821_s30 }
  0xdd   :  { %1302 = vrot.lane.b32.xlu1 %v6017_v13, %s5821_s30 }
  0xdf   :  { %1304 = vrot.lane.b32.xlu0 %v6021_v14, %s5821_s30 }
  0xe1   :  { %1306 = vrot.lane.b32.xlu1 %v6027_v15, %s5821_s30 }
  0xe3   :  { %1561 = vrot.lane.b32.xlu0 %v6007_v60, %s5829_s21 }
  0xe5   :  { %1563 = vrot.lane.b32.xlu1 %v6011_v10, %s5829_s21 }
  0xe7   :  { %1559 = vrot.lane.b32.xlu0 %v6000_v56, %s5829_s21 }
  0xe9   :  { %1565 = vrot.lane.b32.xlu1 %v6017_v13, %s5829_s21 }
  0xeb   :  { %1567 = vrot.lane.b32.xlu0 %v6021_v14, %s5829_s21 }
  0xed   :  { %1569 = vrot.lane.b32.xlu1 %v6027_v15, %s5829_s21 }
  0xef   :  { %1824 = vrot.lane.b32.xlu0 %v6007_v60, %s5830_s24 }
  0xf1   :  { %1826 = vrot.lane.b32.xlu1 %v6011_v10, %s5830_s24 }
  0xf3   :  { %1822 = vrot.lane.b32.xlu0 %v6000_v56, %s5830_s24 }
  0xf5   :  { %1828 = vrot.lane.b32.xlu1 %v6017_v13, %s5830_s24 }
  0xf7   :  { %1830 = vrot.lane.b32.xlu0 %v6021_v14, %s5830_s24 }
  0xf9   :  { %1832 = vrot.lane.b32.xlu1 %v6027_v15, %s5830_s24 }
  0xfb   :  { %2087 = vrot.lane.b32.xlu0 %v6007_v60, %s5811_s22 }
  0xfd   :  { %2089 = vrot.lane.b32.xlu1 %v6011_v10, %s5811_s22 }
  0xff   :  { %2085 = vrot.lane.b32.xlu0 %v6000_v56, %s5811_s22 }
 0x101   :  { %2091 = vrot.lane.b32.xlu1 %v6017_v13, %s5811_s22 }
 0x103   :  { %2093 = vrot.lane.b32.xlu0 %v6021_v14, %s5811_s22 }
 0x105   :  { %2095 = vrot.lane.b32.xlu1 %v6027_v15, %s5811_s22 }
 0x107   :  { %2349 = vrot.lane.b32.xlu0 %v6007_v60, %s5831_s25 }
 0x109   :  { %2351 = vrot.lane.b32.xlu1 %v6011_v10, %s5831_s25 }
 0x10a   :  { %v285_v16 = vpop.permute.xlu0 %284 }
 0x10b   :  { %2347 = vrot.lane.b32.xlu0 %v6000_v56, %s5831_s25 }
 0x10d   :  { %2353 = vrot.lane.b32.xlu1 %v6017_v13, %s5831_s25 }
 0x10e   :  { %v287_v17 = vpop.permute.xlu0 %286 }
 0x10f   :  { %2355 = vrot.lane.b32.xlu0 %v6021_v14, %s5831_s25  ;;  %v297_v21 = vsel %vm296_vm3, %v285_v16, %v287_v17 }
 0x111   :  { %2357 = vrot.lane.b32.xlu1 %v6027_v15, %s5831_s25 }
 0x122   :  { %v289_v18 = vpop.permute.xlu1 %288 }
 0x123   :  { %v298_v19 = vsel %vm296_vm3, %v287_v17, %v289_v18 }
 0x124   :  { %5404 = vmatprep.subr.msk.mxu0 %vm23_vm0, %v298_v19 }
 0x125   :  { %5405 = vmatpush1.msk.msra.mxu0 %vm23_vm0, %v297_v21 }
 0x126   :  { %5406 = vmatmul.mubr.msk.f32.vlgmr.msra.gmra.mrb[0].mxu0 %vm302_vm4, %v5403_v20  ;;  %v291_v22 = vpop.permute.xlu1 %290 }
 0x127   :  { %453 = vmatprep.mubr.f32.mxu0 %v5793_v2  ;;  %v299_v25 = vsel %vm296_vm3, %v289_v18, %v291_v22 }
 0x12d   :  { %v293_v23 = vpop.permute.xlu0 %292 }
 0x12e   :  { %v300_v24 = vsel %vm296_vm3, %v291_v22, %v293_v23 }
 0x12f   :  { %v295_v26 = vpop.permute.xlu1 %294  ;;  %5407 = vmatprep.subr.msk.mxu0 %vm23_vm0, %v300_v24 }
 0x130   :  { %v301_v27 = vsel %vm296_vm3, %v293_v23, %v295_v26  ;;  %5408 = vmatpush1.msk.msra.mxu0 %vm23_vm0, %v299_v25 }
 0x131   :  { %5409 = vmatmul.mubr.msk.f32.vlgmr.msra.gmra.mrb[2].mxu0 %vm302_vm4, %v5403_v20  ;;  %5410 = vmatprep.subr.msk.mxu0 %vm23_vm0, %v295_v26  ;;  %v773_v28 = vpop.permute.xlu0 %772  ;;  %v5462_v26 = vld [vmem:[%s7003_s1 + $0x18] sm:$0xf] }
 0x132   :  { %5411 = vmatpush1.msk.msra.mxu0 %vm23_vm0, %v301_v27  ;;  %524 = vmatprep.mubr.f32.mxu0 %v5793_v2 }
 0x133   :  { %v775_v29 = vpop.permute.xlu1 %774  ;;  %5413 = vmatprep.subr.msk.mxu0 %vm23_vm0, %v6007_v60 }
 0x134   :  { %v784_v36 = vsel %vm782_vm5, %v773_v28, %v775_v29 }
 0x135   :  { %5412 = vmatmul.mubr.msk.f32.vlgmr.msra.gmra.mrb[4].mxu0 %vm302_vm4, %v5403_v20  ;;  %v771_v30 = vpop.permute.xlu0 %770 }
 0x136   :  { %5414 = vmatpush1.msk.msra.mxu0 %vm23_vm0, %v6000_v56  ;;  %610 = vmatprep.mubr.f32.mxu0 %v5793_v2  ;;  %v783_v38 = vsel %vm782_vm5, %v771_v30, %v773_v28 }
 0x137   :  { %5416 = vmatprep.subr.msk.mxu0 %vm23_vm0, %v6017_v13  ;;  %v777_v32 = vpop.permute.xlu1 %776 }
 0x138   :  { %v785_v43 = vsel %vm782_vm5, %v775_v29, %v777_v32 }
 0x139   :  { %5415 = vmatmul.mubr.msk.f32.vlgmr.msra.gmra.mrb[0].mxu0 %vm302_vm4, %v272_v31  ;;  %v779_v33 = vpop.permute.xlu0 %778 }
 0x13a   :  { %5417 = vmatpush1.msk.msra.mxu0 %vm23_vm0, %v6011_v10  ;;  %681 = vmatprep.mubr.f32.mxu0 %v5793_v2  ;;  %v786_v40 = vsel %vm782_vm5, %v777_v32, %v779_v33 }
 0x13b   :  { %5419 = vmatprep.subr.msk.mxu0 %vm23_vm0, %v6027_v15  ;;  %v781_v34 = vpop.permute.xlu1 %780 }
 0x13c   :  { %v787_v46 = vsel %vm782_vm5, %v779_v33, %v781_v34 }
 0x13d   :  { %5418 = vmatmul.mubr.msk.f32.vlgmr.msra.gmra.mrb[2].mxu0 %vm302_vm4, %v272_v31  ;;  %v1036_v35 = vpop.permute.xlu0 %1035 }
 0x13e   :  { %5420 = vmatpush1.msk.msra.mxu0 %vm23_vm0, %v6021_v14  ;;  %752 = vmatprep.mubr.f32.mxu0 %v5793_v2  ;;  %v5452_v14 = vld [vmem:[%s7003_s1 + $0x14] sm:$0xf] }
 0x13f   :  { %5423 = vmatprep.subr.msk.mxu0 %vm23_vm0, %v784_v36  ;;  %v1038_v37 = vpop.permute.xlu1 %1037  ;;  %v5472_v36 = vld [vmem:[%s7003_s1 + $0x1c] sm:$0xf] }
 0x140   :  { %v1047_v48 = vsel %vm1045_vm6, %v1036_v35, %v1038_v37 }
 0x141   :  { %5421 = vmatmul.mubr.msk.f32.vlgmr.msra.gmra.mrb[4].mxu0 %vm302_vm4, %v272_v31  ;;  %v1034_v39 = vpop.permute.xlu0 %1033 }
 0x142   :  { %5424 = vmatpush1.msk.msra.mxu0 %vm23_vm0, %v783_v38  ;;  %867 = vmatprep.mubr.f32.mxu0 %v5793_v2  ;;  %v1046_v50 = vsel %vm1045_vm6, %v1034_v39, %v1036_v35 }
 0x143   :  { %5426 = vmatprep.subr.msk.mxu0 %vm23_vm0, %v786_v40  ;;  %v1040_v42 = vpop.permute.xlu1 %1039 }
 0x144   :  { %v1048_v55 = vsel %vm1045_vm6, %v1038_v37, %v1040_v42 }
 0x145   :  { %5425 = vmatmul.mubr.msk.f32.vlgmr.msra.gmra.mrb[0].mxu0 %vm302_vm4, %v5422_v41  ;;  %v1042_v44 = vpop.permute.xlu0 %1041 }
 0x146   :  { %5427 = vmatpush1.msk.msra.mxu0 %vm23_vm0, %v785_v43  ;;  %938 = vmatprep.mubr.f32.mxu0 %v5793_v2  ;;  %v1049_v52 = vsel %vm1045_vm6, %v1040_v42, %v1042_v44 }
 0x147   :  { %5429 = vmatprep.subr.msk.mxu0 %vm23_vm0, %v781_v34  ;;  %v1044_v45 = vpop.permute.xlu1 %1043 }
 0x148   :  { %v1050_v58 = vsel %vm1045_vm6, %v1042_v44, %v1044_v45 }
 0x149   :  { %5428 = vmatmul.mubr.msk.f32.vlgmr.msra.gmra.mrb[2].mxu0 %vm302_vm4, %v5422_v41  ;;  %v1299_v47 = vpop.permute.xlu0 %1298 }
 0x14a   :  { %5430 = vmatpush1.msk.msra.mxu0 %vm23_vm0, %v787_v46  ;;  %1009 = vmatprep.mubr.f32.mxu0 %v5793_v2  ;;  %v5482_v46 = vld [vmem:[%s7003_s1 + $0x20] sm:$0xf]  ;;  %s5863_s1 = smov 46  }
 0x14b   :  { %5433 = vmatprep.subr.msk.mxu0 %vm23_vm0, %v1047_v48  ;;  %v1301_v49 = vpop.permute.xlu1 %1300 }
 0x14c   :  { %v1310_v60 = vsel %vm1308_vm7, %v1299_v47, %v1301_v49 }
 0x14d   :  { %5431 = vmatmul.mubr.msk.f32.vlgmr.msra.gmra.mrb[4].mxu0 %vm302_vm4, %v5422_v41  ;;  %v1297_v51 = vpop.permute.xlu0 %1296 }
 0x14e   :  { %5434 = vmatpush1.msk.msra.mxu0 %vm23_vm0, %v1046_v50  ;;  %1130 = vmatprep.mubr.f32.mxu0 %v5793_v2  ;;  %v1309_v62 = vsel %vm1308_vm7, %v1297_v51, %v1299_v47  ;;  %v2601_v50 = vlaneseq }
 0x14f   :  { %5436 = vmatprep.subr.msk.mxu0 %vm23_vm0, %v1049_v52  ;;  %v1303_v54 = vpop.permute.xlu1 %1302 }
 0x150   :  { %v1311_v4 = vsel %vm1308_vm7, %v1301_v49, %v1303_v54  ;;  %v2602_v51 = vshrl.u32 %v2601_v50, 7 }
 0x151   :  { %5435 = vmatmul.mubr.msk.f32.vlgmr.msra.gmra.mrb[0].mxu0 %vm302_vm4, %v5432_v53  ;;  %v1305_v56 = vpop.permute.xlu0 %1304 }
 0x152   :  { %5437 = vmatpush1.msk.msra.mxu0 %vm23_vm0, %v1048_v55  ;;  %1201 = vmatprep.mubr.f32.mxu0 %v5793_v2  ;;  %v1312_v0 = vsel %vm1308_vm7, %v1303_v54, %v1305_v56  ;;  %v2603_v52 = vsub.s32 0, %v2602_v51  ;;  %v2607_v54 = vsub.s32 1, %v2602_v51 }
 0x153   :  { %5439 = vmatprep.subr.msk.mxu0 %vm23_vm0, %v1044_v45  ;;  %v1307_v57 = vpop.permute.xlu1 %1306 }
 0x154   :  { %v1313_v7 = vsel %vm1308_vm7, %v1305_v56, %v1307_v57  ;;  %v2611_v56 = vsub.s32 2, %v2602_v51 }
 0x155   :  { %5438 = vmatmul.mubr.msk.f32.vlgmr.msra.gmra.mrb[2].mxu0 %vm302_vm4, %v5432_v53  ;;  %v1562_v59 = vpop.permute.xlu0 %1561 }
 0x156   :  { %5440 = vmatpush1.msk.msra.mxu0 %vm23_vm0, %v1050_v58  ;;  %1272 = vmatprep.mubr.f32.mxu0 %v5793_v2  ;;  %v2615_v58 = vsub.s32 3, %v2602_v51 }
 0x157   :  { %5443 = vmatprep.subr.msk.mxu0 %vm23_vm0, %v1310_v60  ;;  %v1564_v61 = vpop.permute.xlu1 %1563 }
 0x158   :  { %v1573_v9 = vsel %vm1571_vm8, %v1562_v59, %v1564_v61 }
 0x159   :  { %5441 = vmatmul.mubr.msk.f32.vlgmr.msra.gmra.mrb[4].mxu0 %vm302_vm4, %v5432_v53  ;;  %v1560_v63 = vpop.permute.xlu0 %1559  ;;  %v20_v53 = vld [vmem:[%s7004_s4] sm:$0x3f]  ;;  %s5838_s4 = smov 112  }
 0x15a   :  { %5444 = vmatpush1.msk.msra.mxu0 %vm23_vm0, %v1309_v62  ;;  %1393 = vmatprep.mubr.f32.mxu0 %v5793_v2  ;;  %v1572_v11 = vsel %vm1571_vm8, %v1560_v63, %v1562_v59  ;;  %v6298_v55 = vrot.slane %v20_v53, %v2603_v52  ;;  %v6308_v62 = vrot.slane %v20_v53, %v2611_v56  ;;  %v2619_v63 = vsub.s32 4, %v2602_v51 }
 0x15b   :  { %5446 = vmatprep.subr.msk.mxu0 %vm23_vm0, %v1312_v0  ;;  %v1566_v3 = vpop.permute.xlu1 %1565 }
 0x15c   :  { %v1574_v16 = vsel %vm1571_vm8, %v1564_v61, %v1566_v3 }
 0x15d   :  { %5445 = vmatmul.mubr.msk.f32.vlgmr.msra.gmra.mrb[0].mxu0 %vm302_vm4, %v5442_v1  ;;  %v1568_v5 = vpop.permute.xlu0 %1567 }
 0x15e   :  { %5447 = vmatpush1.msk.msra.mxu0 %vm23_vm0, %v1311_v4  ;;  %1464 = vmatprep.mubr.f32.mxu0 %v5793_v2  ;;  %v1575_v13 = vsel %vm1571_vm8, %v1566_v3, %v1568_v5  ;;  %v2623_v3 = vsub.s32 5, %v2602_v51 }
 0x15f   :  { %5449 = vmatprep.subr.msk.mxu0 %vm23_vm0, %v1307_v57  ;;  %v1570_v6 = vpop.permute.xlu1 %1569  ;;  %v6300_v57 = vrot.slane %v20_v53, %v2607_v54 }
 0x160   :  { %v1576_v19 = vsel %vm1571_vm8, %v1568_v5, %v1570_v6 }
 0x161   :  { %5448 = vmatmul.mubr.msk.f32.vlgmr.msra.gmra.mrb[2].mxu0 %vm302_vm4, %v5442_v1  ;;  %v1825_v8 = vpop.permute.xlu0 %1824 }
 0x162   :  { %5450 = vmatpush1.msk.msra.mxu0 %vm23_vm0, %v1313_v7  ;;  %1535 = vmatprep.mubr.f32.mxu0 %v5793_v2 }
 0x163   :  { %5453 = vmatprep.subr.msk.mxu0 %vm23_vm0, %v1573_v9  ;;  %v1827_v10 = vpop.permute.xlu1 %1826 }
 0x164   :  { %v1836_v21 = vsel %vm1834_vm9, %v1825_v8, %v1827_v10 }
 0x165   :  { %5451 = vmatmul.mubr.msk.f32.vlgmr.msra.gmra.mrb[4].mxu0 %vm302_vm4, %v5442_v1  ;;  %v1823_v12 = vpop.permute.xlu0 %1822  ;;  %v6312_v1 = vrot.slane %v20_v53, %v2615_v58  ;;  %v5832_v58 = vmov 0  }
 0x166   :  { %5454 = vmatpush1.msk.msra.mxu0 %vm23_vm0, %v1572_v11  ;;  %1656 = vmatprep.mubr.f32.mxu0 %v5793_v2  ;;  %v1835_v23 = vsel %vm1834_vm9, %v1823_v12, %v1825_v8  ;;  %v6326_v12 = vrot.slane %v20_v53, %v2623_v3  ;;  %v5833_v3 = vmov 1  }
 0x167   :  { %5456 = vmatprep.subr.msk.mxu0 %vm23_vm0, %v1575_v13  ;;  %v1829_v15 = vpop.permute.xlu1 %1828  ;;  %5781 = vset.pattern.permute.xlu1 %v5832_v58 }
 0x168   :  { %v1837_v27 = vsel %vm1834_vm9, %v1827_v10, %v1829_v15  ;;  %v6322_v10 = vrot.slane %v20_v53, %v2619_v63  ;;  %5782 = vset.pattern.permute.xlu0 %v5833_v3 }
 0x169   :  { %5455 = vmatmul.mubr.msk.f32.vlgmr.msra.gmra.mrb[0].mxu0 %vm302_vm4, %v5452_v14  ;;  %v1831_v17 = vpop.permute.xlu0 %1830 }
 0x16a   :  { %5457 = vmatpush1.msk.msra.mxu0 %vm23_vm0, %v1574_v16  ;;  %1727 = vmatprep.mubr.f32.mxu0 %v5793_v2  ;;  %v1838_v25 = vsel %vm1834_vm9, %v1829_v15, %v1831_v17 }
 0x16b   :  { %5459 = vmatprep.subr.msk.mxu0 %vm23_vm0, %v1570_v6  ;;  %v1833_v18 = vpop.permute.xlu1 %1832 }
 0x16c   :  { %v1839_v30 = vsel %vm1834_vm9, %v1831_v17, %v1833_v18 }
 0x16d   :  { %5458 = vmatmul.mubr.msk.f32.vlgmr.msra.gmra.mrb[2].mxu0 %vm302_vm4, %v5452_v14  ;;  %v2088_v20 = vpop.permute.xlu0 %2087 }
 0x16e   :  { %5460 = vmatpush1.msk.msra.mxu0 %vm23_vm0, %v1576_v19  ;;  %1798 = vmatprep.mubr.f32.mxu0 %v5793_v2 }
 0x16f   :  { %5463 = vmatprep.subr.msk.mxu0 %vm23_vm0, %v1836_v21  ;;  %v2090_v22 = vpop.permute.xlu1 %2089 }
 0x170   :  { %v2098_v31 = vsel %vm169_vm13, %v2088_v20, %v2090_v22 }
 0x171   :  { %5461 = vmatmul.mubr.msk.f32.vlgmr.msra.gmra.mrb[4].mxu0 %vm302_vm4, %v5452_v14  ;;  %v2086_v24 = vpop.permute.xlu0 %2085 }
 0x172   :  { %5464 = vmatpush1.msk.msra.mxu0 %vm23_vm0, %v1835_v23  ;;  %1919 = vmatprep.mubr.f32.mxu0 %v5793_v2  ;;  %v2097_v34 = vsel %vm169_vm13, %v2086_v24, %v2088_v20 }
 0x173   :  { %5466 = vmatprep.subr.msk.mxu0 %vm23_vm0, %v1838_v25  ;;  %v2092_v29 = vpop.permute.xlu1 %2091 }
 0x174   :  { %v2099_v37 = vsel %vm169_vm13, %v2090_v22, %v2092_v29 }
 0x175   :  { %5465 = vmatmul.mubr.msk.f32.vlgmr.msra.gmra.mrb[0].mxu0 %vm302_vm4, %v5462_v26  ;;  %v2094_v28 = vpop.permute.xlu0 %2093 }
 0x176   :  { %5467 = vmatpush1.msk.msra.mxu0 %vm23_vm0, %v1837_v27  ;;  %1990 = vmatprep.mubr.f32.mxu0 %v5793_v2  ;;  %v2100_v35 = vsel %vm169_vm13, %v2092_v29, %v2094_v28 }
 0x177   :  { %5469 = vmatprep.subr.msk.mxu0 %vm23_vm0, %v1833_v18  ;;  %v2096_v33 = vpop.permute.xlu1 %2095 }
 0x178   :  { %v2101_v40 = vsel %vm169_vm13, %v2094_v28, %v2096_v33 }
 0x179   :  { %5468 = vmatmul.mubr.msk.f32.vlgmr.msra.gmra.mrb[2].mxu0 %vm302_vm4, %v5462_v26  ;;  %v2350_v32 = vpop.permute.xlu0 %2349 }
 0x17a   :  { %5470 = vmatpush1.msk.msra.mxu0 %vm23_vm0, %v1839_v30  ;;  %2061 = vmatprep.mubr.f32.mxu0 %v5793_v2 }
 0x17b   :  { %5473 = vmatprep.subr.msk.mxu0 %vm23_vm0, %v2098_v31  ;;  %v2352_v39 = vpop.permute.xlu1 %2351 }
 0x17c   :  { %v2361_v41 = vsel %vm2359_vm10, %v2350_v32, %v2352_v39 }
 0x17d   :  { %5471 = vmatmul.mubr.msk.f32.vlgmr.msra.gmra.mrb[4].mxu0 %vm302_vm4, %v5462_v26  ;;  %v2348_v38 = vpop.permute.xlu0 %2347 }
 0x17e   :  { %5474 = vmatpush1.msk.msra.mxu0 %vm23_vm0, %v2097_v34  ;;  %2181 = vmatprep.mubr.f32.mxu0 %v5793_v2  ;;  %v2360_v44 = vsel %vm2359_vm10, %v2348_v38, %v2350_v32 }
 0x17f   :  { %5476 = vmatprep.subr.msk.mxu0 %vm23_vm0, %v2100_v35  ;;  %v2354_v43 = vpop.permute.xlu1 %2353 }
 0x180   :  { %v2362_v47 = vsel %vm2359_vm10, %v2352_v39, %v2354_v43 }
 0x181   :  { %5475 = vmatmul.mubr.msk.f32.vlgmr.msra.gmra.mrb[0].mxu0 %vm302_vm4, %v5472_v36  ;;  %v2356_v42 = vpop.permute.xlu0 %2355 }
 0x182   :  { %5477 = vmatpush1.msk.msra.mxu0 %vm23_vm0, %v2099_v37  ;;  %2252 = vmatprep.mubr.f32.mxu0 %v5793_v2  ;;  %v2363_v45 = vsel %vm2359_vm10, %v2354_v43, %v2356_v42 }
 0x183   :  { %5479 = vmatprep.subr.msk.mxu0 %vm23_vm0, %v2096_v33  ;;  %v2358_v48 = vpop.permute.xlu1 %2357 }
 0x184   :  { %v2364_v49 = vsel %vm2359_vm10, %v2356_v42, %v2358_v48 }
 0x185   :  { %5478 = vmatmul.mubr.msk.f32.vlgmr.msra.gmra.mrb[2].mxu0 %vm302_vm4, %v5472_v36 }
 0x186   :  { %5480 = vmatpush1.msk.msra.mxu0 %vm23_vm0, %v2101_v40  ;;  %2323 = vmatprep.mubr.f32.mxu0 %v5793_v2 }
 0x187   :  { %5483 = vmatprep.subr.msk.mxu0 %vm23_vm0, %v2361_v41 }
 0x189   :  { %5481 = vmatmul.mubr.msk.f32.vlgmr.msra.gmra.mrb[4].mxu0 %vm302_vm4, %v5472_v36 }
 0x18a   :  { %5484 = vmatpush1.msk.msra.mxu0 %vm23_vm0, %v2360_v44  ;;  %2444 = vmatprep.mubr.f32.mxu0 %v5793_v2 }
 0x18b   :  { %5486 = vmatprep.subr.msk.mxu0 %vm23_vm0, %v2363_v45 }
 0x18d   :  { %5485 = vmatmul.mubr.msk.f32.vlgmr.msra.gmra.mrb[0].mxu0 %vm302_vm4, %v5482_v46 }
 0x18e   :  { %5487 = vmatpush1.msk.msra.mxu0 %vm23_vm0, %v2362_v47  ;;  %2515 = vmatprep.mubr.f32.mxu0 %v5793_v2 }
 0x18f   :  { %5489 = vmatprep.subr.msk.mxu0 %vm23_vm0, %v2358_v48 }
 0x191   :  { %5488 = vmatmul.mubr.msk.f32.vlgmr.msra.gmra.mrb[2].mxu0 %vm302_vm4, %v5482_v46 }
 0x192   :  { %5490 = vmatpush1.msk.msra.mxu0 %vm23_vm0, %v2364_v49  ;;  %2586 = vmatprep.mubr.f32.mxu0 %v5793_v2 }
 0x195   :  { %5491 = vmatmul.mubr.msk.f32.vlgmr.msra.gmra.mrb[4].mxu0 %vm302_vm4, %v5482_v46 }
 0x260   :  { %v6302_v59 = vpop.f32.mrb[0].mxu0 }
 0x261   :  { %v2631_v60 = vmul.f32 %v6298_v55, %v6302_v59  ;;  %v6306_v61 = vpop.f32.mrb[1].mxu0 }
 0x262   :  { %v2632_v0 = vmul.f32 %v6300_v57, %v6306_v61 }
 0x263   :  { %v2637_v4 = vsel %vm23_vm0, %v2631_v60, 0.0 }
 0x264   :  { %v2638_v5 = vsel %vm23_vm0, %v2632_v0, 0.0  ;;  %v6316_v6 = vpop.f32.mrb[2].mxu0 }
 0x265   :  { %v2639_v7 = vadd.f32 %v2638_v5, %v2637_v4  ;;  %v2633_v8 = vmul.f32 %v6308_v62, %v6316_v6  ;;  %v6320_v9 = vpop.f32.mrb[3].mxu0  ;;  %v2599_v4 = vld [vmem:[%s7005_s3] sm:$0xf] }
 0x266   :  { %v2634_v11 = vmul.f32 %v6312_v1, %v6320_v9 }
 0x267   :  { %v2640_v13 = vsel %vm23_vm0, %v2633_v8, 0.0 }
 0x268   :  { %v2641_v14 = vadd.f32 %v2640_v13, %v2639_v7  ;;  %v2642_v15 = vsel %vm23_vm0, %v2634_v11, 0.0  ;;  %v6330_v16 = vpop.f32.mrb[4].mxu0 }
 0x269   :  { %v2635_v17 = vmul.f32 %v6322_v10, %v6330_v16  ;;  %v2590_v18 = vpop.f32.mrb[5].mxu0 }
 0x26a   :  { %v2636_v19 = vmul.f32 %v6326_v12, %v2590_v18  ;;  %v2643_v20 = vadd.f32 %v2642_v15, %v2641_v14 }
 0x26b   :  { %v2644_v21 = vsel %vm23_vm0, %v2635_v17, 0.0 }
 0x26c   :  { %v2645_v22 = vadd.f32 %v2644_v21, %v2643_v20  ;;  %v2647_v23 = vsel %vm7008_vm11, %v2636_v19, 0.0 }
 0x26e   :  { %v2648_v24 = vadd.f32 %v2647_v23, %v2645_v22 }
 0x270   :  { %2649 = vadd.xlane.f32.xlu0 %v2648_v24 }
 0x2fd   :  { %v2650_v25 = vpop.xlane.xlu0 %2649 }
 0x2fe   :  { %v2652_v26 = vmul.f32 0.001953125, %v2650_v25 }
 0x300   :  { %v2653_v27 = vsub.f32 %v6302_v59, %v2652_v26  ;;  %v2654_v28 = vsub.f32 %v6306_v61, %v2652_v26  ;;  %v2655_v29 = vsub.f32 %v6316_v6, %v2652_v26  ;;  %v2656_v30 = vsub.f32 %v6320_v9, %v2652_v26 }
 0x301   :  { %v2657_v31 = vsub.f32 %v6330_v16, %v2652_v26  ;;  %v2658_v32 = vsub.f32 %v2590_v18, %v2652_v26 }
 0x302   :  { %v2659_v33 = vmul.f32 %v2653_v27, %v6298_v55  ;;  %v2660_v34 = vmul.f32 %v2654_v28, %v6300_v57  ;;  %v2661_v35 = vmul.f32 %v2655_v29, %v6308_v62  ;;  %v2662_v36 = vmul.f32 %v2656_v30, %v6312_v1 }
 0x303   :  { %v2663_v37 = vmul.f32 %v2657_v31, %v6322_v10  ;;  %v2664_v41 = vmul.f32 %v2658_v32, %v6326_v12 }
 0x304   :  { %v2665_v38 = vmul.f32 %v2659_v33, %v2659_v33  ;;  %v2666_v39 = vmul.f32 %v2660_v34, %v2660_v34  ;;  %v2667_v40 = vmul.f32 %v2661_v35, %v2661_v35  ;;  %v2668_v42 = vmul.f32 %v2662_v36, %v2662_v36 }
 0x305   :  { %v2669_v46 = vmul.f32 %v2663_v37, %v2663_v37  ;;  %v2670_v49 = vmul.f32 %v2664_v41, %v2664_v41 }
 0x306   :  { %v2671_v43 = vsel %vm23_vm0, %v2665_v38, 0.0  ;;  %v2672_v44 = vsel %vm23_vm0, %v2666_v39, 0.0  ;;  %v2674_v47 = vsel %vm23_vm0, %v2667_v40, 0.0  ;;  %v2676_v50 = vsel %vm23_vm0, %v2668_v42, 0.0 }
 0x307   :  { %v2673_v45 = vadd.f32 %v2672_v44, %v2671_v43  ;;  %v2678_v52 = vsel %vm23_vm0, %v2669_v46, 0.0  ;;  %v2680_v54 = vsel %vm7008_vm11, %v2670_v49, 0.0  ;;  %vm2761_vm11 = vmor %vm2760_vm2, %vm23_vm0 }
 0x309   :  { %v2675_v48 = vadd.f32 %v2674_v47, %v2673_v45 }
 0x30b   :  { %v2677_v51 = vadd.f32 %v2676_v50, %v2675_v48 }
 0x30d   :  { %v2679_v53 = vadd.f32 %v2678_v52, %v2677_v51 }
 0x30f   :  { %v2681_v56 = vadd.f32 %v2680_v54, %v2679_v53 }
 0x311   :  { %2682 = vadd.xlane.f32.xlu1 %v2681_v56 }
 0x39e   :  { %v2683_v60 = vpop.xlane.xlu1 %2682 }
 0x39f   :  { %v2684_v63 = vmul.f32 0.001953125, %v2683_v60 }
 0x3a1   :  { %v2685_v0 = vadd.f32 1e-05, %v2684_v63 }
 0x3a3   :  { %5789 = vrsqrt.f32 %v2685_v0 }
 0x3ad   :  { %v5790_v5 = vpop.eup %5789 }
 0x3ae   :  { %v2687_v7 = vmul.f32 %v5790_v5, %v2599_v4 }
 0x3b0   :  { %2696 = vperm.xlu1 %5781, %v2687_v7   ;;  %v2688_v8 = vmul.f32 %v2687_v7, %v2652_v26 }
 0x3b2   :  { %2690 = vrot.lane.b32.xlu0 %v2688_v8, %s5834_s6 }
 0x424   :  { %v2691_v11 = vpop.permute.xlu0 %2690 }
 0x425   :  { %v2693_v13 = vsub.f32 %v2599_v4, %v2691_v11  ;;  %v5492_v4 = vld [vmem:[%s7006_s2 + $0x4] sm:$0xf] }
 0x427   :  { %2707 = vperm.xlu0 %5782, %v2693_v13  }
 0x42f   :  { %v2697_v14 = vpop.permute.xlu1 %2696 }
 0x430   :  { %v2703_v15 = vmul.f32 %v2697_v14, %v6330_v16  ;;  %v2704_v17 = vmul.f32 %v2697_v14, %v2590_v18  ;;  %v2699_v19 = vmul.f32 %v2697_v14, %v6302_v59  ;;  %v2700_v20 = vmul.f32 %v2697_v14, %v6306_v61 }
 0x431   :  { %v2701_v22 = vmul.f32 %v2697_v14, %v6316_v6  ;;  %v2702_v23 = vmul.f32 %v2697_v14, %v6320_v9 }
 0x4a6   :  { %v2708_v21 = vpop.permute.xlu0 %2707 }
 0x4a7   :  { %v2714_v24 = vadd.f32 %v2708_v21, %v2703_v15  ;;  %v2715_v25 = vadd.f32 %v2708_v21, %v2704_v17  ;;  %v2710_v26 = vadd.f32 %v2708_v21, %v2699_v19  ;;  %v2711_v27 = vadd.f32 %v2708_v21, %v2700_v20  ;;  %v2763_v20 = vld [vmem:[%s7006_s2] sm:$0xf] }
 0x4a8   :  { %v2712_v28 = vadd.f32 %v2708_v21, %v2701_v22  ;;  %v2713_v29 = vadd.f32 %v2708_v21, %v2702_v23 }
 0x4a9   :  { %v2720_v30 = vmax.f32 %v2714_v24, 0.0  ;;  %v2721_v31 = vmax.f32 %v2715_v25, 0.0  ;;  %v2716_v32 = vmax.f32 %v2710_v26, 0.0  ;;  %v2717_v16 = vmax.f32 %v2711_v27, 0.0 }
 0x4aa   :  { %v2718_v18 = vmax.f32 %v2712_v28, 0.0  ;;  %v2719_v33 = vmax.f32 %v2713_v29, 0.0 }
 0x4ab   :  { %v2726_v59 = vmul.f32 %v2720_v30, %v6322_v10  ;;  %v2727_v61 = vmul.f32 %v2721_v31, %v6326_v12  ;;  %v2722_v6 = vmul.f32 %v2716_v32, %v6298_v55  ;;  %v2723_v9 = vmul.f32 %v2717_v16, %v6300_v57  ;;  %v5511_v30 = vld [vmem:[%s7006_s2 + $0x8] sm:$0xf] }
 0x4ac   :  { %v2724_v34 = vmul.f32 %v2718_v18, %v6308_v62  ;;  %v2725_v35 = vmul.f32 %v2719_v33, %v6312_v1 }
 0x4ad   :  { %v2736_v36 = vcombine.low %v2726_v59, %v2727_v61  ;;  %v2734_v37 = vcombine.low %v2722_v6, %v2723_v9 }
 0x4ae   :  { %v2735_v38 = vcombine.low %v2724_v34, %v2725_v35 }
 0x4af   :  { %2741 = vrot.lane.b32.xlu0 %v2736_v36, %s5795_s23  ;;  %2737 = vrot.lane.b32.xlu1 %v2734_v37, %s5795_s23  ;;  %v5521_v36 = vld [vmem:[%s7006_s2 + $0xc] sm:$0xf] }
 0x4b3   :  { %2739 = vrot.lane.b32.xlu1 %v2735_v38, %s5795_s23  ;;  %s5839_s23 = smov 44  }
 0x521   :  { %v2738_v39 = vpop.permute.xlu1 %2737  ;;  %v2742_v41 = vpop.permute.xlu0 %2741 }
 0x522   :  { %v2743_v40 = vrot.slane %v2738_v39, 4  ;;  %v2745_v44 = vrot.slane %v2742_v41, 4 }
 0x524   :  { %v2747_v42 = vsel %vm2746_vm15, %v2743_v40, %v2738_v39 }
 0x525   :  { %v2740_v43 = vpop.permute.xlu1 %2739  ;;  %2758 = vst.msk [vmem:[#allocation2] sm:$0xff] %vm2757_vm1, %v2747_v42 }
 0x526   :  { %v2744_v45 = vrot.slane %v2740_v43, 4 }
 0x528   :  { %v2748_v46 = vsel %vm23_vm0, %v2743_v40, %v2744_v45  ;;  %v2750_v47 = vsel %vm23_vm0, %v2744_v45, %v2745_v44 }
 0x529   :  { %v6375_v48 = vsel %vm2746_vm15, %v2748_v46, %v2740_v43  ;;  %v2751_v49 = vsel %vm2746_vm15, %v2750_v47, %v2742_v41  ;;  %vm5265_vm15 = vcmask 818176  }
 0x52a   :  { %2759 = vst [vmem:[#allocation2 + $0x8] sm:$0xff] %v6375_v48  ;;  %2779 = vrot.lane.b32.xlu0 %v6375_v48, %s5826_s18  ;;  %2762 = vst.msk [vmem:[#allocation2 + $0x10] sm:$0xff] %vm2761_vm11, %v2751_v49  ;;  %v6384_v51 = vcombine.high %v6375_v48, %v6375_v48  ;;  %vm5348_vm11 = vcmask 326656  }
 0x52c   :  { %v6380_v50 = vld [vmem:[#allocation2] sm:$0xff] }
 0x52d   :  { %2775 = vrot.lane.b32.xlu1 %v6380_v50, %s5826_s18  ;;  %v6392_v52 = vcombine.high %v6380_v50, %v6380_v50 }
 0x52e   :  { %2781 = vrot.lane.b32.xlu0 %v6384_v51, %s5826_s18 }
 0x531   :  { %2777 = vrot.lane.b32.xlu1 %v6392_v52, %s5826_s18  ;;  %v6396_v53 = vld [vmem:[#allocation2 + $0x10] sm:$0xff] }
 0x532   :  { %v6400_v54 = vcombine.high %v6396_v53, %v6396_v53 }
 0x534   :  { %2785 = vrot.lane.b32.xlu0 %v6400_v54, %s5826_s18 }
 0x535   :  { %2783 = vrot.lane.b32.xlu1 %v6396_v53, %s5826_s18  ;;  %s5842_s18 = smov 124  }
 0x538   :  { %3263 = vrot.lane.b32.xlu0 %v6375_v48, %s5827_s19 }
 0x539   :  { %3261 = vrot.lane.b32.xlu1 %v6392_v52, %s5827_s19 }
 0x53c   :  { %3265 = vrot.lane.b32.xlu0 %v6384_v51, %s5827_s19 }
 0x53d   :  { %3259 = vrot.lane.b32.xlu1 %v6380_v50, %s5827_s19 }
 0x540   :  { %3269 = vrot.lane.b32.xlu0 %v6400_v54, %s5827_s19 }
 0x541   :  { %3267 = vrot.lane.b32.xlu1 %v6396_v53, %s5827_s19 }
 0x544   :  { %3525 = vrot.lane.b32.xlu0 %v6375_v48, %s5828_s20 }
 0x545   :  { %3523 = vrot.lane.b32.xlu1 %v6392_v52, %s5828_s20 }
 0x548   :  { %3527 = vrot.lane.b32.xlu0 %v6384_v51, %s5828_s20 }
 0x549   :  { %3521 = vrot.lane.b32.xlu1 %v6380_v50, %s5828_s20 }
 0x54c   :  { %3531 = vrot.lane.b32.xlu0 %v6400_v54, %s5828_s20 }
 0x54d   :  { %3529 = vrot.lane.b32.xlu1 %v6396_v53, %s5828_s20 }
 0x550   :  { %3787 = vrot.lane.b32.xlu0 %v6375_v48, %s5821_s30 }
 0x551   :  { %3785 = vrot.lane.b32.xlu1 %v6392_v52, %s5821_s30 }
 0x554   :  { %3789 = vrot.lane.b32.xlu0 %v6384_v51, %s5821_s30 }
 0x555   :  { %3783 = vrot.lane.b32.xlu1 %v6380_v50, %s5821_s30 }
 0x558   :  { %3793 = vrot.lane.b32.xlu0 %v6400_v54, %s5821_s30 }
 0x559   :  { %3791 = vrot.lane.b32.xlu1 %v6396_v53, %s5821_s30  ;;  %s5841_s30 = smov 42  }
 0x55c   :  { %4049 = vrot.lane.b32.xlu0 %v6375_v48, %s5829_s21 }
 0x55d   :  { %4047 = vrot.lane.b32.xlu1 %v6392_v52, %s5829_s21 }
 0x560   :  { %4051 = vrot.lane.b32.xlu0 %v6384_v51, %s5829_s21 }
 0x561   :  { %4045 = vrot.lane.b32.xlu1 %v6380_v50, %s5829_s21 }
 0x564   :  { %4055 = vrot.lane.b32.xlu0 %v6400_v54, %s5829_s21 }
 0x565   :  { %4053 = vrot.lane.b32.xlu1 %v6396_v53, %s5829_s21 }
 0x568   :  { %4311 = vrot.lane.b32.xlu0 %v6375_v48, %s5830_s24 }
 0x569   :  { %4309 = vrot.lane.b32.xlu1 %v6392_v52, %s5830_s24 }
 0x56c   :  { %4313 = vrot.lane.b32.xlu0 %v6384_v51, %s5830_s24 }
 0x56d   :  { %4307 = vrot.lane.b32.xlu1 %v6380_v50, %s5830_s24 }
 0x570   :  { %4317 = vrot.lane.b32.xlu0 %v6400_v54, %s5830_s24 }
 0x571   :  { %4315 = vrot.lane.b32.xlu1 %v6396_v53, %s5830_s24  ;;  %s5843_s24 = smov 56  }
 0x574   :  { %4573 = vrot.lane.b32.xlu0 %v6375_v48, %s5811_s22 }
 0x575   :  { %4571 = vrot.lane.b32.xlu1 %v6392_v52, %s5811_s22 }
 0x578   :  { %4575 = vrot.lane.b32.xlu0 %v6384_v51, %s5811_s22 }
 0x579   :  { %4569 = vrot.lane.b32.xlu1 %v6380_v50, %s5811_s22 }
 0x57c   :  { %4579 = vrot.lane.b32.xlu0 %v6400_v54, %s5811_s22 }
 0x57d   :  { %4577 = vrot.lane.b32.xlu1 %v6396_v53, %s5811_s22  ;;  %s5840_s22 = smov 58  }
 0x580   :  { %4835 = vrot.lane.b32.xlu0 %v6375_v48, %s5831_s25 }
 0x581   :  { %4833 = vrot.lane.b32.xlu1 %v6392_v52, %s5831_s25 }
 0x584   :  { %4837 = vrot.lane.b32.xlu0 %v6384_v51, %s5831_s25 }
 0x585   :  { %4831 = vrot.lane.b32.xlu1 %v6380_v50, %s5831_s25 }
 0x588   :  { %4841 = vrot.lane.b32.xlu0 %v6400_v54, %s5831_s25 }
 0x589   :  { %4839 = vrot.lane.b32.xlu1 %v6396_v53, %s5831_s25  ;;  %s5844_s25 = smov 122  }
 0x59c   :  { %v2780_v56 = vpop.permute.xlu0 %2779 }
 0x59f   :  { %v2776_v58 = vpop.permute.xlu1 %2775 }
 0x5a0   :  { %v2782_v60 = vpop.permute.xlu0 %2781 }
 0x5a1   :  { %v2789_v11 = vsel %vm296_vm3, %v2780_v56, %v2782_v60 }
 0x5a3   :  { %v2778_v63 = vpop.permute.xlu1 %2777 }
 0x5a4   :  { %v2788_v0 = vsel %vm296_vm3, %v2778_v63, %v2780_v56  ;;  %v2787_v3 = vsel %vm296_vm3, %v2776_v58, %v2778_v63 }
 0x5a5   :  { %5493 = vmatprep.subr.msk.mxu1 %vm23_vm0, %v2788_v0 }
 0x5a6   :  { %5494 = vmatpush1.msk.msra.mxu1 %vm23_vm0, %v2787_v3  ;;  %v2786_v5 = vpop.permute.xlu0 %2785  ;;  %v5541_v3 = vld [vmem:[%s7006_s2 + $0x14] sm:$0xf] }
 0x5a7   :  { %v2784_v7 = vpop.permute.xlu1 %2783  ;;  %5495 = vmatmul.mubr.msk.f32.vlgmr.msra.gmra.mrb[0].mxu1 %vm302_vm4, %v5492_v4 }
 0x5a8   :  { %v2790_v8 = vsel %vm296_vm3, %v2782_v60, %v2784_v7  ;;  %2942 = vmatprep.mubr.f32.mxu1 %v5793_v2  ;;  %v2791_v15 = vsel %vm296_vm3, %v2784_v7, %v2786_v5 }
 0x5a9   :  { %5496 = vmatprep.subr.msk.mxu1 %vm23_vm0, %v2790_v8 }
 0x5aa   :  { %5497 = vmatpush1.msk.msra.mxu1 %vm23_vm0, %v2789_v11  ;;  %v3264_v13 = vpop.permute.xlu0 %3263 }
 0x5ab   :  { %v3262_v14 = vpop.permute.xlu1 %3261  ;;  %5498 = vmatmul.mubr.msk.f32.vlgmr.msra.gmra.mrb[2].mxu1 %vm302_vm4, %v5492_v4  ;;  %5499 = vmatprep.subr.msk.mxu1 %vm23_vm0, %v2786_v5 }
 0x5ac   :  { %5500 = vmatpush1.msk.msra.mxu1 %vm23_vm0, %v2791_v15  ;;  %3013 = vmatprep.mubr.f32.mxu1 %v5793_v2  ;;  %v3272_v25 = vsel %vm782_vm5, %v3262_v14, %v3264_v13 }
 0x5ad   :  { %5502 = vmatprep.subr.msk.mxu1 %vm23_vm0, %v6392_v52 }
 0x5ae   :  { %v3266_v17 = vpop.permute.xlu0 %3265 }
 0x5af   :  { %v3260_v19 = vpop.permute.xlu1 %3259  ;;  %5501 = vmatmul.mubr.msk.f32.vlgmr.msra.gmra.mrb[4].mxu1 %vm302_vm4, %v5492_v4  ;;  %v3273_v32 = vsel %vm782_vm5, %v3264_v13, %v3266_v17 }
 0x5b0   :  { %5503 = vmatpush1.msk.msra.mxu1 %vm23_vm0, %v6380_v50  ;;  %3099 = vmatprep.mubr.f32.mxu1 %v5793_v2  ;;  %v3271_v27 = vsel %vm782_vm5, %v3260_v19, %v3262_v14 }
 0x5b1   :  { %5505 = vmatprep.subr.msk.mxu1 %vm23_vm0, %v6384_v51 }
 0x5b2   :  { %v3270_v21 = vpop.permute.xlu0 %3269 }
 0x5b3   :  { %v3268_v22 = vpop.permute.xlu1 %3267  ;;  %5504 = vmatmul.mubr.msk.f32.vlgmr.msra.gmra.mrb[0].mxu1 %vm302_vm4, %v2763_v20 }
 0x5b4   :  { %5506 = vmatpush1.msk.msra.mxu1 %vm23_vm0, %v6375_v48  ;;  %3170 = vmatprep.mubr.f32.mxu1 %v5793_v2  ;;  %v3274_v29 = vsel %vm782_vm5, %v3266_v17, %v3268_v22  ;;  %v3275_v33 = vsel %vm782_vm5, %v3268_v22, %v3270_v21  ;;  %v5531_v48 = vld [vmem:[%s7006_s2 + $0x10] sm:$0xf]  ;;  %vm5181_vm5 = vcmask 388352  }
 0x5b5   :  { %5508 = vmatprep.subr.msk.mxu1 %vm23_vm0, %v6400_v54 }
 0x5b6   :  { %v3526_v23 = vpop.permute.xlu0 %3525 }
 0x5b7   :  { %v3524_v24 = vpop.permute.xlu1 %3523  ;;  %5507 = vmatmul.mubr.msk.f32.vlgmr.msra.gmra.mrb[2].mxu1 %vm302_vm4, %v2763_v20 }
 0x5b8   :  { %5509 = vmatpush1.msk.msra.mxu1 %vm23_vm0, %v6396_v53  ;;  %3241 = vmatprep.mubr.f32.mxu1 %v5793_v2  ;;  %v3534_v61 = vsel %vm1045_vm6, %v3524_v24, %v3526_v23 }
 0x5b9   :  { %5512 = vmatprep.subr.msk.mxu1 %vm23_vm0, %v3272_v25 }
 0x5ba   :  { %v3528_v26 = vpop.permute.xlu0 %3527 }
 0x5bb   :  { %v3522_v28 = vpop.permute.xlu1 %3521  ;;  %5510 = vmatmul.mubr.msk.f32.vlgmr.msra.gmra.mrb[4].mxu1 %vm302_vm4, %v2763_v20  ;;  %v3535_v38 = vsel %vm1045_vm6, %v3526_v23, %v3528_v26  ;;  %v5551_v20 = vld [vmem:[%s7006_s2 + $0x18] sm:$0xf] }
 0x5bc   :  { %5513 = vmatpush1.msk.msra.mxu1 %vm23_vm0, %v3271_v27  ;;  %3355 = vmatprep.mubr.f32.mxu1 %v5793_v2  ;;  %v3533_v9 = vsel %vm1045_vm6, %v3522_v28, %v3524_v24 }
 0x5bd   :  { %5515 = vmatprep.subr.msk.mxu1 %vm23_vm0, %v3274_v29 }
 0x5be   :  { %v3532_v31 = vpop.permute.xlu0 %3531 }
 0x5bf   :  { %v3530_v16 = vpop.permute.xlu1 %3529  ;;  %5514 = vmatmul.mubr.msk.f32.vlgmr.msra.gmra.mrb[0].mxu1 %vm302_vm4, %v5511_v30 }
 0x5c0   :  { %5516 = vmatpush1.msk.msra.mxu1 %vm23_vm0, %v3273_v32  ;;  %3426 = vmatprep.mubr.f32.mxu1 %v5793_v2  ;;  %v3536_v35 = vsel %vm1045_vm6, %v3528_v26, %v3530_v16  ;;  %v3537_v41 = vsel %vm1045_vm6, %v3530_v16, %v3532_v31  ;;  %vm5188_vm6 = vcmask 519552  }
 0x5c1   :  { %5518 = vmatprep.subr.msk.mxu1 %vm23_vm0, %v3270_v21 }
 0x5c2   :  { %v3788_v18 = vpop.permute.xlu0 %3787 }
 0x5c3   :  { %v3786_v59 = vpop.permute.xlu1 %3785  ;;  %5517 = vmatmul.mubr.msk.f32.vlgmr.msra.gmra.mrb[2].mxu1 %vm302_vm4, %v5511_v30 }
 0x5c4   :  { %5519 = vmatpush1.msk.msra.mxu1 %vm23_vm0, %v3275_v33  ;;  %3497 = vmatprep.mubr.f32.mxu1 %v5793_v2  ;;  %v3796_v43 = vsel %vm1308_vm7, %v3786_v59, %v3788_v18 }
 0x5c5   :  { %5522 = vmatprep.subr.msk.mxu1 %vm23_vm0, %v3534_v61 }
 0x5c6   :  { %v3790_v6 = vpop.permute.xlu0 %3789 }
 0x5c7   :  { %v3784_v34 = vpop.permute.xlu1 %3783  ;;  %5520 = vmatmul.mubr.msk.f32.vlgmr.msra.gmra.mrb[4].mxu1 %vm302_vm4, %v5511_v30  ;;  %v3797_v50 = vsel %vm1308_vm7, %v3788_v18, %v3790_v6  ;;  %v5561_v30 = vld [vmem:[%s7006_s2 + $0x1c] sm:$0xf] }
 0x5c8   :  { %5523 = vmatpush1.msk.msra.mxu1 %vm23_vm0, %v3533_v9  ;;  %3617 = vmatprep.mubr.f32.mxu1 %v5793_v2  ;;  %v3795_v45 = vsel %vm1308_vm7, %v3784_v34, %v3786_v59  ;;  %v5571_v34 = vld [vmem:[%s7006_s2 + $0x20] sm:$0xf]  ;;  %s5860_s2 = smov 40  }
 0x5c9   :  { %5525 = vmatprep.subr.msk.mxu1 %vm23_vm0, %v3536_v35 }
 0x5ca   :  { %v3794_v37 = vpop.permute.xlu0 %3793 }
 0x5cb   :  { %v3792_v39 = vpop.permute.xlu1 %3791  ;;  %5524 = vmatmul.mubr.msk.f32.vlgmr.msra.gmra.mrb[0].mxu1 %vm302_vm4, %v5521_v36 }
 0x5cc   :  { %5526 = vmatpush1.msk.msra.mxu1 %vm23_vm0, %v3535_v38  ;;  %3688 = vmatprep.mubr.f32.mxu1 %v5793_v2  ;;  %v3798_v47 = vsel %vm1308_vm7, %v3790_v6, %v3792_v39  ;;  %v3799_v53 = vsel %vm1308_vm7, %v3792_v39, %v3794_v37  ;;  %vm5195_vm7 = vcmask 650752  }
 0x5cd   :  { %5528 = vmatprep.subr.msk.mxu1 %vm23_vm0, %v3532_v31 }
 0x5ce   :  { %v4050_v40 = vpop.permute.xlu0 %4049 }
 0x5cf   :  { %v4048_v42 = vpop.permute.xlu1 %4047  ;;  %5527 = vmatmul.mubr.msk.f32.vlgmr.msra.gmra.mrb[2].mxu1 %vm302_vm4, %v5521_v36 }
 0x5d0   :  { %5529 = vmatpush1.msk.msra.mxu1 %vm23_vm0, %v3537_v41  ;;  %3759 = vmatprep.mubr.f32.mxu1 %v5793_v2  ;;  %v4058_v56 = vsel %vm1571_vm8, %v4048_v42, %v4050_v40 }
 0x5d1   :  { %5532 = vmatprep.subr.msk.mxu1 %vm23_vm0, %v3796_v43 }
 0x5d2   :  { %v4052_v44 = vpop.permute.xlu0 %4051 }
 0x5d3   :  { %v4046_v46 = vpop.permute.xlu1 %4045  ;;  %5530 = vmatmul.mubr.msk.f32.vlgmr.msra.gmra.mrb[4].mxu1 %vm302_vm4, %v5521_v36  ;;  %v4059_v4 = vsel %vm1571_vm8, %v4050_v40, %v4052_v44 }
 0x5d4   :  { %5533 = vmatpush1.msk.msra.mxu1 %vm23_vm0, %v3795_v45  ;;  %3879 = vmatprep.mubr.f32.mxu1 %v5793_v2  ;;  %v4057_v60 = vsel %vm1571_vm8, %v4046_v46, %v4048_v42 }
 0x5d5   :  { %5535 = vmatprep.subr.msk.mxu1 %vm23_vm0, %v3798_v47 }
 0x5d6   :  { %v4056_v49 = vpop.permute.xlu0 %4055 }
 0x5d7   :  { %v4054_v51 = vpop.permute.xlu1 %4053  ;;  %5534 = vmatmul.mubr.msk.f32.vlgmr.msra.gmra.mrb[0].mxu1 %vm302_vm4, %v5531_v48 }
 0x5d8   :  { %5536 = vmatpush1.msk.msra.mxu1 %vm23_vm0, %v3797_v50  ;;  %3950 = vmatprep.mubr.f32.mxu1 %v5793_v2  ;;  %v4060_v0 = vsel %vm1571_vm8, %v4052_v44, %v4054_v51  ;;  %v4061_v8 = vsel %vm1571_vm8, %v4054_v51, %v4056_v49  ;;  %vm5202_vm8 = vcmask 781952  }
 0x5d9   :  { %5538 = vmatprep.subr.msk.mxu1 %vm23_vm0, %v3794_v37 }
 0x5da   :  { %v4312_v52 = vpop.permute.xlu0 %4311 }
 0x5db   :  { %v4310_v54 = vpop.permute.xlu1 %4309  ;;  %5537 = vmatmul.mubr.msk.f32.vlgmr.msra.gmra.mrb[2].mxu1 %vm302_vm4, %v5531_v48 }
 0x5dc   :  { %5539 = vmatpush1.msk.msra.mxu1 %vm23_vm0, %v3799_v53  ;;  %4021 = vmatprep.mubr.f32.mxu1 %v5793_v2  ;;  %v4320_v13 = vsel %vm1834_vm9, %v4310_v54, %v4312_v52 }
 0x5dd   :  { %5542 = vmatprep.subr.msk.mxu1 %vm23_vm0, %v4058_v56 }
 0x5de   :  { %v4314_v58 = vpop.permute.xlu0 %4313 }
 0x5df   :  { %v4308_v63 = vpop.permute.xlu1 %4307  ;;  %5540 = vmatmul.mubr.msk.f32.vlgmr.msra.gmra.mrb[4].mxu1 %vm302_vm4, %v5531_v48  ;;  %v4321_v21 = vsel %vm1834_vm9, %v4312_v52, %v4314_v58 }
 0x5e0   :  { %5543 = vmatpush1.msk.msra.mxu1 %vm23_vm0, %v4057_v60  ;;  %4141 = vmatprep.mubr.f32.mxu1 %v5793_v2  ;;  %v4319_v15 = vsel %vm1834_vm9, %v4308_v63, %v4310_v54 }
 0x5e1   :  { %5545 = vmatprep.subr.msk.mxu1 %vm23_vm0, %v4060_v0 }
 0x5e2   :  { %v4318_v7 = vpop.permute.xlu0 %4317 }
 0x5e3   :  { %v4316_v5 = vpop.permute.xlu1 %4315  ;;  %5544 = vmatmul.mubr.msk.f32.vlgmr.msra.gmra.mrb[0].mxu1 %vm302_vm4, %v5541_v3 }
 0x5e4   :  { %5546 = vmatpush1.msk.msra.mxu1 %vm23_vm0, %v4059_v4  ;;  %4212 = vmatprep.mubr.f32.mxu1 %v5793_v2  ;;  %v4322_v19 = vsel %vm1834_vm9, %v4314_v58, %v4316_v5  ;;  %v4323_v24 = vsel %vm1834_vm9, %v4316_v5, %v4318_v7  ;;  %vm5209_vm9 = vcmask 913152  }
 0x5e5   :  { %5548 = vmatprep.subr.msk.mxu1 %vm23_vm0, %v4056_v49 }
 0x5e6   :  { %v4574_v14 = vpop.permute.xlu0 %4573 }
 0x5e7   :  { %v4572_v11 = vpop.permute.xlu1 %4571  ;;  %5547 = vmatmul.mubr.msk.f32.vlgmr.msra.gmra.mrb[2].mxu1 %vm302_vm4, %v5541_v3 }
 0x5e8   :  { %5549 = vmatpush1.msk.msra.mxu1 %vm23_vm0, %v4061_v8  ;;  %4283 = vmatprep.mubr.f32.mxu1 %v5793_v2  ;;  %v4582_v25 = vsel %vm169_vm13, %v4572_v11, %v4574_v14 }
 0x5e9   :  { %5552 = vmatprep.subr.msk.mxu1 %vm23_vm0, %v4320_v13 }
 0x5ea   :  { %v4576_v23 = vpop.permute.xlu0 %4575 }
 0x5eb   :  { %v4570_v17 = vpop.permute.xlu1 %4569  ;;  %5550 = vmatmul.mubr.msk.f32.vlgmr.msra.gmra.mrb[4].mxu1 %vm302_vm4, %v5541_v3  ;;  %v4583_v31 = vsel %vm169_vm13, %v4574_v14, %v4576_v23 }
 0x5ec   :  { %5553 = vmatpush1.msk.msra.mxu1 %vm23_vm0, %v4319_v15  ;;  %4403 = vmatprep.mubr.f32.mxu1 %v5793_v2  ;;  %v4581_v28 = vsel %vm169_vm13, %v4570_v17, %v4572_v11 }
 0x5ed   :  { %5555 = vmatprep.subr.msk.mxu1 %vm23_vm0, %v4322_v19 }
 0x5ee   :  { %v4580_v27 = vpop.permute.xlu0 %4579 }
 0x5ef   :  { %v4578_v22 = vpop.permute.xlu1 %4577  ;;  %5554 = vmatmul.mubr.msk.f32.vlgmr.msra.gmra.mrb[0].mxu1 %vm302_vm4, %v5551_v20 }
 0x5f0   :  { %5556 = vmatpush1.msk.msra.mxu1 %vm23_vm0, %v4321_v21  ;;  %4474 = vmatprep.mubr.f32.mxu1 %v5793_v2  ;;  %v4584_v29 = vsel %vm169_vm13, %v4576_v23, %v4578_v22  ;;  %v4585_v18 = vsel %vm169_vm13, %v4578_v22, %v4580_v27  ;;  %vm7009_vm13 = vcmask 60416  }
 0x5f1   :  { %5558 = vmatprep.subr.msk.mxu1 %vm23_vm0, %v4318_v7  ;;  %vm7010_vm3 = vmmov %vm7009_vm13 }
 0x5f2   :  { %v4836_v16 = vpop.permute.xlu0 %4835 }
 0x5f3   :  { %5557 = vmatmul.mubr.msk.f32.vlgmr.msra.gmra.mrb[2].mxu1 %vm302_vm4, %v5551_v20  ;;  %v4834_v26 = vpop.permute.xlu1 %4833 }
 0x5f4   :  { %5559 = vmatpush1.msk.msra.mxu1 %vm23_vm0, %v4323_v24  ;;  %4545 = vmatprep.mubr.f32.mxu1 %v5793_v2  ;;  %v4844_v33 = vsel %vm2359_vm10, %v4834_v26, %v4836_v16 }
 0x5f5   :  { %5562 = vmatprep.subr.msk.mxu1 %vm23_vm0, %v4582_v25 }
 0x5f6   :  { %v4838_v61 = vpop.permute.xlu0 %4837 }
 0x5f7   :  { %5560 = vmatmul.mubr.msk.f32.vlgmr.msra.gmra.mrb[4].mxu1 %vm302_vm4, %v5551_v20  ;;  %v4832_v32 = vpop.permute.xlu1 %4831  ;;  %v4845_v35 = vsel %vm2359_vm10, %v4836_v16, %v4838_v61 }
 0x5f8   :  { %5563 = vmatpush1.msk.msra.mxu1 %vm23_vm0, %v4581_v28  ;;  %4665 = vmatprep.mubr.f32.mxu1 %v5793_v2  ;;  %v4843_v6 = vsel %vm2359_vm10, %v4832_v32, %v4834_v26 }
 0x5f9   :  { %5565 = vmatprep.subr.msk.mxu1 %vm23_vm0, %v4584_v29 }
 0x5fa   :  { %v4842_v36 = vpop.permute.xlu0 %4841 }
 0x5fb   :  { %5564 = vmatmul.mubr.msk.f32.vlgmr.msra.gmra.mrb[0].mxu1 %vm302_vm4, %v5561_v30  ;;  %v4840_v59 = vpop.permute.xlu1 %4839 }
 0x5fc   :  { %5566 = vmatpush1.msk.msra.mxu1 %vm23_vm0, %v4583_v31  ;;  %4736 = vmatprep.mubr.f32.mxu1 %v5793_v2  ;;  %v4846_v9 = vsel %vm2359_vm10, %v4838_v61, %v4840_v59  ;;  %v4847_v37 = vsel %vm2359_vm10, %v4840_v59, %v4842_v36  ;;  %vm5301_vm10 = vcmask 441344  }
 0x5fd   :  { %5568 = vmatprep.subr.msk.mxu1 %vm23_vm0, %v4580_v27 }
 0x5ff   :  { %5567 = vmatmul.mubr.msk.f32.vlgmr.msra.gmra.mrb[2].mxu1 %vm302_vm4, %v5561_v30 }
 0x600   :  { %5569 = vmatpush1.msk.msra.mxu1 %vm23_vm0, %v4585_v18  ;;  %4807 = vmatprep.mubr.f32.mxu1 %v5793_v2  ;;  %v5835_v18 = vmov 2  }
 0x601   :  { %5572 = vmatprep.subr.msk.mxu1 %vm23_vm0, %v4844_v33  ;;  %5783 = vset.pattern.permute.xlu1 %v5835_v18 }
 0x603   :  { %5570 = vmatmul.mubr.msk.f32.vlgmr.msra.gmra.mrb[4].mxu1 %vm302_vm4, %v5561_v30 }
 0x604   :  { %5573 = vmatpush1.msk.msra.mxu1 %vm23_vm0, %v4843_v6  ;;  %4927 = vmatprep.mubr.f32.mxu1 %v5793_v2  ;;  %v5836_v6 = vmov 3  }
 0x605   :  { %5575 = vmatprep.subr.msk.mxu1 %vm23_vm0, %v4846_v9  ;;  %5785 = vset.pattern.permute.xlu0 %v5836_v6  ;;  %v5082_v9 = vld [vmem:[%s7005_s3] sm:$0xf]  ;;  %s5862_s3 = smov 100  }
 0x607   :  { %5574 = vmatmul.mubr.msk.f32.vlgmr.msra.gmra.mrb[0].mxu1 %vm302_vm4, %v5571_v34 }
 0x608   :  { %5576 = vmatpush1.msk.msra.mxu1 %vm23_vm0, %v4845_v35  ;;  %4998 = vmatprep.mubr.f32.mxu1 %v5793_v2 }
 0x609   :  { %5578 = vmatprep.subr.msk.mxu1 %vm23_vm0, %v4842_v36 }
 0x60b   :  { %5577 = vmatmul.mubr.msk.f32.vlgmr.msra.gmra.mrb[2].mxu1 %vm302_vm4, %v5571_v34 }
 0x60c   :  { %5579 = vmatpush1.msk.msra.mxu1 %vm23_vm0, %v4847_v37  ;;  %5069 = vmatprep.mubr.f32.mxu1 %v5793_v2 }
 0x60f   :  { %5580 = vmatmul.mubr.msk.f32.vlgmr.msra.gmra.mrb[4].mxu1 %vm302_vm4, %v5571_v34  ;;  %vm5174_vm4 = vcmask 257152  }
 0x6da   :  { %v6670_v38 = vpop.f32.mrb[0].mxu1 }
 0x6db   :  { %v5083_v39 = vmul.f32 %v6670_v38, %v6298_v55  ;;  %v6674_v40 = vpop.f32.mrb[1].mxu1 }
 0x6dc   :  { %v5084_v41 = vmul.f32 %v6674_v40, %v6300_v57 }
 0x6dd   :  { %v5089_v42 = vsel %vm23_vm0, %v5083_v39, 0.0 }
 0x6de   :  { %v5090_v43 = vsel %vm23_vm0, %v5084_v41, 0.0  ;;  %v6680_v44 = vpop.f32.mrb[2].mxu1 }
 0x6df   :  { %v5091_v45 = vadd.f32 %v5090_v43, %v5089_v42  ;;  %v5085_v2 = vmul.f32 %v6680_v44, %v6308_v62  ;;  %v6684_v46 = vpop.f32.mrb[3].mxu1 }
 0x6e0   :  { %v5086_v47 = vmul.f32 %v6684_v46, %v6312_v1 }
 0x6e1   :  { %v5092_v48 = vsel %vm23_vm0, %v5085_v2, 0.0 }
 0x6e2   :  { %v5093_v49 = vadd.f32 %v5092_v48, %v5091_v45  ;;  %v5094_v50 = vsel %vm23_vm0, %v5086_v47, 0.0  ;;  %v6690_v51 = vpop.f32.mrb[4].mxu1 }
 0x6e3   :  { %v5087_v52 = vmul.f32 %v6690_v51, %v6322_v10  ;;  %v5073_v53 = vpop.f32.mrb[5].mxu1 }
 0x6e4   :  { %v5095_v54 = vadd.f32 %v5094_v50, %v5093_v49  ;;  %v5088_v56 = vmul.f32 %v5073_v53, %v6326_v12 }
 0x6e5   :  { %v5096_v58 = vsel %vm23_vm0, %v5087_v52, 0.0 }
 0x6e6   :  { %v5097_v60 = vadd.f32 %v5096_v58, %v5095_v54  ;;  %v5098_v63 = vsel %vm7009_vm13, %v5088_v56, 0.0  ;;  %v5581_v58 = vld [vmem:[%s7002_s0 + $0x8] sm:$0xf] }
 0x6e8   :  { %v5099_v0 = vadd.f32 %v5098_v63, %v5097_v60  ;;  %v5223_v60 = vld [vmem:[%s7002_s0 + $0x4] sm:$0xf] }
 0x6ea   :  { %5100 = vadd.xlane.f32.xlu1 %v5099_v0 }
 0x777   :  { %v5101_v3 = vpop.xlane.xlu1 %5100 }
 0x778   :  { %v5102_v4 = vmul.f32 0.001953125, %v5101_v3 }
 0x77a   :  { %v5103_v5 = vsub.f32 %v6670_v38, %v5102_v4  ;;  %v5104_v7 = vsub.f32 %v6674_v40, %v5102_v4  ;;  %v5105_v8 = vsub.f32 %v6680_v44, %v5102_v4  ;;  %v5106_v11 = vsub.f32 %v6684_v46, %v5102_v4 }
 0x77b   :  { %v5107_v13 = vsub.f32 %v6690_v51, %v5102_v4  ;;  %v5108_v14 = vsub.f32 %v5073_v53, %v5102_v4 }
 0x77c   :  { %v5109_v15 = vmul.f32 %v5103_v5, %v6298_v55  ;;  %v5110_v17 = vmul.f32 %v5104_v7, %v6300_v57  ;;  %v5111_v19 = vmul.f32 %v5105_v8, %v6308_v62  ;;  %v5112_v20 = vmul.f32 %v5106_v11, %v6312_v1  ;;  %v5597_v5 = vld [vmem:[%s7002_s0 + $0xc] sm:$0xf]  ;;  %v5168_v7 = vld [vmem:[%s7002_s0] sm:$0xf] }
 0x77d   :  { %v5113_v21 = vmul.f32 %v5107_v13, %v6322_v10  ;;  %v5114_v25 = vmul.f32 %v5108_v14, %v6326_v12 }
 0x77e   :  { %v5115_v22 = vmul.f32 %v5109_v15, %v5109_v15  ;;  %v5116_v23 = vmul.f32 %v5110_v17, %v5110_v17  ;;  %v5117_v24 = vmul.f32 %v5111_v19, %v5111_v19  ;;  %v5118_v26 = vmul.f32 %v5112_v20, %v5112_v20  ;;  %v5229_v15 = vld [vmem:[%s7002_s0 + $0x4] sm:$0xf]  ;;  %v5583_v17 = vld [vmem:[%s7002_s0 + $0x8] sm:$0xf] }
 0x77f   :  { %v5119_v55 = vmul.f32 %v5113_v21, %v5113_v21  ;;  %v5120_v62 = vmul.f32 %v5114_v25, %v5114_v25 }
 0x780   :  { %v5121_v27 = vsel %vm23_vm0, %v5115_v22, 0.0  ;;  %v5122_v28 = vsel %vm23_vm0, %v5116_v23, 0.0  ;;  %v5124_v57 = vsel %vm23_vm0, %v5117_v24, 0.0  ;;  %v5126_v1 = vsel %vm23_vm0, %v5118_v26, 0.0  ;;  %v5599_v23 = vld [vmem:[%s7002_s0 + $0xc] sm:$0xf] }
 0x781   :  { %v5123_v29 = vadd.f32 %v5122_v28, %v5121_v27  ;;  %v5128_v10 = vsel %vm23_vm0, %v5119_v55, 0.0  ;;  %v5130_v16 = vsel %vm7010_vm3, %v5120_v62, 0.0  ;;  %vm5166_vm0 = vcmask 125952   ;;  %v5176_v24 = vld [vmem:[%s7002_s0] sm:$0xf] }
 0x782   :  { %v5585_v55 = vld [vmem:[%s7002_s0 + $0x8] sm:$0xf] }
 0x783   :  { %v5125_v30 = vadd.f32 %v5124_v57, %v5123_v29  ;;  %v5235_v29 = vld [vmem:[%s7002_s0 + $0x4] sm:$0xf] }
 0x785   :  { %v5127_v31 = vadd.f32 %v5126_v1, %v5125_v30 }
 0x787   :  { %v5129_v32 = vadd.f32 %v5128_v10, %v5127_v31  ;;  %v5183_v31 = vld [vmem:[%s7002_s0] sm:$0xf]  ;;  %v5241_v10 = vld [vmem:[%s7002_s0 + $0x4] sm:$0xf] }
 0x789   :  { %v5131_v12 = vadd.f32 %v5130_v16, %v5129_v32 }
 0x78b   :  { %5132 = vadd.xlane.f32.xlu0 %v5131_v12 }
 0x818   :  { %v5133_v33 = vpop.xlane.xlu0 %5132 }
 0x819   :  { %v5134_v59 = vmul.f32 0.001953125, %v5133_v33  ;;  %v5190_v33 = vld [vmem:[%s7002_s0] sm:$0xf] }
 0x81b   :  { %v5135_v61 = vadd.f32 1e-05, %v5134_v59 }
 0x81d   :  { %5791 = vrsqrt.f32 %v5135_v61 }
 0x827   :  { %v5792_v34 = vpop.eup %5791 }
 0x828   :  { %v5137_v35 = vmul.f32 %v5792_v34, %v5082_v9 }
 0x82a   :  { %5146 = vperm.xlu1 %5783, %v5137_v35   ;;  %v5138_v36 = vmul.f32 %v5137_v35, %v5102_v4 }
 0x82c   :  { %5140 = vrot.lane.b32.xlu0 %v5138_v36, %s5834_s6 }
 0x82e   :  { %5784 = vset.pattern.permute.xlu1 %v5836_v6 }
 0x89e   :  { %v5141_v37 = vpop.permute.xlu0 %5140 }
 0x89f   :  { %v5143_v39 = vsub.f32 %v5082_v9, %v5141_v37  ;;  %v5247_v9 = vld [vmem:[%s7002_s0 + $0x4] sm:$0xf]  ;;  %v5197_v37 = vld [vmem:[%s7002_s0] sm:$0xf] }
 0x8a1   :  { %5156 = vperm.xlu1 %5784, %v5143_v39  }
 0x8a9   :  { %v5147_v41 = vpop.permute.xlu1 %5146 }
 0x8aa   :  { %v5149_v42 = vmul.f32 %v5147_v41, %v6670_v38  ;;  %v5150_v43 = vmul.f32 %v5147_v41, %v6674_v40  ;;  %v5151_v45 = vmul.f32 %v5147_v41, %v6680_v44  ;;  %v5152_v2 = vmul.f32 %v5147_v41, %v6684_v46  ;;  %v5164_v38 = vld [vmem:[%s7002_s0] sm:$0xf] }
 0x8ab   :  { %v5153_v47 = vmul.f32 %v5147_v41, %v6690_v51 }
 0x920   :  { %v5157_v48 = vpop.permute.xlu1 %5156 }
 0x921   :  { %v6723_v49 = vadd.f32 %v5157_v48, %v5149_v42  ;;  %v6725_v50 = vadd.f32 %v5157_v48, %v5150_v43  ;;  %v6727_v52 = vadd.f32 %v5157_v48, %v5151_v45  ;;  %v6729_v53 = vadd.f32 %v5157_v48, %v5152_v2  ;;  %v5253_v43 = vld [vmem:[%s7002_s0 + $0x4] sm:$0xf] }
 0x922   :  { %v6734_v40 = vadd.f32 %v5157_v48, %v5153_v47  ;;  %v5204_v48 = vld [vmem:[%s7002_s0] sm:$0xf] }
 0x923   :  { %5277 = vrot.lane.b32.xlu0 %v6727_v52, %s5837_s28  ;;  %5224 = vrot.lane.b32.xlu1 %v6725_v50, %s5838_s4  ;;  %v5297_v44 = vcombine.low %v6727_v52, %v6729_v53  ;;  %v5213_v46 = vcombine.low %v6723_v49, %v6725_v50  ;;  %v5261_v51 = vcombine.low %v6725_v50, %v6727_v52  ;;  %s5864_s28 = smov 30  }
 0x924   :  { %v5344_v54 = vcombine.low %v6729_v53, %v6734_v40  ;;  %v5165_v56 = vadd.f32 %v5164_v38, %v6723_v49 }
 0x926   :  { %5167 = vst.msk [vmem:[%s7007_s5] sm:$0xf] %vm5166_vm0, %v5165_v56  ;;  %v5591_v56 = vld [vmem:[%s7002_s0 + $0x8] sm:$0xf] }
 0x927   :  { %5331 = vrot.lane.b32.xlu0 %v6729_v53, %s5839_s23  ;;  %5170 = vrot.lane.b32.xlu1 %v6723_v49, %s5827_s19  ;;  %s5845_s19 = smov 106  }
 0x92b   :  { %5230 = vrot.lane.b32.xlu0 %v6725_v50, %s5828_s20  ;;  %5284 = vrot.lane.b32.xlu1 %v6727_v52, %s5840_s22  ;;  %s5846_s20 = smov 120  }
 0x92f   :  { %5337 = vrot.lane.b32.xlu0 %v6729_v53, %s5841_s30  ;;  %5177 = vrot.lane.b32.xlu1 %v6723_v49, %s5842_s18 }
 0x933   :  { %5236 = vrot.lane.b32.xlu0 %v6725_v50, %s5829_s21  ;;  %5290 = vrot.lane.b32.xlu1 %v6727_v52, %s5843_s24  ;;  %s5850_s21 = smov 36  }
 0x937   :  { %5184 = vrot.lane.b32.xlu0 %v6723_v49, %s5844_s25  ;;  %5242 = vrot.lane.b32.xlu1 %v6725_v50, %s5845_s19 }
 0x93b   :  { %5191 = vrot.lane.b32.xlu0 %v6723_v49, %s5846_s20  ;;  %5354 = vrot.lane.b32.xlu1 %v6734_v40, %s5847_s7 }
 0x93f   :  { %5248 = vrot.lane.b32.xlu0 %v6725_v50, %s5848_s8  ;;  %5307 = vrot.lane.b32.xlu1 %v6729_v53, %s5849_s9 }
 0x943   :  { %5360 = vrot.lane.b32.xlu0 %v6734_v40, %s5850_s21  ;;  %5198 = vrot.lane.b32.xlu1 %v6723_v49, %s5851_s10 }
 0x947   :  { %5254 = vrot.lane.b32.xlu0 %v6725_v50, %s5852_s11  ;;  %5313 = vrot.lane.b32.xlu1 %v6729_v53, %s5853_s12 }
 0x94b   :  { %5366 = vrot.lane.b32.xlu0 %v6734_v40, %s5854_s13  ;;  %5205 = vrot.lane.b32.xlu1 %v6723_v49, %s5855_s14 }
 0x94f   :  { %5319 = vrot.lane.b32.xlu0 %v6729_v53, %s5856_s15  ;;  %5372 = vrot.lane.b32.xlu1 %v6734_v40, %s5857_s16 }
 0x953   :  { %5271 = vrot.lane.b32.xlu0 %v6727_v52, %s5858_s17  ;;  %5298 = vrot.lane.b32.xlu1 %v5297_v44, %s5859_s26 }
 0x957   :  { %5345 = vrot.lane.b32.xlu0 %v5344_v54, %s5860_s2  ;;  %5214 = vrot.lane.b32.xlu1 %v5213_v46, %s5861_s27  ;;  %v5587_v46 = vld [vmem:[%s7002_s0 + $0x8] sm:$0xf] }
 0x958   :  { %v5589_v54 = vld [vmem:[%s7002_s0 + $0x8] sm:$0xf] }
 0x95b   :  { %5262 = vrot.lane.b32.xlu0 %v5261_v51, %s5862_s3  ;;  %5325 = vrot.lane.b32.xlu1 %v6729_v53, %s5863_s1 }
 0x95f   :  { %5378 = vrot.lane.b32.xlu0 %v6734_v40, %s5864_s28 }
 0x995   :  { %v5278_v63 = vpop.permute.xlu0 %5277  ;;  %v5225_v0 = vpop.permute.xlu1 %5224 }
 0x996   :  { %v5280_v3 = vadd.f32 %v5581_v58, %v5278_v63  ;;  %v5227_v4 = vadd.f32 %v5225_v0, %v5223_v60  ;;  %v5593_v60 = vld [vmem:[%s7002_s0 + $0x8] sm:$0xf] }
 0x998   :  { %5582 = vst.msk [vmem:[%s7007_s5 + $0x8] sm:$0xf] %vm5166_vm0, %v5280_v3  ;;  %5228 = vst.msk [vmem:[%s7007_s5 + $0x4] sm:$0xf] %vm5166_vm0, %v5227_v4 }
 0x999   :  { %v5332_v8 = vpop.permute.xlu0 %5331  ;;  %v5171_v11 = vpop.permute.xlu1 %5170 }
 0x99a   :  { %v5334_v13 = vadd.f32 %v5597_v5, %v5332_v8  ;;  %v5173_v14 = vadd.f32 %v5171_v11, %v5168_v7  ;;  %v5601_v5 = vld [vmem:[%s7002_s0 + $0xc] sm:$0xf]  ;;  %v5211_v8 = vld [vmem:[%s7002_s0] sm:$0xf] }
 0x99c   :  { %5598 = vst.msk [vmem:[%s7007_s5 + $0xc] sm:$0xf] %vm5166_vm0, %v5334_v13  ;;  %v5603_v13 = vld [vmem:[%s7002_s0 + $0xc] sm:$0xf] }
 0x99d   :  { %5175 = vst.msk [vmem:[%s7007_s5] sm:$0xf] %vm5174_vm4, %v5173_v14  ;;  %v5231_v19 = vpop.permute.xlu0 %5230  ;;  %v5285_v20 = vpop.permute.xlu1 %5284 }
 0x99e   :  { %v5233_v21 = vadd.f32 %v5231_v19, %v5229_v15  ;;  %v5287_v22 = vadd.f32 %v5583_v17, %v5285_v20  ;;  %v5595_v15 = vld [vmem:[%s7002_s0 + $0x8] sm:$0xf]  ;;  %v5605_v17 = vld [vmem:[%s7002_s0 + $0xc] sm:$0xf] }
 0x9a0   :  { %5234 = vst.msk [vmem:[%s7007_s5 + $0x4] sm:$0xf] %vm5174_vm4, %v5233_v21  ;;  %5584 = vst.msk [vmem:[%s7007_s5 + $0x8] sm:$0xf] %vm5174_vm4, %v5287_v22  ;;  %v5607_v22 = vld [vmem:[%s7002_s0 + $0xc] sm:$0xf] }
 0x9a1   :  { %v5338_v25 = vpop.permute.xlu0 %5337  ;;  %v5178_v26 = vpop.permute.xlu1 %5177 }
 0x9a2   :  { %v5340_v27 = vadd.f32 %v5599_v23, %v5338_v25  ;;  %v5180_v28 = vadd.f32 %v5178_v26, %v5176_v24 }
 0x9a4   :  { %5600 = vst.msk [vmem:[%s7007_s5 + $0xc] sm:$0xf] %vm5174_vm4, %v5340_v27 }
 0x9a5   :  { %5182 = vst.msk [vmem:[%s7007_s5] sm:$0xf] %vm5181_vm5, %v5180_v28  ;;  %v5237_v57 = vpop.permute.xlu0 %5236  ;;  %v5291_v30 = vpop.permute.xlu1 %5290  ;;  %v5609_v28 = vld [vmem:[%s7002_s0 + $0xc] sm:$0xf] }
 0x9a6   :  { %v5239_v62 = vadd.f32 %v5237_v57, %v5235_v29  ;;  %v5293_v1 = vadd.f32 %v5585_v55, %v5291_v30  ;;  %v5259_v29 = vld [vmem:[%s7002_s0 + $0x4] sm:$0xf] }
 0x9a8   :  { %5240 = vst.msk [vmem:[%s7007_s5 + $0x4] sm:$0xf] %vm5181_vm5, %v5239_v62  ;;  %5586 = vst.msk [vmem:[%s7007_s5 + $0x8] sm:$0xf] %vm5181_vm5, %v5293_v1  ;;  %v5270_v62 = vld [vmem:[%s7002_s0 + $0x4] sm:$0xf] }
 0x9a9   :  { %v5185_v32 = vpop.permute.xlu0 %5184  ;;  %v5243_v16 = vpop.permute.xlu1 %5242  ;;  %v5611_v1 = vld [vmem:[%s7002_s0 + $0xc] sm:$0xf] }
 0x9aa   :  { %v5187_v12 = vadd.f32 %v5185_v32, %v5183_v31  ;;  %v5245_v18 = vadd.f32 %v5243_v16, %v5241_v10 }
 0x9ac   :  { %5189 = vst.msk [vmem:[%s7007_s5] sm:$0xf] %vm5188_vm6, %v5187_v12  ;;  %5246 = vst.msk [vmem:[%s7007_s5 + $0x4] sm:$0xf] %vm5188_vm6, %v5245_v18 }
 0x9ad   :  { %v5192_v59 = vpop.permute.xlu0 %5191  ;;  %v6866_v61 = vpop.permute.xlu1 %5354 }
 0x9ae   :  { %v5194_v6 = vadd.f32 %v5192_v59, %v5190_v33  ;;  %v5357_v27 = vadd.f32 %v5603_v13, %v6866_v61 }
 0x9b0   :  { %5196 = vst.msk [vmem:[%s7007_s5] sm:$0xf] %vm5195_vm7, %v5194_v6 }
 0x9b1   :  { %v5249_v34 = vpop.permute.xlu0 %5248  ;;  %v5308_v35 = vpop.permute.xlu1 %5307 }
 0x9b2   :  { %v5251_v36 = vadd.f32 %v5249_v34, %v5247_v9  ;;  %v5310_v4 = vadd.f32 %v5589_v54, %v5308_v35 }
 0x9b4   :  { %5252 = vst.msk [vmem:[%s7007_s5 + $0x4] sm:$0xf] %vm5195_vm7, %v5251_v36 }
 0x9b5   :  { %v5361_v39 = vpop.permute.xlu0 %5360  ;;  %v5199_v41 = vpop.permute.xlu1 %5198 }
 0x9b6   :  { %v5201_v42 = vadd.f32 %v5199_v41, %v5197_v37  ;;  %v5363_v30 = vadd.f32 %v5605_v17, %v5361_v39 }
 0x9b8   :  { %5203 = vst.msk [vmem:[%s7007_s5] sm:$0xf] %vm5202_vm8, %v5201_v42 }
 0x9b9   :  { %v5255_v45 = vpop.permute.xlu0 %5254  ;;  %v5314_v2 = vpop.permute.xlu1 %5313 }
 0x9ba   :  { %v5257_v47 = vadd.f32 %v5255_v45, %v5253_v43  ;;  %v5316_v14 = vadd.f32 %v5591_v56, %v5314_v2 }
 0x9bc   :  { %5258 = vst.msk [vmem:[%s7007_s5 + $0x4] sm:$0xf] %vm5202_vm8, %v5257_v47 }
 0x9bd   :  { %v5367_v49 = vpop.permute.xlu0 %5366  ;;  %v5206_v50 = vpop.permute.xlu1 %5205 }
 0x9be   :  { %v5208_v52 = vadd.f32 %v5206_v50, %v5204_v48  ;;  %v5369_v31 = vadd.f32 %v5607_v22, %v5367_v49 }
 0x9c0   :  { %5210 = vst.msk [vmem:[%s7007_s5] sm:$0xf] %vm5209_vm9, %v5208_v52 }
 0x9c1   :  { %v5320_v53 = vpop.permute.xlu0 %5319  ;;  %v5373_v38 = vpop.permute.xlu1 %5372 }
 0x9c2   :  { %v5322_v19 = vadd.f32 %v5593_v60, %v5320_v53  ;;  %v5375_v32 = vadd.f32 %v5609_v28, %v5373_v38 }
 0x9c5   :  { %v5272_v40 = vpop.permute.xlu0 %5271  ;;  %v5299_v44 = vpop.permute.xlu1 %5298 }
 0x9c6   :  { %v5300_v51 = vrot.slane %v5299_v44, 4  ;;  %v5274_v18 = vadd.f32 %v5272_v40, %v5270_v62 }
 0x9c8   :  { %v5302_v58 = vsel %vm5301_vm10, %v5299_v44, %v5300_v51 }
 0x9c9   :  { %v5304_v63 = vadd.f32 %v5587_v46, %v5302_v58  ;;  %v5346_v0 = vpop.permute.xlu0 %5345  ;;  %v5215_v3 = vpop.permute.xlu1 %5214 }
 0x9ca   :  { %v5347_v7 = vrot.slane %v5346_v0, 4  ;;  %v5216_v11 = vrot.slane %v5215_v3, 4 }
 0x9cb   :  { %5588 = vst.msk [vmem:[%s7007_s5 + $0x8] sm:$0xf] %vm5188_vm6, %v5304_v63 }
 0x9cc   :  { %5590 = vst.msk [vmem:[%s7007_s5 + $0x8] sm:$0xf] %vm5195_vm7, %v5310_v4  ;;  %v5349_v20 = vsel %vm5348_vm11, %v5346_v0, %v5347_v7  ;;  %v5218_v21 = vsel %vm5217_vm12, %v5215_v3, %v5216_v11 }
 0x9cd   :  { %5592 = vst.msk [vmem:[%s7007_s5 + $0x8] sm:$0xf] %vm5202_vm8, %v5316_v14  ;;  %v5351_v23 = vadd.f32 %v5601_v5, %v5349_v20  ;;  %v5220_v24 = vadd.f32 %v5218_v21, %v5211_v8  ;;  %v5263_v25 = vpop.permute.xlu0 %5262  ;;  %v5326_v26 = vpop.permute.xlu1 %5325 }
 0x9ce   :  { %5594 = vst.msk [vmem:[%s7007_s5 + $0x8] sm:$0xf] %vm5209_vm9, %v5322_v19  ;;  %v5264_v55 = vrot.slane %v5263_v25, 4  ;;  %v5328_v57 = vadd.f32 %v5595_v15, %v5326_v26 }
 0x9cf   :  { %5602 = vst.msk [vmem:[%s7007_s5 + $0xc] sm:$0xf] %vm5181_vm5, %v5351_v23 }
 0x9d0   :  { %5222 = vst.msk [vmem:[%s7007_s5] sm:$0xf] %vm5221_vm14, %v5220_v24  ;;  %v5266_v10 = vsel %vm5265_vm15, %v5263_v25, %v5264_v55  ;;  %5596 = vst.msk [vmem:[%s7007_s5 + $0x8] sm:$0xf] %vm5221_vm14, %v5328_v57 }
 0x9d1   :  { %5604 = vst.msk [vmem:[%s7007_s5 + $0xc] sm:$0xf] %vm5188_vm6, %v5357_v27  ;;  %v5268_v16 = vadd.f32 %v5266_v10, %v5259_v29  ;;  %v5379_v12 = vpop.permute.xlu0 %5378 }
 0x9d2   :  { %5606 = vst.msk [vmem:[%s7007_s5 + $0xc] sm:$0xf] %vm5195_vm7, %v5363_v30  ;;  %v5381_v33 = vadd.f32 %v5611_v1, %v5379_v12 }
 0x9d3   :  { %5608 = vst.msk [vmem:[%s7007_s5 + $0xc] sm:$0xf] %vm5202_vm8, %v5369_v31 }
 0x9d4   :  { %5610 = vst.msk [vmem:[%s7007_s5 + $0xc] sm:$0xf] %vm5209_vm9, %v5375_v32  ;;  %5269 = vst.msk [vmem:[%s7007_s5 + $0x4] sm:$0xf] %vm5209_vm9, %v5268_v16 }
 0x9d5   :  { %5275 = vst.msk [vmem:[%s7007_s5 + $0x4] sm:$0xf] %vm5221_vm14, %v5274_v18  ;;  %5612 = vst.msk [vmem:[%s7007_s5 + $0xc] sm:$0xf] %vm5221_vm14, %v5381_v33 }

</bundles_post_ra>
